<compile_context>
chip_gen: v7x
topology: tpu7x:2x2x1
jax: 0.10.0
libtpu: 0.0.40
codegen_flags: <defaults>
</compile_context>

<pallas_src>
import math
import jax
import jax.numpy as jnp
from jax.experimental import pallas as pl
from jax.experimental.pallas import tpu as pltpu

_BN_EPS = 1e-5
_INV_SQRT2 = 1.0 / math.sqrt(2.0)
_LANE = 128
# bf16 matmul inputs: ~2-4x MXU throughput on v6e/v7x and halved weight DMA.
# Accumulation and every non-matmul op remain float32.
MXU_DTYPE = jnp.bfloat16


def _gelu(x):
    # exact (erf) GELU, matching torch.nn.GELU() default
    return 0.5 * x * (1.0 + jax.lax.erf(x * _INV_SQRT2))


def _round_up(v, m):
    return (v + m - 1) // m * m


def _compiler_params(per_step_bytes):
    # Size scoped VMEM from the actual per-step footprint (double-buffered
    # blocks + scratch + temporaries), clamped below v7x's 64 MiB physical.
    vmem = int(min(max(4 * per_step_bytes + (8 << 20), 32 << 20), 60 << 20))
    return pltpu.CompilerParams(
        dimension_semantics=("parallel",),
        vmem_limit_bytes=vmem)


# --------------------------------------------------------------------------
# Kernels
# --------------------------------------------------------------------------
def _make_conv_kxk_kernel(H, W, Cp, K):
    """Pass A: KxK conv (im2col, single MXU matmul) + GELU + BN1 stat partials."""
    P = (K - 1) // 2
    HW = H * W

    def kernel(x_ref, wdw_ref, bdw_ref, h1_ref, stats_ref, pad_scr):
        # In-kernel spatial zero padding into a VMEM halo scratch (avoids a
        # per-layer jnp.pad HBM round trip).
        pad_scr[...] = jnp.zeros_like(pad_scr)
        pad_scr[P:P + H, P:P + W, :] = x_ref[...]

        # im2col: K*K shifted views of the padded scratch, concatenated along
        # channels -> one deep-contraction (HW, K*K*Cp) x (K*K*Cp, Cp) matmul.
        taps = []
        for dh in range(K):
            for dw in range(K):
                taps.append(pad_scr[dh:dh + H, dw:dw + W, :]
                            .reshape(HW, Cp).astype(MXU_DTYPE))
        patches = jnp.concatenate(taps, axis=-1)                # (HW, K*K*Cp)
        acc = jnp.dot(patches, wdw_ref[...],
                      preferred_element_type=jnp.float32)       # (HW, Cp) f32
        h1 = _gelu(acc + bdw_ref[...])                          # f32 elementwise

        h1_ref[...] = h1
        # Per-tile BN1 stats partials: fused sum / sum-of-squares (one pass).
        s = jnp.sum(h1, axis=0, keepdims=True)
        ss = jnp.sum(h1 * h1, axis=0, keepdims=True)
        stats_ref[...] = jnp.concatenate([s, ss], axis=0)       # (2, Cp)

    return kernel


def _pointwise_kernel(h1_ref, w_ref, b_ref, p_ref, stats_ref):
    """Pass B: BN1 (pre-folded into w/b) + 1x1 conv + GELU + BN2 stat partials."""
    p = jnp.dot(h1_ref[...].astype(MXU_DTYPE), w_ref[...],
                preferred_element_type=jnp.float32)
    p = _gelu(p + b_ref[...])
    p_ref[...] = p
    s = jnp.sum(p, axis=0, keepdims=True)
    ss = jnp.sum(p * p, axis=0, keepdims=True)
    stats_ref[...] = jnp.concatenate([s, ss], axis=0)


def _bn_residual_kernel(p_ref, x_ref, scale_ref, shift_ref, out_ref):
    """Pass C: BN2 affine + residual add."""
    out_ref[...] = p_ref[...] * scale_ref[...] + shift_ref[...] + x_ref[...]


# --------------------------------------------------------------------------
# Wrapper
# --------------------------------------------------------------------------
def _finalize_stats(stats, rows, gamma, beta):
    """Tiny (Cp,)-sized glue: global batch-norm statistics -> affine scale/shift."""
    s = jnp.sum(stats, axis=0)                                  # (2, Cp)
    mean = s[0] / rows
    var = jnp.maximum(s[1] / rows - mean * mean, 0.0)           # biased (train BN)
    inv = jax.lax.rsqrt(var + _BN_EPS)
    scale = gamma * inv
    shift = beta - mean * scale
    return scale, shift


def conv_mixer_forward(x_nchw, params, kernel_size):
    """ConvMixer forward. x_nchw: (N, C, H, W) float32 (PyTorch convention)."""
    x = jnp.transpose(x_nchw, (0, 2, 3, 1))                     # NCHW -> NHWC
    N, H, W, C = x.shape
    K = kernel_size
    assert K % 2 == 1, "odd kernel_size required for same-size conv output"
    P = (K - 1) // 2
    Cp = _round_up(C, _LANE)                                    # lane-dense channels
    if Cp != C:
        x = jnp.pad(x, ((0, 0), (0, 0), (0, 0), (0, Cp - C)))
    HW = H * W
    rows = N * HW
    assert HW % 8 == 0, "H*W must be a multiple of 8 (sublane tiling)"
    f32 = jnp.dtype(jnp.float32).itemsize
    mxu = jnp.dtype(MXU_DTYPE).itemsize

    # ---- shared specs (grid over the batch axis: one image per step) ----
    stats_shape = jax.ShapeDtypeStruct((N, 2, Cp), jnp.float32)
    stats_spec = pl.BlockSpec((None, 2, Cp), lambda n: (n, 0, 0))
    rowblk_spec = pl.BlockSpec((HW, Cp), lambda n: (n, 0))
    cvec_spec = pl.BlockSpec((1, Cp), lambda n: (0, 0))

    # ---- pass A: KxK conv + GELU + BN1 stat partials ----
    bytes_a = (2 * 2 * HW * Cp * f32                    # x in + h1 out (dbl buf)
               + (H + 2 * P) * (W + 2 * P) * Cp * f32   # halo scratch
               + K * K * Cp * Cp * mxu                  # weights
               + HW * K * K * Cp * mxu                  # im2col slab
               + HW * Cp * f32)                         # f32 accumulator
    conv_kxk = pl.pallas_call(
        _make_conv_kxk_kernel(H, W, Cp, K),
        out_shape=(jax.ShapeDtypeStruct((rows, Cp), jnp.float32), stats_shape),
        grid_spec=pltpu.PrefetchScalarGridSpec(
            num_scalar_prefetch=0, grid=(N,),
            in_specs=[pl.BlockSpec((None, H, W, Cp), lambda n: (n, 0, 0, 0)),
                      pl.BlockSpec((K * K * Cp, Cp), lambda n: (0, 0)),
                      cvec_spec],
            out_specs=(rowblk_spec, stats_spec),
            scratch_shapes=[pltpu.VMEM((H + 2 * P, W + 2 * P, Cp), jnp.float32)]),
        compiler_params=_compiler_params(bytes_a),
        cost_estimate=pl.CostEstimate(
            flops=2 * rows * (K * K * Cp) * Cp,
            transcendentals=rows * Cp,
            bytes_accessed=2 * rows * Cp * f32 + K * K * Cp * Cp * mxu),
    )

    # ---- pass B: (BN1-folded) 1x1 conv + GELU + BN2 stat partials ----
    bytes_b = 2 * 2 * HW * Cp * f32 + Cp * Cp * mxu + HW * Cp * mxu
    pointwise = pl.pallas_call(
        _pointwise_kernel,
        out_shape=(jax.ShapeDtypeStruct((rows, Cp), jnp.float32), stats_shape),
        grid_spec=pltpu.PrefetchScalarGridSpec(
            num_scalar_prefetch=0, grid=(N,),
            in_specs=[rowblk_spec,
                      pl.BlockSpec((Cp, Cp), lambda n: (0, 0)),
                      cvec_spec],
            out_specs=(rowblk_spec, stats_spec)),
        compiler_params=_compiler_params(bytes_b),
        cost_estimate=pl.CostEstimate(
            flops=2 * rows * Cp * Cp,
            transcendentals=rows * Cp,
            bytes_accessed=2 * rows * Cp * f32 + Cp * Cp * mxu),
    )

    # ---- pass C: BN2 affine + residual add ----
    bytes_c = 3 * 2 * HW * Cp * f32
    bn_residual = pl.pallas_call(
        _bn_residual_kernel,
        out_shape=jax.ShapeDtypeStruct((rows, Cp), jnp.float32),
        grid_spec=pltpu.PrefetchScalarGridSpec(
            num_scalar_prefetch=0, grid=(N,),
            in_specs=[rowblk_spec, rowblk_spec, cvec_spec, cvec_spec],
            out_specs=rowblk_spec),
        compiler_params=_compiler_params(bytes_c),
        cost_estimate=pl.CostEstimate(
            flops=3 * rows * Cp, transcendentals=0,
            bytes_accessed=3 * rows * Cp * f32),
    )

    for layer in params:
        # Pass A
        h1, stats1 = conv_kxk(x, layer["wdw"], layer["bdw"])

        # Glue: finalize BN1 and fold it into the 1x1-conv weights/bias
        # (h*scale+shift)@W + b == h@(scale[:,None]*W) + (shift@W + b).
        scale1, shift1 = _finalize_stats(stats1, rows, layer["g1"], layer["b1"])
        w_eff = (scale1[:, None] * layer["wpw"]).astype(MXU_DTYPE)
        b_eff = (shift1 @ layer["wpw"] + layer["bpw"])[None, :]

        # Pass B
        p, stats2 = pointwise(h1, w_eff, b_eff)

        # Glue: finalize BN2.
        scale2, shift2 = _finalize_stats(stats2, rows, layer["g2"], layer["b2"])

        # Pass C
        out = bn_residual(p, x.reshape(rows, Cp),
                          scale2[None, :], shift2[None, :])
        x = out.reshape(N, H, W, Cp)

    x = x[..., :C]                                   # drop channel padding
    return jnp.transpose(x, (0, 3, 1, 2))            # NHWC -> NCHW


# --------------------------------------------------------------------------
# Parameters (PyTorch-equivalent shapes, repacked for the kernels)
# --------------------------------------------------------------------------
def init_params(key, C, K, depth):
    """Deterministic synthetic parameters, channels zero-padded to 128 lanes."""
    Cp = _round_up(C, _LANE)
    cpad = Cp - C
    params = []
    keys = jax.random.split(key, depth * 8)
    ki = iter(range(depth * 8))
    pad1 = lambda v: jnp.pad(v, (0, cpad))
    for _ in range(depth):
        # Conv2d(C, C, K): weight (C_out, C_in, K, K), bias (C,)
        w_dw = jax.random.normal(keys[next(ki)], (C, C, K, K), jnp.float32)
        w_dw = w_dw * (1.0 / math.sqrt(C * K * K))
        b_dw = 0.1 * jax.random.normal(keys[next(ki)], (C,), jnp.float32)
        # BatchNorm2d(C)
        g1 = 1.0 + 0.1 * jax.random.normal(keys[next(ki)], (C,), jnp.float32)
        b1 = 0.1 * jax.random.normal(keys[next(ki)], (C,), jnp.float32)
        # Conv2d(C, C, 1)
        w_pw = jax.random.normal(keys[next(ki)], (C, C, 1, 1), jnp.float32)
        w_pw = w_pw * (1.0 / math.sqrt(C))
        b_pw = 0.1 * jax.random.normal(keys[next(ki)], (C,), jnp.float32)
        g2 = 1.0 + 0.1 * jax.random.normal(keys[next(ki)], (C,), jnp.float32)
        b2 = 0.1 * jax.random.normal(keys[next(ki)], (C,), jnp.float32)

        # (K,K,Cin,Cout) zero-padded to Cp, flattened to (K*K*Cp, Cp): row
        # index ((dh*K+dw)*Cp + ci) matches the kernel's im2col tap order.
        wdw = jnp.transpose(w_dw, (2, 3, 1, 0))
        wdw = jnp.pad(wdw, ((0, 0), (0, 0), (0, cpad), (0, cpad)))
        wdw = wdw.reshape(K * K * Cp, Cp).astype(MXU_DTYPE)
        # (Cin, Cout) f32 for the 1x1 conv (BN1 fold happens per-layer in glue)
        wpw = jnp.pad(jnp.transpose(w_pw[:, :, 0, 0], (1, 0)),
                      ((0, cpad), (0, cpad)))

        params.append(dict(
            wdw=wdw,
            bdw=pad1(b_dw)[None, :],                 # (1, Cp) f32
            g1=pad1(g1), b1=pad1(b1),                # (Cp,) f32, pad gamma = 0
            wpw=wpw,                                 # (Cp, Cp) f32
            bpw=pad1(b_pw),                          # (Cp,) f32
            g2=pad1(g2), b2=pad1(b2),
        ))
    return params


if __name__ == "__main__":
    # TODO(synk): groups != 1 (grouped/depthwise conv) not implemented; the
    # module default groups=1 is what is reproduced here.
    N, C, H, W = 2, 32, 16, 16
    K, depth = 3, 2

    root = jax.random.PRNGKey(0)
    k_x, k_p = jax.random.split(root)
    x = jax.random.normal(k_x, (N, C, H, W), jnp.float32)
    params = init_params(k_p, C, K, depth)

    fwd = jax.jit(lambda xx: conv_mixer_forward(xx, params, K))
    y = fwd(x)
    jax.block_until_ready(y)
    assert y.shape == (N, C, H, W) and y.dtype == jnp.float32
    assert bool(jnp.all(jnp.isfinite(y)))
    print("KERNEL_OK")
</pallas_src>

<mosaic_0001>
module attributes {stable_mosaic.version = 11 : i64} {
  func.func @kernel(%arg0: i32, %arg1: memref<1x16x16x128xf32, #tpu.memory_space<vmem>>, %arg2: memref<1152x128xbf16, #tpu.memory_space<vmem>>, %arg3: memref<1x128xf32, #tpu.memory_space<vmem>>, %arg4: memref<256x128xf32, #tpu.memory_space<vmem>>, %arg5: memref<1x2x128xf32, #tpu.memory_space<vmem>>, %arg6: memref<18x18x128xf32, #tpu.memory_space<vmem>>) attributes {dimension_semantics = [#tpu.dimension_semantics<parallel>], iteration_bounds = array<i64: 2>, scalar_prefetch = 0 : i64, scratch_operands = 1 : i64, tpu.core_type = #tpu.core_type<tc>, window_params = [{transform_indices = @transform_0, window_bounds = array<i64: 1, 16, 16, 128>}, {pipeline_mode = #tpu.pipeline_mode<synchronous>, transform_indices = @transform_1, window_bounds = array<i64: 1152, 128>}, {pipeline_mode = #tpu.pipeline_mode<synchronous>, transform_indices = @transform_2, window_bounds = array<i64: 1, 128>}, {transform_indices = @transform_3, window_bounds = array<i64: 256, 128>}, {transform_indices = @transform_4, window_bounds = array<i64: 1, 2, 128>}]} {
    %cst = arith.constant 0.000000e+00 : f32
    %0 = vector.broadcast %cst : f32 to vector<18x18x128xf32>
    %c0 = arith.constant 0 : index
    %c0_0 = arith.constant 0 : index
    %c0_1 = arith.constant 0 : index
    %1 = vector.load %arg6[%c0, %c0_0, %c0_1] : memref<18x18x128xf32, #tpu.memory_space<vmem>>, vector<18x18x128xf32>
    tpu.vector_store %arg6[%c0, %c0_0, %c0_1], %0 {strides = array<i32>} : memref<18x18x128xf32, #tpu.memory_space<vmem>>, vector<18x18x128xf32>,
    %c0_2 = arith.constant 0 : index
    %c0_3 = arith.constant 0 : index
    %c0_4 = arith.constant 0 : index
    %c0_5 = arith.constant 0 : index
    %2 = vector.load %arg1[%c0_2, %c0_3, %c0_4, %c0_5] : memref<1x16x16x128xf32, #tpu.memory_space<vmem>>, vector<1x16x16x128xf32>
    %3 = vector.shape_cast %2 : vector<1x16x16x128xf32> to vector<16x16x128xf32>
    %c1 = arith.constant 1 : index
    %c1_6 = arith.constant 1 : index
    %c0_7 = arith.constant 0 : index
    %4 = vector.load %arg6[%c1, %c1_6, %c0_7] : memref<18x18x128xf32, #tpu.memory_space<vmem>>, vector<16x16x128xf32>
    tpu.vector_store %arg6[%c1, %c1_6, %c0_7], %3 {strides = array<i32>} : memref<18x18x128xf32, #tpu.memory_space<vmem>>, vector<16x16x128xf32>,
    %c0_8 = arith.constant 0 : index
    %c0_9 = arith.constant 0 : index
    %c0_10 = arith.constant 0 : index
    %5 = vector.load %arg6[%c0_8, %c0_9, %c0_10] : memref<18x18x128xf32, #tpu.memory_space<vmem>>, vector<16x16x128xf32>
    %6 = vector.shape_cast %5 : vector<16x16x128xf32> to vector<256x128xf32>
    %7 = arith.truncf %6 : vector<256x128xf32> to vector<256x128xbf16>
    %c0_11 = arith.constant 0 : index
    %c1_12 = arith.constant 1 : index
    %c0_13 = arith.constant 0 : index
    %8 = vector.load %arg6[%c0_11, %c1_12, %c0_13] : memref<18x18x128xf32, #tpu.memory_space<vmem>>, vector<16x16x128xf32>
    %9 = vector.shape_cast %8 : vector<16x16x128xf32> to vector<256x128xf32>
    %10 = arith.truncf %9 : vector<256x128xf32> to vector<256x128xbf16>
    %c0_14 = arith.constant 0 : index
    %c2 = arith.constant 2 : index
    %c0_15 = arith.constant 0 : index
    %11 = vector.load %arg6[%c0_14, %c2, %c0_15] : memref<18x18x128xf32, #tpu.memory_space<vmem>>, vector<16x16x128xf32>
    %12 = vector.shape_cast %11 : vector<16x16x128xf32> to vector<256x128xf32>
    %13 = arith.truncf %12 : vector<256x128xf32> to vector<256x128xbf16>
    %c1_16 = arith.constant 1 : index
    %c0_17 = arith.constant 0 : index
    %c0_18 = arith.constant 0 : index
    %14 = vector.load %arg6[%c1_16, %c0_17, %c0_18] : memref<18x18x128xf32, #tpu.memory_space<vmem>>, vector<16x16x128xf32>
    %15 = vector.shape_cast %14 : vector<16x16x128xf32> to vector<256x128xf32>
    %16 = arith.truncf %15 : vector<256x128xf32> to vector<256x128xbf16>
    %c1_19 = arith.constant 1 : index
    %c1_20 = arith.constant 1 : index
    %c0_21 = arith.constant 0 : index
    %17 = vector.load %arg6[%c1_19, %c1_20, %c0_21] : memref<18x18x128xf32, #tpu.memory_space<vmem>>, vector<16x16x128xf32>
    %18 = vector.shape_cast %17 : vector<16x16x128xf32> to vector<256x128xf32>
    %19 = arith.truncf %18 : vector<256x128xf32> to vector<256x128xbf16>
    %c1_22 = arith.constant 1 : index
    %c2_23 = arith.constant 2 : index
    %c0_24 = arith.constant 0 : index
    %20 = vector.load %arg6[%c1_22, %c2_23, %c0_24] : memref<18x18x128xf32, #tpu.memory_space<vmem>>, vector<16x16x128xf32>
    %21 = vector.shape_cast %20 : vector<16x16x128xf32> to vector<256x128xf32>
    %22 = arith.truncf %21 : vector<256x128xf32> to vector<256x128xbf16>
    %c2_25 = arith.constant 2 : index
    %c0_26 = arith.constant 0 : index
    %c0_27 = arith.constant 0 : index
    %23 = vector.load %arg6[%c2_25, %c0_26, %c0_27] : memref<18x18x128xf32, #tpu.memory_space<vmem>>, vector<16x16x128xf32>
    %24 = vector.shape_cast %23 : vector<16x16x128xf32> to vector<256x128xf32>
    %25 = arith.truncf %24 : vector<256x128xf32> to vector<256x128xbf16>
    %c2_28 = arith.constant 2 : index
    %c1_29 = arith.constant 1 : index
    %c0_30 = arith.constant 0 : index
    %26 = vector.load %arg6[%c2_28, %c1_29, %c0_30] : memref<18x18x128xf32, #tpu.memory_space<vmem>>, vector<16x16x128xf32>
    %27 = vector.shape_cast %26 : vector<16x16x128xf32> to vector<256x128xf32>
    %28 = arith.truncf %27 : vector<256x128xf32> to vector<256x128xbf16>
    %c2_31 = arith.constant 2 : index
    %c2_32 = arith.constant 2 : index
    %c0_33 = arith.constant 0 : index
    %29 = vector.load %arg6[%c2_31, %c2_32, %c0_33] : memref<18x18x128xf32, #tpu.memory_space<vmem>>, vector<16x16x128xf32>
    %30 = vector.shape_cast %29 : vector<16x16x128xf32> to vector<256x128xf32>
    %31 = arith.truncf %30 : vector<256x128xf32> to vector<256x128xbf16>
    %32 = tpu.concatenate %7, %10, %13, %16, %19, %22, %25, %28, %31 in 1 : vector<256x128xbf16>, vector<256x128xbf16>, vector<256x128xbf16>, vector<256x128xbf16>, vector<256x128xbf16>, vector<256x128xbf16>, vector<256x128xbf16>, vector<256x128xbf16>, vector<256x128xbf16> -> vector<256x1152xbf16>
    %c0_34 = arith.constant 0 : index
    %c0_35 = arith.constant 0 : index
    %33 = vector.load %arg2[%c0_34, %c0_35] : memref<1152x128xbf16, #tpu.memory_space<vmem>>, vector<1152x128xbf16>
    %cst_36 = arith.constant dense<0.000000e+00> : vector<256x128xf32>
    %34 = tpu.matmul %32, %33, %cst_36 {dimension_numbers = #tpu.dot_dimension_numbers<[1], [0], [0], [1], [0, 0, 1, 1], [], []>} : vector<256x1152xbf16>, vector<1152x128xbf16>, vector<256x128xf32> -> vector<256x128xf32>
    %c0_37 = arith.constant 0 : index
    %c0_38 = arith.constant 0 : index
    %35 = vector.load %arg3[%c0_37, %c0_38] : memref<1x128xf32, #tpu.memory_space<vmem>>, vector<1x128xf32>
    %36 = vector.broadcast %35 : vector<1x128xf32> to vector<256x128xf32>
    %37 = arith.addf %34, %36 : vector<256x128xf32>
    %cst_39 = arith.constant 5.000000e-01 : f32
    %38 = vector.broadcast %cst_39 : f32 to vector<256x128xf32>
    %39 = arith.mulf %38, %37 : vector<256x128xf32>
    %cst_40 = arith.constant 0.707106769 : f32
    %40 = vector.broadcast %cst_40 : f32 to vector<256x128xf32>
    %41 = arith.mulf %37, %40 : vector<256x128xf32>
    %42 = math.erf %41 : vector<256x128xf32>
    %cst_41 = arith.constant 1.000000e+00 : f32
    %43 = vector.broadcast %cst_41 : f32 to vector<256x128xf32>
    %44 = arith.addf %43, %42 : vector<256x128xf32>
    %45 = arith.mulf %39, %44 : vector<256x128xf32>
    %c0_42 = arith.constant 0 : index
    %c0_43 = arith.constant 0 : index
    %46 = vector.load %arg4[%c0_42, %c0_43] : memref<256x128xf32, #tpu.memory_space<vmem>>, vector<256x128xf32>
    tpu.vector_store %arg4[%c0_42, %c0_43], %45 {strides = array<i32>} : memref<256x128xf32, #tpu.memory_space<vmem>>, vector<256x128xf32>,
    %cst_44 = arith.constant dense<0.000000e+00> : vector<128xf32>
    %47 = vector.multi_reduction <add>, %45, %cst_44 [0] : vector<256x128xf32> to vector<128xf32>
    %48 = vector.shape_cast %47 : vector<128xf32> to vector<1x128xf32>
    %49 = arith.mulf %45, %45 : vector<256x128xf32>
    %cst_45 = arith.constant dense<0.000000e+00> : vector<128xf32>
    %50 = vector.multi_reduction <add>, %49, %cst_45 [0] : vector<256x128xf32> to vector<128xf32>
    %51 = vector.shape_cast %50 : vector<128xf32> to vector<1x128xf32>
    %52 = tpu.concatenate %48, %51 in 0 : vector<1x128xf32>, vector<1x128xf32> -> vector<2x128xf32>
    %c0_46 = arith.constant 0 : index
    %c0_47 = arith.constant 0 : index
    %c0_48 = arith.constant 0 : index
    %53 = vector.load %arg5[%c0_46, %c0_47, %c0_48] : memref<1x2x128xf32, #tpu.memory_space<vmem>>, vector<1x2x128xf32>
    %54 = vector.shape_cast %53 : vector<1x2x128xf32> to vector<2x128xf32>
    %55 = vector.shape_cast %52 : vector<2x128xf32> to vector<1x2x128xf32>
    tpu.vector_store %arg5[%c0_46, %c0_47, %c0_48], %55 {strides = array<i32>} : memref<1x2x128xf32, #tpu.memory_space<vmem>>, vector<1x2x128xf32>,
    return
  }
  func.func @transform_0(%arg0: i32) -> (i32, i32, i32, i32) {
    %c0_i32 = arith.constant 0 : i32
    %c0_i32_0 = arith.constant 0 : i32
    %c0_i32_1 = arith.constant 0 : i32
    %c0_i32_2 = arith.constant 0 : i32
    return %arg0, %c0_i32, %c0_i32_0, %c0_i32_1 : i32, i32, i32, i32
  }
  func.func @transform_1(%arg0: i32) -> (i32, i32) {
    %c0_i32 = arith.constant 0 : i32
    %c0_i32_0 = arith.constant 0 : i32
    %c0_i32_1 = arith.constant 0 : i32
    return %c0_i32, %c0_i32_0 : i32, i32
  }
  func.func @transform_2(%arg0: i32) -> (i32, i32) {
    %c0_i32 = arith.constant 0 : i32
    %c0_i32_0 = arith.constant 0 : i32
    %c0_i32_1 = arith.constant 0 : i32
    return %c0_i32, %c0_i32_0 : i32, i32
  }
  func.func @transform_3(%arg0: i32) -> (i32, i32) {
    %c0_i32 = arith.constant 0 : i32
    %c0_i32_0 = arith.constant 0 : i32
    return %arg0, %c0_i32 : i32, i32
  }
  func.func @transform_4(%arg0: i32) -> (i32, i32, i32) {
    %c0_i32 = arith.constant 0 : i32
    %c0_i32_0 = arith.constant 0 : i32
    %c0_i32_1 = arith.constant 0 : i32
    return %arg0, %c0_i32, %c0_i32_0 : i32, i32, i32
  }
}

module attributes {stable_mosaic.version = 11 : i64} {
  func.func @_pointwise_kernel(%arg0: i32, %arg1: memref<256x128xf32, #tpu.memory_space<vmem>>, %arg2: memref<128x128xbf16, #tpu.memory_space<vmem>>, %arg3: memref<1x128xf32, #tpu.memory_space<vmem>>, %arg4: memref<256x128xf32, #tpu.memory_space<vmem>>, %arg5: memref<1x2x128xf32, #tpu.memory_space<vmem>>) attributes {dimension_semantics = [#tpu.dimension_semantics<parallel>], iteration_bounds = array<i64: 2>, scalar_prefetch = 0 : i64, scratch_operands = 0 : i64, tpu.core_type = #tpu.core_type<tc>, window_params = [{transform_indices = @transform_0, window_bounds = array<i64: 256, 128>}, {pipeline_mode = #tpu.pipeline_mode<synchronous>, transform_indices = @transform_1, window_bounds = array<i64: 128, 128>}, {pipeline_mode = #tpu.pipeline_mode<synchronous>, transform_indices = @transform_2, window_bounds = array<i64: 1, 128>}, {transform_indices = @transform_3, window_bounds = array<i64: 256, 128>}, {transform_indices = @transform_4, window_bounds = array<i64: 1, 2, 128>}]} {
    %c0 = arith.constant 0 : index
    %c0_0 = arith.constant 0 : index
    %0 = vector.load %arg1[%c0, %c0_0] : memref<256x128xf32, #tpu.memory_space<vmem>>, vector<256x128xf32>
    %1 = arith.truncf %0 : vector<256x128xf32> to vector<256x128xbf16>
    %c0_1 = arith.constant 0 : index
    %c0_2 = arith.constant 0 : index
    %2 = vector.load %arg2[%c0_1, %c0_2] : memref<128x128xbf16, #tpu.memory_space<vmem>>, vector<128x128xbf16>
    %cst = arith.constant dense<0.000000e+00> : vector<256x128xf32>
    %3 = tpu.matmul %1, %2, %cst {dimension_numbers = #tpu.dot_dimension_numbers<[1], [0], [0], [1], [0, 0, 1, 1], [], []>} : vector<256x128xbf16>, vector<128x128xbf16>, vector<256x128xf32> -> vector<256x128xf32>
    %c0_3 = arith.constant 0 : index
    %c0_4 = arith.constant 0 : index
    %4 = vector.load %arg3[%c0_3, %c0_4] : memref<1x128xf32, #tpu.memory_space<vmem>>, vector<1x128xf32>
    %5 = vector.broadcast %4 : vector<1x128xf32> to vector<256x128xf32>
    %6 = arith.addf %3, %5 : vector<256x128xf32>
    %cst_5 = arith.constant 5.000000e-01 : f32
    %7 = vector.broadcast %cst_5 : f32 to vector<256x128xf32>
    %8 = arith.mulf %7, %6 : vector<256x128xf32>
    %cst_6 = arith.constant 0.707106769 : f32
    %9 = vector.broadcast %cst_6 : f32 to vector<256x128xf32>
    %10 = arith.mulf %6, %9 : vector<256x128xf32>
    %11 = math.erf %10 : vector<256x128xf32>
    %cst_7 = arith.constant 1.000000e+00 : f32
    %12 = vector.broadcast %cst_7 : f32 to vector<256x128xf32>
    %13 = arith.addf %12, %11 : vector<256x128xf32>
    %14 = arith.mulf %8, %13 : vector<256x128xf32>
    %c0_8 = arith.constant 0 : index
    %c0_9 = arith.constant 0 : index
    %15 = vector.load %arg4[%c0_8, %c0_9] : memref<256x128xf32, #tpu.memory_space<vmem>>, vector<256x128xf32>
    tpu.vector_store %arg4[%c0_8, %c0_9], %14 {strides = array<i32>} : memref<256x128xf32, #tpu.memory_space<vmem>>, vector<256x128xf32>,
    %cst_10 = arith.constant dense<0.000000e+00> : vector<128xf32>
    %16 = vector.multi_reduction <add>, %14, %cst_10 [0] : vector<256x128xf32> to vector<128xf32>
    %17 = vector.shape_cast %16 : vector<128xf32> to vector<1x128xf32>
    %18 = arith.mulf %14, %14 : vector<256x128xf32>
    %cst_11 = arith.constant dense<0.000000e+00> : vector<128xf32>
    %19 = vector.multi_reduction <add>, %18, %cst_11 [0] : vector<256x128xf32> to vector<128xf32>
    %20 = vector.shape_cast %19 : vector<128xf32> to vector<1x128xf32>
    %21 = tpu.concatenate %17, %20 in 0 : vector<1x128xf32>, vector<1x128xf32> -> vector<2x128xf32>
    %c0_12 = arith.constant 0 : index
    %c0_13 = arith.constant 0 : index
    %c0_14 = arith.constant 0 : index
    %22 = vector.load %arg5[%c0_12, %c0_13, %c0_14] : memref<1x2x128xf32, #tpu.memory_space<vmem>>, vector<1x2x128xf32>
    %23 = vector.shape_cast %22 : vector<1x2x128xf32> to vector<2x128xf32>
    %24 = vector.shape_cast %21 : vector<2x128xf32> to vector<1x2x128xf32>
    tpu.vector_store %arg5[%c0_12, %c0_13, %c0_14], %24 {strides = array<i32>} : memref<1x2x128xf32, #tpu.memory_space<vmem>>, vector<1x2x128xf32>,
    return
  }
  func.func @transform_0(%arg0: i32) -> (i32, i32) {
    %c0_i32 = arith.constant 0 : i32
    %c0_i32_0 = arith.constant 0 : i32
    return %arg0, %c0_i32 : i32, i32
  }
  func.func @transform_1(%arg0: i32) -> (i32, i32) {
    %c0_i32 = arith.constant 0 : i32
    %c0_i32_0 = arith.constant 0 : i32
    %c0_i32_1 = arith.constant 0 : i32
    return %c0_i32, %c0_i32_0 : i32, i32
  }
  func.func @transform_2(%arg0: i32) -> (i32, i32) {
    %c0_i32 = arith.constant 0 : i32
    %c0_i32_0 = arith.constant 0 : i32
    %c0_i32_1 = arith.constant 0 : i32
    return %c0_i32, %c0_i32_0 : i32, i32
  }
  func.func @transform_3(%arg0: i32) -> (i32, i32) {
    %c0_i32 = arith.constant 0 : i32
    %c0_i32_0 = arith.constant 0 : i32
    return %arg0, %c0_i32 : i32, i32
  }
  func.func @transform_4(%arg0: i32) -> (i32, i32, i32) {
    %c0_i32 = arith.constant 0 : i32
    %c0_i32_0 = arith.constant 0 : i32
    %c0_i32_1 = arith.constant 0 : i32
    return %arg0, %c0_i32, %c0_i32_0 : i32, i32, i32
  }
}

module attributes {stable_mosaic.version = 11 : i64} {
  func.func @_bn_residual_kernel(%arg0: i32, %arg1: memref<256x128xf32, #tpu.memory_space<vmem>>, %arg2: memref<256x128xf32, #tpu.memory_space<vmem>>, %arg3: memref<1x128xf32, #tpu.memory_space<vmem>>, %arg4: memref<1x128xf32, #tpu.memory_space<vmem>>, %arg5: memref<256x128xf32, #tpu.memory_space<vmem>>) attributes {dimension_semantics = [#tpu.dimension_semantics<parallel>], iteration_bounds = array<i64: 2>, scalar_prefetch = 0 : i64, scratch_operands = 0 : i64, tpu.core_type = #tpu.core_type<tc>, window_params = [{transform_indices = @transform_0, window_bounds = array<i64: 256, 128>}, {transform_indices = @transform_1, window_bounds = array<i64: 256, 128>}, {pipeline_mode = #tpu.pipeline_mode<synchronous>, transform_indices = @transform_2, window_bounds = array<i64: 1, 128>}, {pipeline_mode = #tpu.pipeline_mode<synchronous>, transform_indices = @transform_3, window_bounds = array<i64: 1, 128>}, {transform_indices = @transform_4, window_bounds = array<i64: 256, 128>}]} {
    %c0 = arith.constant 0 : index
    %c0_0 = arith.constant 0 : index
    %0 = vector.load %arg1[%c0, %c0_0] : memref<256x128xf32, #tpu.memory_space<vmem>>, vector<256x128xf32>
    %c0_1 = arith.constant 0 : index
    %c0_2 = arith.constant 0 : index
    %1 = vector.load %arg3[%c0_1, %c0_2] : memref<1x128xf32, #tpu.memory_space<vmem>>, vector<1x128xf32>
    %2 = vector.broadcast %1 : vector<1x128xf32> to vector<256x128xf32>
    %3 = arith.mulf %0, %2 : vector<256x128xf32>
    %c0_3 = arith.constant 0 : index
    %c0_4 = arith.constant 0 : index
    %4 = vector.load %arg4[%c0_3, %c0_4] : memref<1x128xf32, #tpu.memory_space<vmem>>, vector<1x128xf32>
    %5 = vector.broadcast %4 : vector<1x128xf32> to vector<256x128xf32>
    %6 = arith.addf %3, %5 : vector<256x128xf32>
    %c0_5 = arith.constant 0 : index
    %c0_6 = arith.constant 0 : index
    %7 = vector.load %arg2[%c0_5, %c0_6] : memref<256x128xf32, #tpu.memory_space<vmem>>, vector<256x128xf32>
    %8 = arith.addf %6, %7 : vector<256x128xf32>
    %c0_7 = arith.constant 0 : index
    %c0_8 = arith.constant 0 : index
    %9 = vector.load %arg5[%c0_7, %c0_8] : memref<256x128xf32, #tpu.memory_space<vmem>>, vector<256x128xf32>
    tpu.vector_store %arg5[%c0_7, %c0_8], %8 {strides = array<i32>} : memref<256x128xf32, #tpu.memory_space<vmem>>, vector<256x128xf32>,
    return
  }
  func.func @transform_0(%arg0: i32) -> (i32, i32) {
    %c0_i32 = arith.constant 0 : i32
    %c0_i32_0 = arith.constant 0 : i32
    return %arg0, %c0_i32 : i32, i32
  }
  func.func @transform_1(%arg0: i32) -> (i32, i32) {
    %c0_i32 = arith.constant 0 : i32
    %c0_i32_0 = arith.constant 0 : i32
    return %arg0, %c0_i32 : i32, i32
  }
  func.func @transform_2(%arg0: i32) -> (i32, i32) {
    %c0_i32 = arith.constant 0 : i32
    %c0_i32_0 = arith.constant 0 : i32
    %c0_i32_1 = arith.constant 0 : i32
    return %c0_i32, %c0_i32_0 : i32, i32
  }
  func.func @transform_3(%arg0: i32) -> (i32, i32) {
    %c0_i32 = arith.constant 0 : i32
    %c0_i32_0 = arith.constant 0 : i32
    %c0_i32_1 = arith.constant 0 : i32
    return %c0_i32, %c0_i32_0 : i32, i32
  }
  func.func @transform_4(%arg0: i32) -> (i32, i32) {
    %c0_i32 = arith.constant 0 : i32
    %c0_i32_0 = arith.constant 0 : i32
    return %arg0, %c0_i32 : i32, i32
  }
}

</mosaic_0001>

<bundles_post_ra>
// kernel: _lambda_.8
= control target key start
LH: loop header
LB: loop body
LE: loop exit
PB: predicated region body
PF: predicated region fallthrough
CT: control target
= control target key end

     0   :  { %s553_s15 = smov 0   ;;  %s749_s0 = inlined_call_operand.vmem [shape: f32[512,128], index: 0, kind: input, shape index: {}]   ;;  %s750_s1 = inlined_call_operand.vmem [shape: f32[512,128], index: 1, kind: input, shape index: {}]   ;;  %s751_s2 = inlined_call_operand.vmem [shape: f32[1,128], index: 2, kind: input, shape index: {}]   ;;  %s752_s3 = inlined_call_operand.vmem [shape: f32[1,128], index: 3, kind: input, shape index: {}]   ;;  %s753_s4 = inlined_call_operand.vmem [shape: f32[512,128], index: 4, kind: output, shape index: {}]  }
   0x1 LB: > { %s497_s16 = sadd.s32 4294967295, %s526_s15   ;;  %p501_p0 = scmp.ge.s32.totalorder %s526_s15, 1  ;;  %s526_s15 = sphi %s553_s15, %s14_s15  }
   0x2   : > { %p174_p1 = scmp.lt.s32.totalorder %s526_s15, 3 }
   0x4   : > { %p175_p2 = pnand %p501_p0, %p174_p1 }
   0x5   : > { %s502_s17 = sshll.u32 (!%p175_p2), %s497_s16, 5  ;;  %v564_v0 = vld [vmem:[%s751_s2] ss:$0 sm:$0xff] (!%p175_p2) }
   0x6   : > { %178 = sbr.rel (%p175_p2) target bundleno = 49 (0x31), region = 36  ;;  %p206_p3 = scmp.lt.s32.totalorder (!%p175_p2), %s502_s17, 63  ;;  %v580_v2 = vld [vmem:[%s752_s3] ss:$0 sm:$0xff] (!%p175_p2) }
   0xd   : > { %s755_s17 = smov (!%p206_p3, %s502_s17), 63 }
   0xe   : > { %s503_s18 = sshll.u32 %s755_s17, 3 }
   0xf   : > { %s569_s23 = scalar_lea.vmem %s749_s0, %s503_s18  ;;  %s574_s26 = scalar_lea.vmem %s750_s1, %s503_s18 }
  0x10   : > { %v223_v1 = vld [vmem:[%s569_s23] sm:$0xff]  ;;  %v224_v3 = vld [vmem:[%s569_s23 + $0x8] sm:$0xff]  ;;  %v225_v7 = vld [vmem:[%s569_s23 + $0x10] sm:$0xff]  ;;  %s601_s5 = scalar_lea.vmem %s753_s4, %s503_s18 }
  0x11   : > { %v262_v4 = vmul.f32 %v564_v0, %v223_v1  ;;  %v333_v5 = vld [vmem:[%s574_s26] sm:$0xff]  ;;  %v263_v6 = vmul.f32 %v564_v0, %v224_v3  ;;  %v334_v8 = vld [vmem:[%s574_s26 + $0x8] sm:$0xff]  ;;  %v264_v9 = vmul.f32 %v564_v0, %v225_v7  ;;  %v226_v10 = vld [vmem:[%s569_s23 + $0x18] sm:$0xff] }
  0x12   : > { %v227_v11 = vld [vmem:[%s569_s23 + $0x20] sm:$0xff]  ;;  %v335_v14 = vld [vmem:[%s574_s26 + $0x10] sm:$0xff]  ;;  %v265_v15 = vmul.f32 %v564_v0, %v226_v10  ;;  %v336_v16 = vld [vmem:[%s574_s26 + $0x18] sm:$0xff] }
  0x13   : > { %v301_v12 = vadd.f32 %v580_v2, %v262_v4  ;;  %v302_v13 = vadd.f32 %v580_v2, %v263_v6  ;;  %v266_v17 = vmul.f32 %v564_v0, %v227_v11  ;;  %v228_v18 = vld [vmem:[%s569_s23 + $0x28] sm:$0xff]  ;;  %v303_v19 = vadd.f32 %v580_v2, %v264_v9  ;;  %v337_v20 = vld [vmem:[%s574_s26 + $0x20] sm:$0xff]  ;;  %v229_v22 = vld [vmem:[%s569_s23 + $0x30] sm:$0xff] }
  0x14   : > { %v267_v21 = vmul.f32 %v564_v0, %v228_v18  ;;  %v230_v23 = vld [vmem:[%s569_s23 + $0x38] sm:$0xff]  ;;  %v304_v26 = vadd.f32 %v580_v2, %v265_v15  ;;  %v338_v28 = vld [vmem:[%s574_s26 + $0x28] sm:$0xff]  ;;  %v231_v29 = vld [vmem:[%s569_s23 + $0x40] sm:$0xff]  ;;  %v268_v32 = vmul.f32 %v564_v0, %v229_v22 }
  0x15   : > { %v365_v24 = vadd.f32 %v333_v5, %v301_v12  ;;  %v366_v25 = vadd.f32 %v334_v8, %v302_v13  ;;  %v305_v27 = vadd.f32 %v580_v2, %v266_v17  ;;  %v367_v30 = vadd.f32 %v335_v14, %v303_v19  ;;  %v339_v33 = vld [vmem:[%s574_s26 + $0x30] sm:$0xff]  ;;  %v232_v35 = vld [vmem:[%s569_s23 + $0x48] sm:$0xff]  ;;  %v340_v39 = vld [vmem:[%s574_s26 + $0x38] sm:$0xff] }
  0x16   : > { %v306_v31 = vadd.f32 %v580_v2, %v267_v21  ;;  %v269_v34 = vmul.f32 %v564_v0, %v230_v23  ;;  %v233_v36 = vld [vmem:[%s569_s23 + $0x50] sm:$0xff]  ;;  %v368_v37 = vadd.f32 %v336_v16, %v304_v26  ;;  %v270_v40 = vmul.f32 %v564_v0, %v231_v29  ;;  %v341_v41 = vld [vmem:[%s574_s26 + $0x40] sm:$0xff]  ;;  %v234_v43 = vld [vmem:[%s569_s23 + $0x58] sm:$0xff] }
  0x17   : > { %397 = vst [vmem:[%s601_s5] sm:$0xff] %v365_v24  ;;  %398 = vst [vmem:[%s601_s5 + $0x8] sm:$0xff] %v366_v25  ;;  %v369_v38 = vadd.f32 %v337_v20, %v305_v27  ;;  %v271_v42 = vmul.f32 %v564_v0, %v232_v35  ;;  %v307_v45 = vadd.f32 %v580_v2, %v268_v32  ;;  %v342_v47 = vld [vmem:[%s574_s26 + $0x48] sm:$0xff]  ;;  %v235_v49 = vld [vmem:[%s569_s23 + $0x60] sm:$0xff] }
  0x18   : > { %399 = vst [vmem:[%s601_s5 + $0x10] sm:$0xff] %v367_v30  ;;  %v370_v44 = vadd.f32 %v338_v28, %v306_v31  ;;  %v308_v46 = vadd.f32 %v580_v2, %v269_v34  ;;  %v272_v48 = vmul.f32 %v564_v0, %v233_v36  ;;  %v236_v50 = vld [vmem:[%s569_s23 + $0x68] sm:$0xff]  ;;  %400 = vst [vmem:[%s601_s5 + $0x18] sm:$0xff] %v368_v37  ;;  %v343_v53 = vld [vmem:[%s574_s26 + $0x50] sm:$0xff] }
  0x19   : > { %401 = vst [vmem:[%s601_s5 + $0x20] sm:$0xff] %v369_v38  ;;  %v309_v51 = vadd.f32 %v580_v2, %v270_v40  ;;  %v310_v52 = vadd.f32 %v580_v2, %v271_v42  ;;  %v273_v54 = vmul.f32 %v564_v0, %v234_v43  ;;  %v344_v55 = vld [vmem:[%s574_s26 + $0x58] sm:$0xff]  ;;  %v274_v56 = vmul.f32 %v564_v0, %v235_v49  ;;  %v237_v57 = vld [vmem:[%s569_s23 + $0x70] sm:$0xff]  ;;  %v345_v61 = vld [vmem:[%s574_s26 + $0x60] sm:$0xff] }
  0x1a   : > { %402 = vst [vmem:[%s601_s5 + $0x28] sm:$0xff] %v370_v44  ;;  %v371_v58 = vadd.f32 %v339_v33, %v307_v45  ;;  %v372_v59 = vadd.f32 %v340_v39, %v308_v46  ;;  %v311_v60 = vadd.f32 %v580_v2, %v272_v48  ;;  %v275_v62 = vmul.f32 %v564_v0, %v236_v50  ;;  %v238_v63 = vld [vmem:[%s569_s23 + $0x78] sm:$0xff]  ;;  %v239_v1 = vld [vmem:[%s569_s23 + $0x80] sm:$0xff]  ;;  %v346_v7 = vld [vmem:[%s574_s26 + $0x68] sm:$0xff] }
  0x1b   : > { %v373_v3 = vadd.f32 %v341_v41, %v309_v51  ;;  %v374_v4 = vadd.f32 %v342_v47, %v310_v52  ;;  %v312_v5 = vadd.f32 %v580_v2, %v273_v54  ;;  %v313_v6 = vadd.f32 %v580_v2, %v274_v56  ;;  %v240_v8 = vld [vmem:[%s569_s23 + $0x88] sm:$0xff]  ;;  %v347_v12 = vld [vmem:[%s574_s26 + $0x70] sm:$0xff]  ;;  %v242_v15 = vld [vmem:[%s569_s23 + $0x98] sm:$0xff] }
  0x1c   : > { %403 = vst [vmem:[%s601_s5 + $0x30] sm:$0xff] %v371_v58  ;;  %404 = vst [vmem:[%s601_s5 + $0x38] sm:$0xff] %v372_v59  ;;  %v375_v9 = vadd.f32 %v343_v53, %v311_v60  ;;  %v314_v10 = vadd.f32 %v580_v2, %v275_v62  ;;  %v276_v11 = vmul.f32 %v564_v0, %v237_v57  ;;  %v241_v14 = vld [vmem:[%s569_s23 + $0x90] sm:$0xff]  ;;  %v348_v18 = vld [vmem:[%s574_s26 + $0x78] sm:$0xff] }
  0x1d   : > { %v277_v13 = vmul.f32 %v564_v0, %v238_v63  ;;  %405 = vst [vmem:[%s601_s5 + $0x40] sm:$0xff] %v373_v3  ;;  %406 = vst [vmem:[%s601_s5 + $0x48] sm:$0xff] %v374_v4  ;;  %v376_v16 = vadd.f32 %v344_v55, %v312_v5  ;;  %v377_v17 = vadd.f32 %v345_v61, %v313_v6  ;;  %v349_v20 = vld [vmem:[%s574_s26 + $0x80] sm:$0xff]  ;;  %v350_v26 = vld [vmem:[%s574_s26 + $0x88] sm:$0xff] }
  0x1e   : > { %v278_v19 = vmul.f32 %v564_v0, %v239_v1  ;;  %v279_v21 = vmul.f32 %v564_v0, %v240_v8  ;;  %v243_v22 = vld [vmem:[%s569_s23 + $0xa0] sm:$0xff]  ;;  %407 = vst [vmem:[%s601_s5 + $0x50] sm:$0xff] %v375_v9  ;;  %v378_v23 = vadd.f32 %v346_v7, %v314_v10  ;;  %v315_v24 = vadd.f32 %v580_v2, %v276_v11  ;;  %v351_v28 = vld [vmem:[%s574_s26 + $0x90] sm:$0xff]  ;;  %v244_v29 = vld [vmem:[%s569_s23 + $0xa8] sm:$0xff] }
  0x1f   : > { %v316_v25 = vadd.f32 %v580_v2, %v277_v13  ;;  %v280_v27 = vmul.f32 %v564_v0, %v241_v14  ;;  %408 = vst [vmem:[%s601_s5 + $0x58] sm:$0xff] %v376_v16  ;;  %409 = vst [vmem:[%s601_s5 + $0x60] sm:$0xff] %v377_v17  ;;  %v281_v32 = vmul.f32 %v564_v0, %v242_v15  ;;  %v352_v33 = vld [vmem:[%s574_s26 + $0x98] sm:$0xff]  ;;  %v245_v35 = vld [vmem:[%s569_s23 + $0xb0] sm:$0xff] }
  0x20   : > { %v317_v30 = vadd.f32 %v580_v2, %v278_v19  ;;  %v318_v31 = vadd.f32 %v580_v2, %v279_v21  ;;  %v282_v34 = vmul.f32 %v564_v0, %v243_v22  ;;  %v246_v36 = vld [vmem:[%s569_s23 + $0xb8] sm:$0xff]  ;;  %410 = vst [vmem:[%s601_s5 + $0x68] sm:$0xff] %v378_v23  ;;  %v379_v37 = vadd.f32 %v347_v12, %v315_v24  ;;  %v353_v40 = vld [vmem:[%s574_s26 + $0xa0] sm:$0xff]  ;;  %v248_v43 = vld [vmem:[%s569_s23 + $0xc8] sm:$0xff] }
  0x21   : > { %v380_v38 = vadd.f32 %v348_v18, %v316_v25  ;;  %v319_v39 = vadd.f32 %v580_v2, %v280_v27  ;;  %v283_v41 = vmul.f32 %v564_v0, %v244_v29  ;;  %v247_v42 = vld [vmem:[%s569_s23 + $0xc0] sm:$0xff]  ;;  %v320_v46 = vadd.f32 %v580_v2, %v281_v32  ;;  %v354_v48 = vld [vmem:[%s574_s26 + $0xa8] sm:$0xff]  ;;  %v249_v49 = vld [vmem:[%s569_s23 + $0xd0] sm:$0xff] }
  0x22   : > { %v381_v44 = vadd.f32 %v349_v20, %v317_v30  ;;  %v382_v45 = vadd.f32 %v350_v26, %v318_v31  ;;  %v321_v47 = vadd.f32 %v580_v2, %v282_v34  ;;  %411 = vst [vmem:[%s601_s5 + $0x70] sm:$0xff] %v379_v37  ;;  %v284_v52 = vmul.f32 %v564_v0, %v245_v35  ;;  %v250_v54 = vld [vmem:[%s569_s23 + $0xd8] sm:$0xff]  ;;  %v251_v55 = vld [vmem:[%s569_s23 + $0xe0] sm:$0xff]  ;;  %v355_v58 = vld [vmem:[%s574_s26 + $0xb0] sm:$0xff] }
  0x23   : > { %412 = vst [vmem:[%s601_s5 + $0x78] sm:$0xff] %v380_v38  ;;  %v383_v50 = vadd.f32 %v351_v28, %v319_v39  ;;  %v322_v51 = vadd.f32 %v580_v2, %v283_v41  ;;  %v285_v53 = vmul.f32 %v564_v0, %v246_v36  ;;  %v384_v56 = vadd.f32 %v352_v33, %v320_v46  ;;  %v356_v59 = vld [vmem:[%s574_s26 + $0xb8] sm:$0xff]  ;;  %v252_v62 = vld [vmem:[%s569_s23 + $0xe8] sm:$0xff]  ;;  %v357_v4 = vld [vmem:[%s574_s26 + $0xc0] sm:$0xff] }
  0x24   : > { %413 = vst [vmem:[%s601_s5 + $0x80] sm:$0xff] %v381_v44  ;;  %414 = vst [vmem:[%s601_s5 + $0x88] sm:$0xff] %v382_v45  ;;  %v385_v57 = vadd.f32 %v353_v40, %v321_v47  ;;  %v286_v60 = vmul.f32 %v564_v0, %v247_v42  ;;  %v287_v61 = vmul.f32 %v564_v0, %v248_v43  ;;  %v358_v5 = vld [vmem:[%s574_s26 + $0xc8] sm:$0xff]  ;;  %v359_v9 = vld [vmem:[%s574_s26 + $0xd0] sm:$0xff] }
  0x25   : > { %415 = vst [vmem:[%s601_s5 + $0x90] sm:$0xff] %v383_v50  ;;  %v386_v63 = vadd.f32 %v354_v48, %v322_v51  ;;  %v323_v1 = vadd.f32 %v580_v2, %v284_v52  ;;  %v324_v3 = vadd.f32 %v580_v2, %v285_v53  ;;  %v288_v6 = vmul.f32 %v564_v0, %v249_v49  ;;  %v253_v12 = vld [vmem:[%s569_s23 + $0xf0] sm:$0xff]  ;;  %v254_v13 = vld [vmem:[%s569_s23 + $0xf8] sm:$0xff]  ;;  %v361_v18 = vld [vmem:[%s574_s26 + $0xe0] sm:$0xff] }
  0x26   : > { %416 = vst [vmem:[%s601_s5 + $0x98] sm:$0xff] %v384_v56  ;;  %417 = vst [vmem:[%s601_s5 + $0xa0] sm:$0xff] %v385_v57  ;;  %v325_v7 = vadd.f32 %v580_v2, %v286_v60  ;;  %v326_v8 = vadd.f32 %v580_v2, %v287_v61  ;;  %v289_v10 = vmul.f32 %v564_v0, %v250_v54  ;;  %v360_v17 = vld [vmem:[%s574_s26 + $0xd8] sm:$0xff]  ;;  %v362_v24 = vld [vmem:[%s574_s26 + $0xe8] sm:$0xff] }
  0x27   : > { %v290_v11 = vmul.f32 %v564_v0, %v251_v55  ;;  %418 = vst [vmem:[%s601_s5 + $0xa8] sm:$0xff] %v386_v63  ;;  %v387_v14 = vadd.f32 %v355_v58, %v323_v1  ;;  %v388_v15 = vadd.f32 %v356_v59, %v324_v3  ;;  %v327_v16 = vadd.f32 %v580_v2, %v288_v6  ;;  %v363_v31 = vld [vmem:[%s574_s26 + $0xf0] sm:$0xff]  ;;  %v364_v32 = vld [vmem:[%s574_s26 + $0xf8] sm:$0xff] }
  0x28   : > { %v291_v19 = vmul.f32 %v564_v0, %v252_v62  ;;  %v389_v20 = vadd.f32 %v357_v4, %v325_v7  ;;  %v390_v21 = vadd.f32 %v358_v5, %v326_v8  ;;  %v328_v22 = vadd.f32 %v580_v2, %v289_v10 }
  0x29   : > { %v329_v23 = vadd.f32 %v580_v2, %v290_v11  ;;  %419 = vst [vmem:[%s601_s5 + $0xb0] sm:$0xff] %v387_v14  ;;  %420 = vst [vmem:[%s601_s5 + $0xb8] sm:$0xff] %v388_v15  ;;  %v391_v25 = vadd.f32 %v359_v9, %v327_v16  ;;  %v292_v27 = vmul.f32 %v564_v0, %v253_v12 }
  0x2a   : > { %v330_v26 = vadd.f32 %v580_v2, %v291_v19  ;;  %v293_v28 = vmul.f32 %v564_v0, %v254_v13  ;;  %421 = vst [vmem:[%s601_s5 + $0xc0] sm:$0xff] %v389_v20  ;;  %422 = vst [vmem:[%s601_s5 + $0xc8] sm:$0xff] %v390_v21  ;;  %v392_v29 = vadd.f32 %v360_v17, %v328_v22 }
  0x2b   : > { %v393_v30 = vadd.f32 %v361_v18, %v329_v23  ;;  %423 = vst [vmem:[%s601_s5 + $0xd0] sm:$0xff] %v391_v25  ;;  %v331_v34 = vadd.f32 %v580_v2, %v292_v27 }
  0x2c   : > { %v394_v33 = vadd.f32 %v362_v24, %v330_v26  ;;  %v332_v35 = vadd.f32 %v580_v2, %v293_v28  ;;  %424 = vst [vmem:[%s601_s5 + $0xd8] sm:$0xff] %v392_v29 }
  0x2d   : > { %425 = vst [vmem:[%s601_s5 + $0xe0] sm:$0xff] %v393_v30  ;;  %v395_v36 = vadd.f32 %v363_v31, %v331_v34 }
  0x2e   : > { %426 = vst [vmem:[%s601_s5 + $0xe8] sm:$0xff] %v394_v33  ;;  %v396_v37 = vadd.f32 %v364_v32, %v332_v35 }
  0x2f   : > { %427 = vst [vmem:[%s601_s5 + $0xf0] sm:$0xff] %v395_v36 }
  0x30   : > { %428 = vst [vmem:[%s601_s5 + $0xf8] sm:$0xff] %v396_v37 }
  0x31 PF: > { %s14_s15 = sadd.s32 1, %s526_s15  }
  0x32   : > { %p11_p4 = scmp.ge.s32.totalorder %s14_s15, 4  }
  0x34   :  { %13 = sbr.rel (!%p11_p4) target bundleno = 1 (0x1), region = 69 }

// kernel: _lambda_.7
= control target key start
LH: loop header
LB: loop body
LE: loop exit
PB: predicated region body
PF: predicated region fallthrough
CT: control target
= control target key end

     0   :  { %s1103_s15 = smov 0   ;;  %s1431_s0 = inlined_call_operand.vmem [shape: f32[512,128], index: 0, kind: input, shape index: {}]   ;;  %s1432_s1 = inlined_call_operand.vmem [shape: bf16[128,128], index: 1, kind: input, shape index: {}]   ;;  %s1433_s2 = inlined_call_operand.vmem [shape: f32[1,128], index: 2, kind: input, shape index: {}]   ;;  %s1434_s3 = inlined_call_operand.vmem [shape: f32[512,128], index: 3, kind: output, shape index: {0}]   ;;  %s1435_s4 = inlined_call_operand.vmem [shape: f32[2,2,128], index: 4, kind: output, shape index: {1}]  }
   0x1 LB: > { %s1109_s16 = sadd.s32 4294967295, %s1076_s15   ;;  %p885_p0 = scmp.ge.s32.totalorder %s1076_s15, 1  ;;  %s1076_s15 = sphi %s1103_s15, %s15_s15  }
   0x2   : > { %p166_p1 = scmp.lt.s32.totalorder %s1076_s15, 3 }
   0x4   : > { %p167_p2 = pnand %p885_p0, %p166_p1 }
   0x5   : > { %v998_v0 = vld [vmem:[%s1432_s1] sm:$0xff] (!%p167_p2)   ;;  %s886_s19 = sshll.u32 (!%p167_p2), %s1109_s16, 5  ;;  %v999_v1 = vld [vmem:[%s1432_s1 + $0x8] sm:$0xff] (!%p167_p2)   ;;  %v1000_v2 = vld [vmem:[%s1432_s1 + $0x10] sm:$0xff] (!%p167_p2)   ;;  %p208_p4 = scmp.lt.s32.totalorder (!%p167_p2), %s1109_s16, 1  ;;  %vm791_vm0 = vcmask (!%p167_p2), 1040384  }
   0x6   : > { %170 = sbr.rel (%p167_p2) target bundleno = 362 (0x16a), region = 32  ;;  %p197_p3 = scmp.lt.s32.totalorder (!%p167_p2), %s886_s19, 63  ;;  %926 = vmatprep.subr.bf16.mxu0 (!%p167_p2), %v998_v0  ;;  %974 = vmatprep.subr.bf16.mxu1 (!%p167_p2), %v998_v0  ;;  %v1001_v3 = vld [vmem:[%s1432_s1 + $0x18] sm:$0xff] (!%p167_p2)   ;;  %v1002_v9 = vld [vmem:[%s1432_s1 + $0x20] sm:$0xff] (!%p167_p2)   ;;  %v1003_v11 = vld [vmem:[%s1432_s1 + $0x28] sm:$0xff] (!%p167_p2)  }
   0x7   : > { %927 = vmatpush3.bf16.msra.mxu0 (!%p167_p2), %v998_v0  ;;  %982 = vmatpush3.bf16.msra.mxu1 (!%p167_p2), %v998_v0  ;;  %v1004_v12 = vld [vmem:[%s1432_s1 + $0x30] sm:$0xff] (!%p167_p2)   ;;  %v1005_v13 = vld [vmem:[%s1432_s1 + $0x38] sm:$0xff] (!%p167_p2)   ;;  %v1183_v56 = vld [vmem:[%s1433_s2] ss:$0 sm:$0xff] (!%p167_p2) }
   0x8   : > { %928 = vmatprep.subr.bf16.mxu0 (!%p167_p2), %v999_v1  ;;  %975 = vmatprep.subr.bf16.mxu1 (!%p167_p2), %v999_v1 }
   0xb   : > { %929 = vmatpush3.bf16.msra.mxu0 (!%p167_p2), %v999_v1  ;;  %983 = vmatpush3.bf16.msra.mxu1 (!%p167_p2), %v999_v1 }
   0xc   : > { %930 = vmatprep.subr.bf16.mxu0 (!%p167_p2), %v1000_v2  ;;  %976 = vmatprep.subr.bf16.mxu1 (!%p167_p2), %v1000_v2 }
   0xd   : > { %s1437_s19 = smov (!%p197_p3, %s886_s19), 63  ;;  %s1439_s16 = smov (!%p208_p4, %s1109_s16), 1 }
   0xe   : > { %s887_s24 = sshll.u32 %s1437_s19, 3  ;;  %s890_s19 = sshll.u32 %s1439_s16, 1 }
   0xf   : > { %s1131_s27 = scalar_lea.vmem %s1431_s0, %s887_s24  ;;  %931 = vmatpush3.bf16.msra.mxu0 %v1000_v2  ;;  %984 = vmatpush3.bf16.msra.mxu1 %v1000_v2  ;;  %s1224_s18 = scalar_lea.vmem %s1434_s3, %s887_s24 }
  0x10   : > { %v213_v4 = vld [vmem:[%s1131_s27] sm:$0xff]  ;;  %v214_v5 = vld [vmem:[%s1131_s27 + $0x8] sm:$0xff]  ;;  %932 = vmatprep.subr.bf16.mxu0 %v1001_v3  ;;  %977 = vmatprep.subr.bf16.mxu1 %v1001_v3  ;;  %v215_v14 = vld [vmem:[%s1131_s27 + $0x10] sm:$0xff]  ;;  %s211_s22 = scalar_lea.vmem %s1435_s4, %s890_s19 }
  0x11   : > { %v245_v6 = vpack.c.bf16 %v214_v5, %v213_v4  ;;  %v229_v7 = vld [vmem:[%s1131_s27 + $0x80] sm:$0xff]  ;;  %v230_v8 = vld [vmem:[%s1131_s27 + $0x88] sm:$0xff]  ;;  %v216_v15 = vld [vmem:[%s1131_s27 + $0x18] sm:$0xff] }
  0x12   : > { %v253_v10 = vpack.c.bf16 %v230_v8, %v229_v7  ;;  %v217_v16 = vld [vmem:[%s1131_s27 + $0x20] sm:$0xff]  ;;  %v231_v17 = vld [vmem:[%s1131_s27 + $0x90] sm:$0xff]  ;;  %v232_v18 = vld [vmem:[%s1131_s27 + $0x98] sm:$0xff]  ;;  %v246_v22 = vpack.c.bf16 %v216_v15, %v215_v14 }
  0x13   : > { %942 = vmatprep.mubr.bf16.mxu0 %v245_v6  ;;  %933 = vmatpush3.bf16.msra.mxu0 %v1001_v3  ;;  %v218_v19 = vld [vmem:[%s1131_s27 + $0x28] sm:$0xff]  ;;  %v233_v20 = vld [vmem:[%s1131_s27 + $0xa0] sm:$0xff]  ;;  %v254_v23 = vpack.c.bf16 %v232_v18, %v231_v17  ;;  %v219_v26 = vld [vmem:[%s1131_s27 + $0x30] sm:$0xff] }
  0x14   : > { %958 = vmatprep.mubr.bf16.mxu1 %v253_v10  ;;  %985 = vmatpush3.bf16.msra.mxu1 %v1001_v3  ;;  %v234_v21 = vld [vmem:[%s1131_s27 + $0xa8] sm:$0xff]  ;;  %v247_v24 = vpack.c.bf16 %v218_v19, %v217_v16  ;;  %v220_v27 = vld [vmem:[%s1131_s27 + $0x38] sm:$0xff]  ;;  %v221_v28 = vld [vmem:[%s1131_s27 + $0x40] sm:$0xff] }
  0x15   : > { %934 = vmatprep.subr.bf16.mxu0 %v1002_v9  ;;  %978 = vmatprep.subr.bf16.mxu1 %v1002_v9  ;;  %v255_v25 = vpack.c.bf16 %v234_v21, %v233_v20  ;;  %v235_v29 = vld [vmem:[%s1131_s27 + $0xb0] sm:$0xff]  ;;  %v236_v30 = vld [vmem:[%s1131_s27 + $0xb8] sm:$0xff]  ;;  %v222_v31 = vld [vmem:[%s1131_s27 + $0x48] sm:$0xff]  ;;  %v248_v34 = vpack.c.bf16 %v220_v27, %v219_v26 }
  0x16   : > { %v237_v32 = vld [vmem:[%s1131_s27 + $0xc0] sm:$0xff]  ;;  %v238_v33 = vld [vmem:[%s1131_s27 + $0xc8] sm:$0xff]  ;;  %v256_v35 = vpack.c.bf16 %v236_v30, %v235_v29  ;;  %v249_v36 = vpack.c.bf16 %v222_v31, %v221_v28  ;;  %v223_v38 = vld [vmem:[%s1131_s27 + $0x50] sm:$0xff] }
  0x17   : > { %935 = vmatpush3.bf16.msra.mxu0 %v1002_v9  ;;  %v257_v37 = vpack.c.bf16 %v238_v33, %v237_v32  ;;  %v224_v39 = vld [vmem:[%s1131_s27 + $0x58] sm:$0xff]  ;;  %v225_v40 = vld [vmem:[%s1131_s27 + $0x60] sm:$0xff]  ;;  %v239_v41 = vld [vmem:[%s1131_s27 + $0xd0] sm:$0xff] }
  0x18   : > { %986 = vmatpush3.bf16.msra.mxu1 %v1002_v9  ;;  %936 = vmatprep.subr.bf16.mxu0 %v1003_v11  ;;  %v240_v42 = vld [vmem:[%s1131_s27 + $0xd8] sm:$0xff]  ;;  %v226_v43 = vld [vmem:[%s1131_s27 + $0x68] sm:$0xff]  ;;  %v241_v44 = vld [vmem:[%s1131_s27 + $0xe0] sm:$0xff]  ;;  %v250_v46 = vpack.c.bf16 %v224_v39, %v223_v38 }
  0x19   : > { %979 = vmatprep.subr.bf16.mxu1 %v1003_v11  ;;  %v242_v45 = vld [vmem:[%s1131_s27 + $0xe8] sm:$0xff]  ;;  %v258_v47 = vpack.c.bf16 %v240_v42, %v239_v41  ;;  %v251_v48 = vpack.c.bf16 %v226_v43, %v225_v40  ;;  %v227_v50 = vld [vmem:[%s1131_s27 + $0x70] sm:$0xff]  ;;  %v228_v51 = vld [vmem:[%s1131_s27 + $0x78] sm:$0xff] }
  0x1a   : > { %v259_v49 = vpack.c.bf16 %v242_v45, %v241_v44  ;;  %v243_v52 = vld [vmem:[%s1131_s27 + $0xf0] sm:$0xff]  ;;  %v244_v53 = vld [vmem:[%s1131_s27 + $0xf8] sm:$0xff]  ;;  %v252_v54 = vpack.c.bf16 %v228_v51, %v227_v50 }
  0x1b   : > { %937 = vmatpush3.bf16.msra.mxu0 %v1003_v11  ;;  %v260_v55 = vpack.c.bf16 %v244_v53, %v243_v52 }
  0x1c   : > { %987 = vmatpush3.bf16.msra.mxu1 %v1003_v11  ;;  %938 = vmatprep.subr.bf16.mxu0 %v1004_v12 }
  0x1d   : > { %980 = vmatprep.subr.bf16.mxu1 %v1004_v12 }
  0x1f   : > { %939 = vmatpush3.bf16.msra.mxu0 %v1004_v12 }
  0x20   : > { %988 = vmatpush3.bf16.msra.mxu1 %v1004_v12  ;;  %940 = vmatprep.subr.bf16.mxu0 %v1005_v13 }
  0x21   : > { %981 = vmatprep.subr.bf16.mxu1 %v1005_v13 }
  0x23   : > { %941 = vmatpush3.bf16.msra.mxu0 %v1005_v13 }
  0x24   : > { %989 = vmatpush3.bf16.msra.mxu1 %v1005_v13 }
  0x26   : > { %943 = vmatmul.mubr.bf16.vlgmr.msra.gmra.mrb[0].mxu0 %v246_v22 }
  0x27   : > { %959 = vmatmul.mubr.bf16.vlgmr.msra.gmra.mrb[0].mxu1 %v254_v23  ;;  %946 = vmatprep.mubr.bf16.mxu0 %v247_v24 }
  0x28   : > { %962 = vmatprep.mubr.bf16.mxu1 %v255_v25 }
  0x2e   : > { %947 = vmatmul.mubr.bf16.gmra.mrb[4].mxu0 %v248_v34 }
  0x2f   : > { %963 = vmatmul.mubr.bf16.gmra.mrb[4].mxu1 %v256_v35  ;;  %950 = vmatprep.mubr.bf16.mxu0 %v249_v36 }
  0x30   : > { %966 = vmatprep.mubr.bf16.mxu1 %v257_v37 }
  0x36   : > { %951 = vmatmul.mubr.bf16.gmra.mrb[8].mxu0 %v250_v46 }
  0x37   : > { %967 = vmatmul.mubr.bf16.gmra.mrb[8].mxu1 %v258_v47  ;;  %954 = vmatprep.mubr.bf16.mxu0 %v251_v48 }
  0x38   : > { %970 = vmatprep.mubr.bf16.mxu1 %v259_v49 }
  0x3e   : > { %955 = vmatmul.mubr.bf16.gmra.mrb[12].mxu0 %v252_v54 }
  0x3f   : > { %971 = vmatmul.mubr.bf16.gmra.mrb[12].mxu1 %v260_v55 }
  0xf9   : > { %v944_v57 = vpop.f32.mrb[0].mxu0 }
  0xfa   : > { %v960_v58 = vpop.f32.mrb[0].mxu1  ;;  %v375_v59 = vadd.f32 %v944_v57, %v1183_v56  ;;  %v366_v60 = vpop.f32.mrb[1].mxu0 }
  0xfb   : > { %v439_v61 = vadd.f32 %v960_v58, %v1183_v56  ;;  %v430_v62 = vpop.f32.mrb[1].mxu1  ;;  %v367_v63 = vadd.f32 %v1183_v56, %v366_v60  ;;  %v945_v0 = vpop.f32.mrb[2].mxu0 }
  0xfc   : > { %v431_v1 = vadd.f32 %v1183_v56, %v430_v62  ;;  %v961_v2 = vpop.f32.mrb[2].mxu1  ;;  %v527_v3 = vmul.f32 0.70710677, %v375_v59  ;;  %v378_v4 = vadd.f32 %v945_v0, %v1183_v56  ;;  %v369_v5 = vpop.f32.mrb[3].mxu0  ;;  %v495_v21 = vmul.f32 0.5, %v375_v59 }
  0xfd   : > { %v433_v6 = vpop.f32.mrb[3].mxu1  ;;  %v525_v7 = vmul.f32 0.70710677, %v367_v63  ;;  %v370_v8 = vadd.f32 %v1183_v56, %v369_v5  ;;  %v543_v10 = vmul.f32 0.70710677, %v439_v61  ;;  %v442_v13 = vadd.f32 %v961_v2, %v1183_v56 }
  0xfe   : > { %1006 = verf.f32 %v527_v3  ;;  %v528_v9 = vmul.f32 0.70710677, %v378_v4  ;;  %v541_v12 = vmul.f32 0.70710677, %v431_v1  ;;  %v434_v19 = vadd.f32 %v1183_v56, %v433_v6 }
  0xff   : > { %1008 = verf.f32 %v525_v7  ;;  %v526_v11 = vmul.f32 0.70710677, %v370_v8  ;;  %v544_v18 = vmul.f32 0.70710677, %v442_v13  ;;  %v1198_v28 = vmul.f32 0.5, %v439_v61 }
 0x100   : > { %1010 = verf.f32 %v528_v9  ;;  %v493_v30 = vmul.f32 0.5, %v367_v63  ;;  %v496_v31 = vmul.f32 0.5, %v378_v4  ;;  %v542_v35 = vmul.f32 0.70710677, %v434_v19 }
 0x101   : > { %1012 = verf.f32 %v526_v11  ;;  %v948_v14 = vpop.f32.mrb[4].mxu0  ;;  %v1206_v38 = vmul.f32 0.5, %v431_v1  ;;  %v494_v41 = vmul.f32 0.5, %v370_v8  ;;  %v1211_v42 = vmul.f32 0.5, %v442_v13 }
 0x102   : > { %v964_v15 = vpop.f32.mrb[4].mxu1  ;;  %v391_v16 = vadd.f32 %v948_v14, %v1183_v56  ;;  %v382_v17 = vpop.f32.mrb[5].mxu0  ;;  %1014 = verf.f32 %v543_v10  ;;  %v1214_v47 = vmul.f32 0.5, %v434_v19 }
 0x103   : > { %v446_v20 = vpop.f32.mrb[5].mxu1  ;;  %v383_v22 = vadd.f32 %v1183_v56, %v382_v17  ;;  %v949_v23 = vpop.f32.mrb[6].mxu0  ;;  %1016 = verf.f32 %v541_v12  ;;  %v1204_v36 = vadd.f32 %v964_v15, %v1183_v56 }
 0x104   : > { %v1195_v24 = vpop.f32.mrb[6].mxu1  ;;  %v531_v25 = vmul.f32 0.70710677, %v391_v16  ;;  %v394_v26 = vadd.f32 %v949_v23, %v1183_v56  ;;  %v385_v27 = vpop.f32.mrb[7].mxu0  ;;  %1018 = verf.f32 %v544_v18  ;;  %v1209_v39 = vadd.f32 %v1183_v56, %v446_v20 }
 0x105   : > { %v1200_v29 = vpop.f32.mrb[7].mxu1  ;;  %v529_v32 = vmul.f32 0.70710677, %v383_v22  ;;  %v386_v33 = vadd.f32 %v1183_v56, %v385_v27  ;;  %v547_v43 = vmul.f32 0.70710677, %v1204_v36  ;;  %v499_v52 = vmul.f32 0.5, %v391_v16 }
 0x106   : > { %1020 = verf.f32 %v531_v25  ;;  %v532_v34 = vmul.f32 0.70710677, %v394_v26  ;;  %v545_v48 = vmul.f32 0.70710677, %v1209_v39  ;;  %v497_v2 = vmul.f32 0.5, %v383_v22 }
 0x107   : > { %1022 = verf.f32 %v529_v32  ;;  %v530_v37 = vmul.f32 0.70710677, %v386_v33  ;;  %v500_v8 = vmul.f32 0.5, %v394_v26  ;;  %v498_v12 = vmul.f32 0.5, %v386_v33 }
 0x108   : > { %v1007_v40 = vpop.eup %1006  ;;  %1024 = verf.f32 %v532_v34 }
 0x109   : > { %v1009_v44 = vpop.eup %1008  ;;  %v591_v45 = vadd.f32 1.0, %v1007_v40  ;;  %1026 = verf.f32 %v530_v37  ;;  %v952_v46 = vpop.f32.mrb[8].mxu0 }
 0x10a   : > { %v1217_v49 = vpop.f32.mrb[8].mxu1  ;;  %v1011_v50 = vpop.eup %1010  ;;  %v589_v51 = vadd.f32 1.0, %v1009_v44  ;;  %v1227_v53 = vadd.f32 %v952_v46, %v1183_v56  ;;  %1028 = verf.f32 %v542_v35 }
 0x10b   : > { %v398_v54 = vpop.f32.mrb[9].mxu0  ;;  %v1229_v55 = vpop.f32.mrb[9].mxu1  ;;  %v623_v58 = vmul.f32 %v591_v45, %v495_v21  ;;  %v592_v59 = vadd.f32 1.0, %v1011_v50  ;;  %1030 = verf.f32 %v547_v43 }
 0x10c   : > { %v1013_v57 = vpop.eup %1012  ;;  %v1232_v60 = vadd.f32 %v1183_v56, %v398_v54  ;;  %v953_v61 = vpop.f32.mrb[10].mxu0  ;;  %v621_v0 = vmul.f32 %v589_v51, %v493_v30  ;;  %v535_v3 = vmul.f32 0.70710677, %v1227_v53  ;;  %1032 = verf.f32 %v545_v48 }
 0x10d   : > { %v1234_v62 = vpop.f32.mrb[10].mxu1  ;;  %v1015_v63 = vpop.eup %1014  ;;  %v590_v1 = vadd.f32 1.0, %v1013_v57  ;;  %655 = vst [vmem:[%s1224_s18 + $0x10] sm:$0xff] %v623_v58  ;;  %v624_v7 = vmul.f32 %v592_v59, %v496_v31  ;;  %v1249_v17 = vadd.f32 %v953_v61, %v1183_v56  ;;  %v724_v23 = vmul.f32 %v623_v58, %v623_v58 }
 0x10e   : > { %v1237_v4 = vpop.f32.mrb[11].mxu0  ;;  %v1239_v5 = vpop.f32.mrb[11].mxu1  ;;  %v607_v9 = vadd.f32 1.0, %v1015_v63  ;;  %653 = vst [vmem:[%s1224_s18] sm:$0xff] %v621_v0  ;;  %1034 = verf.f32 %v535_v3  ;;  %v533_v13 = vmul.f32 0.70710677, %v1232_v60  ;;  %v722_v14 = vmul.f32 %v621_v0, %v621_v0 }
 0x10f   : > { %v1017_v6 = vpop.eup %1016  ;;  %v622_v11 = vmul.f32 %v590_v1, %v494_v41  ;;  %656 = vst [vmem:[%s1224_s18 + $0x18] sm:$0xff] %v624_v7  ;;  %v536_v35 = vmul.f32 0.70710677, %v1249_v17  ;;  %v725_v43 = vmul.f32 %v624_v7, %v624_v7  ;;  %v1282_v63 = vadd.f32 %v1195_v24, %v1183_v56 }
 0x110   : > { %v1019_v10 = vpop.eup %1018  ;;  %v1246_v15 = vmul.f32 %v607_v9, %v1198_v28  ;;  %v605_v16 = vadd.f32 1.0, %v1017_v6  ;;  %1036 = verf.f32 %v533_v13  ;;  %v1258_v28 = vmul.f32 0.5, %v1204_v36 }
 0x111   : > { %v1021_v18 = vpop.eup %1020  ;;  %654 = vst [vmem:[%s1224_s18 + $0x8] sm:$0xff] %v622_v11  ;;  %v685_v19 = vadd.f32 %v622_v11, %v621_v0  ;;  %v723_v20 = vmul.f32 %v622_v11, %v622_v11  ;;  %v608_v21 = vadd.f32 1.0, %v1019_v10  ;;  %v956_v27 = vpop.f32.mrb[12].mxu0  ;;  %1038 = verf.f32 %v536_v35 }
 0x112   : > { %v1023_v22 = vpop.eup %1022  ;;  %v595_v25 = vadd.f32 1.0, %v1021_v18  ;;  %671 = vst [vmem:[%s1224_s18 + $0x90] sm:$0xff] %v1246_v15  ;;  %v1255_v26 = vmul.f32 %v605_v16, %v1206_v38  ;;  %v1260_v30 = vpop.f32.mrb[12].mxu1  ;;  %v423_v10 = vadd.f32 %v956_v27, %v1183_v56 }
 0x113   : > { %v1025_v31 = vpop.eup %1024  ;;  %v686_v32 = vadd.f32 %v685_v19, %v623_v58  ;;  %v754_v33 = vadd.f32 %v723_v20, %v722_v14  ;;  %v593_v34 = vadd.f32 1.0, %v1023_v22  ;;  %v414_v37 = vpop.f32.mrb[13].mxu0  ;;  %v1268_v36 = vmul.f32 %v608_v21, %v1211_v42 }
 0x114   : > { %v1263_v40 = vpop.f32.mrb[13].mxu1  ;;  %v1027_v41 = vpop.eup %1026  ;;  %v627_v38 = vmul.f32 %v595_v25, %v499_v52  ;;  %v596_v44 = vadd.f32 1.0, %v1025_v31  ;;  %669 = vst [vmem:[%s1224_s18 + $0x80] sm:$0xff] %v1255_v26  ;;  %v513_v42 = vmul.f32 0.5, %v1209_v39  ;;  %v539_v22 = vmul.f32 0.70710677, %v423_v10 }
 0x115   : > { %v957_v45 = vpop.f32.mrb[14].mxu0  ;;  %v1270_v46 = vpop.f32.mrb[14].mxu1  ;;  %v755_v50 = vadd.f32 %v754_v33, %v724_v23  ;;  %v625_v51 = vmul.f32 %v593_v34, %v497_v2  ;;  %v687_v54 = vadd.f32 %v686_v32, %v624_v7  ;;  %v594_v57 = vadd.f32 1.0, %v1027_v41  ;;  %672 = vst [vmem:[%s1224_s18 + $0x98] sm:$0xff] %v1268_v36 }
 0x116   : > { %v1029_v48 = vpop.eup %1028  ;;  %v1272_v58 = vpop.f32.mrb[15].mxu0  ;;  %659 = vst [vmem:[%s1224_s18 + $0x30] sm:$0xff] %v627_v38  ;;  %v628_v61 = vmul.f32 %v596_v44, %v500_v8  ;;  %v503_v7 = vmul.f32 0.5, %v1227_v53  ;;  %v402_v8 = vadd.f32 %v1183_v56, %v1237_v4  ;;  %v728_v4 = vmul.f32 %v627_v38, %v627_v38 }
 0x117   : > { %v1274_v52 = vpop.f32.mrb[15].mxu1  ;;  %v1031_v59 = vpop.eup %1030  ;;  %657 = vst [vmem:[%s1224_s18 + $0x20] sm:$0xff] %v625_v51  ;;  %v688_v0 = vadd.f32 %v687_v54, %v625_v51  ;;  %v726_v1 = vmul.f32 %v625_v51, %v625_v51  ;;  %v756_v2 = vadd.f32 %v755_v50, %v725_v43  ;;  %v626_v3 = vmul.f32 %v594_v57, %v498_v12 }
 0x118   : > { %v1033_v6 = vpop.eup %1032  ;;  %660 = vst [vmem:[%s1224_s18 + $0x38] sm:$0xff] %v628_v61  ;;  %v606_v9 = vadd.f32 1.0, %v1029_v48  ;;  %v611_v14 = vadd.f32 1.0, %v1031_v59  ;;  %v501_v12 = vmul.f32 0.5, %v1232_v60  ;;  %v534_v18 = vmul.f32 0.70710677, %v402_v8 }
 0x119   : > { %v1035_v39 = vpop.eup %1034  ;;  %v757_v11 = vadd.f32 %v756_v2, %v726_v1  ;;  %658 = vst [vmem:[%s1224_s18 + $0x28] sm:$0xff] %v626_v3  ;;  %v689_v24 = vadd.f32 %v688_v0, %v626_v3  ;;  %v727_v13 = vmul.f32 %v626_v3, %v626_v3  ;;  %v729_v23 = vmul.f32 %v628_v61, %v628_v61 }
 0x11a   : > { %v599_v16 = vadd.f32 1.0, %v1035_v39  ;;  %v1293_v53 = vmul.f32 %v606_v9, %v1214_v47  ;;  %v1037_v19 = vpop.eup %1036  ;;  %1040 = verf.f32 %v534_v18  ;;  %v1300_v47 = vmul.f32 %v611_v14, %v1258_v28 }
 0x11b   : > { %v690_v20 = vadd.f32 %v689_v24, %v627_v38  ;;  %v758_v21 = vadd.f32 %v757_v11, %v727_v13  ;;  %v597_v27 = vadd.f32 1.0, %v1037_v19  ;;  %1042 = verf.f32 %v539_v22  ;;  %v1039_v43 = vpop.eup %1038 }
 0x11c   : > { %v1295_v25 = vmul.f32 %v599_v16, %v503_v7  ;;  %670 = vst [vmem:[%s1224_s18 + $0x88] sm:$0xff] %v1293_v53  ;;  %v415_v33 = vadd.f32 %v1183_v56, %v414_v37  ;;  %v609_v34 = vadd.f32 1.0, %v1033_v6  ;;  %675 = vst [vmem:[%s1224_s18 + $0xb0] sm:$0xff] %v1300_v47  ;;  %v426_v41 = vadd.f32 %v957_v45, %v1183_v56 }
 0x11d   : > { %v759_v60 = vadd.f32 %v758_v21, %v728_v4  ;;  %v691_v31 = vadd.f32 %v690_v20, %v628_v61  ;;  %v629_v32 = vmul.f32 %v597_v27, %v501_v12  ;;  %v548_v28 = vmul.f32 0.70710677, %v1282_v63 }
 0x11e   : > { %663 = vst [vmem:[%s1224_s18 + $0x50] sm:$0xff] %v1295_v25  ;;  %v537_v48 = vmul.f32 0.70710677, %v415_v33  ;;  %v504_v50 = vmul.f32 0.5, %v1249_v17  ;;  %v600_v51 = vadd.f32 1.0, %v1039_v43  ;;  %v1311_v54 = vmul.f32 %v609_v34, %v513_v42 }
 0x11f   : > { %v760_v35 = vadd.f32 %v759_v60, %v729_v23  ;;  %661 = vst [vmem:[%s1224_s18 + $0x40] sm:$0xff] %v629_v32  ;;  %v692_v38 = vadd.f32 %v691_v31, %v629_v32  ;;  %v730_v44 = vmul.f32 %v629_v32, %v629_v32  ;;  %v540_v37 = vmul.f32 0.70710677, %v426_v41 }
 0x120   : > { %1044 = verf.f32 %v537_v48  ;;  %v1315_v45 = vadd.f32 %v1183_v56, %v1272_v58  ;;  %v450_v59 = vadd.f32 %v1183_v56, %v1200_v29  ;;  %v632_v61 = vmul.f32 %v600_v51, %v504_v50  ;;  %673 = vst [vmem:[%s1224_s18 + $0xa0] sm:$0xff] %v1311_v54 }
 0x121   : > { %v761_v57 = vadd.f32 %v760_v35, %v730_v44  ;;  %1046 = verf.f32 %v540_v37  ;;  %v471_v17 = vadd.f32 %v1217_v49, %v1183_v56  ;;  %v502_v0 = vmul.f32 0.5, %v402_v8 }
 0x122   : > { %1048 = verf.f32 %v548_v28  ;;  %v538_v42 = vmul.f32 0.70710677, %v1315_v45  ;;  %664 = vst [vmem:[%s1224_s18 + $0x58] sm:$0xff] %v632_v61  ;;  %v546_v1 = vmul.f32 0.70710677, %v450_v59  ;;  %v1327_v58 = vadd.f32 %v1183_v56, %v1229_v55 }
 0x123   : > { %v551_v2 = vmul.f32 0.70710677, %v471_v17  ;;  %v1331_v29 = vadd.f32 %v1234_v62, %v1183_v56  ;;  %v1335_v49 = vadd.f32 %v1183_v56, %v1239_v5  ;;  %v507_v8 = vmul.f32 0.5, %v423_v10 }
 0x124   : > { %v1041_v3 = vpop.eup %1040  ;;  %1050 = verf.f32 %v538_v42  ;;  %v1339_v9 = vadd.f32 %v1260_v30, %v1183_v56  ;;  %v549_v55 = vmul.f32 0.70710677, %v1327_v58  ;;  %v1344_v62 = vadd.f32 %v1183_v56, %v1263_v40 }
 0x125   : > { %v1043_v6 = vpop.eup %1042  ;;  %v598_v7 = vadd.f32 1.0, %v1041_v3  ;;  %1052 = verf.f32 %v546_v1  ;;  %v732_v5 = vmul.f32 %v1295_v25, %v1295_v25  ;;  %v516_v10 = vmul.f32 0.5, %v1282_v63 }
 0x126   : > { %v603_v39 = vadd.f32 1.0, %v1043_v6  ;;  %1054 = verf.f32 %v551_v2  ;;  %v552_v24 = vmul.f32 0.70710677, %v1331_v29  ;;  %v505_v30 = vmul.f32 0.5, %v415_v33 }
 0x127   : > { %v630_v11 = vmul.f32 %v598_v7, %v502_v0  ;;  %1056 = verf.f32 %v549_v55  ;;  %v550_v14 = vmul.f32 0.70710677, %v1335_v49  ;;  %v555_v40 = vmul.f32 0.70710677, %v1339_v9 }
 0x128   : > { %v1350_v13 = vmul.f32 %v603_v39, %v507_v8  ;;  %1058 = verf.f32 %v552_v24  ;;  %v733_v19 = vmul.f32 %v632_v61, %v632_v61  ;;  %v508_v4 = vmul.f32 0.5, %v426_v41 }
 0x129   : > { %662 = vst [vmem:[%s1224_s18 + $0x48] sm:$0xff] %v630_v11  ;;  %v693_v16 = vadd.f32 %v692_v38, %v630_v11  ;;  %v731_v12 = vmul.f32 %v630_v11, %v630_v11  ;;  %1060 = verf.f32 %v550_v14  ;;  %v553_v63 = vmul.f32 0.70710677, %v1344_v62 }
 0x12a   : > { %v1045_v18 = vpop.eup %1044  ;;  %667 = vst [vmem:[%s1224_s18 + $0x70] sm:$0xff] %v1350_v13  ;;  %1062 = verf.f32 %v555_v40  ;;  %v1361_v31 = vadd.f32 %v1270_v46, %v1183_v56  ;;  %v1365_v32 = vadd.f32 %v1183_v56, %v1274_v52  ;;  %v514_v38 = vmul.f32 0.5, %v450_v59 }
 0x12b   : > { %v1047_v20 = vpop.eup %1046  ;;  %v694_v21 = vadd.f32 %v693_v16, %v1295_v25  ;;  %v762_v22 = vadd.f32 %v761_v57, %v731_v12  ;;  %v601_v23 = vadd.f32 1.0, %v1045_v18  ;;  %1064 = verf.f32 %v553_v63 }
 0x12c   : > { %v1049_v27 = vpop.eup %1048  ;;  %v604_v60 = vadd.f32 1.0, %v1047_v20  ;;  %v519_v44 = vmul.f32 0.5, %v471_v17  ;;  %v556_v48 = vmul.f32 0.70710677, %v1361_v31  ;;  %v506_v52 = vmul.f32 0.5, %v1315_v45 }
 0x12d   : > { %v763_v33 = vadd.f32 %v762_v22, %v732_v5  ;;  %v633_v34 = vmul.f32 %v601_v23, %v505_v30  ;;  %v695_v35 = vadd.f32 %v694_v21, %v632_v61  ;;  %v612_v25 = vadd.f32 1.0, %v1049_v27 }
 0x12e   : > { %v1051_v41 = vpop.eup %1050  ;;  %v636_v43 = vmul.f32 %v604_v60, %v508_v4  ;;  %1066 = verf.f32 %v556_v48  ;;  %v517_v42 = vmul.f32 0.5, %v1327_v58  ;;  %v554_v0 = vmul.f32 0.70710677, %v1365_v32 }
 0x12f   : > { %v1053_v28 = vpop.eup %1052  ;;  %665 = vst [vmem:[%s1224_s18 + $0x60] sm:$0xff] %v633_v34  ;;  %v696_v46 = vadd.f32 %v695_v35, %v633_v34  ;;  %v734_v50 = vmul.f32 %v633_v34, %v633_v34  ;;  %v764_v51 = vadd.f32 %v763_v33, %v733_v19  ;;  %v1369_v37 = vmul.f32 %v612_v25, %v516_v10 }
 0x130   : > { %v1055_v56 = vpop.eup %1054  ;;  %668 = vst [vmem:[%s1224_s18 + $0x78] sm:$0xff] %v636_v43  ;;  %v602_v57 = vadd.f32 1.0, %v1051_v41  ;;  %v610_v61 = vadd.f32 1.0, %v1053_v28  ;;  %v520_v6 = vmul.f32 0.5, %v1331_v29  ;;  %v518_v39 = vmul.f32 0.5, %v1335_v49 }
 0x131   : > { %v765_v59 = vadd.f32 %v764_v51, %v734_v50  ;;  %676 = vst [vmem:[%s1224_s18 + $0xb8] sm:$0xff] %v1369_v37  ;;  %v615_v17 = vadd.f32 1.0, %v1055_v56  ;;  %v1057_v1 = vpop.eup %1056  ;;  %1068 = verf.f32 %v554_v0  ;;  %v523_v10 = vmul.f32 0.5, %v1339_v9 }
 0x132   : > { %v634_v2 = vmul.f32 %v602_v57, %v506_v52  ;;  %v642_v3 = vmul.f32 %v610_v61, %v514_v38  ;;  %v1059_v45 = vpop.eup %1058  ;;  %v613_v8 = vadd.f32 1.0, %v1057_v1  ;;  %v736_v29 = vmul.f32 %v1350_v13, %v1350_v13 }
 0x133   : > { %v1378_v7 = vmul.f32 %v615_v17, %v519_v44  ;;  %v1061_v55 = vpop.eup %1060  ;;  %v616_v11 = vadd.f32 1.0, %v1059_v45  ;;  %v521_v14 = vmul.f32 0.5, %v1344_v62  ;;  %v737_v63 = vmul.f32 %v636_v43, %v636_v43 }
 0x134   : > { %666 = vst [vmem:[%s1224_s18 + $0x68] sm:$0xff] %v634_v2  ;;  %v697_v5 = vadd.f32 %v696_v46, %v634_v2  ;;  %v735_v58 = vmul.f32 %v634_v2, %v634_v2  ;;  %674 = vst [vmem:[%s1224_s18 + $0xa8] sm:$0xff] %v642_v3  ;;  %v1063_v24 = vpop.eup %1062  ;;  %v645_v30 = vmul.f32 %v613_v8, %v517_v42  ;;  %v614_v49 = vadd.f32 1.0, %v1061_v55 }
 0x135   : > { %679 = vst [vmem:[%s1224_s18 + $0xd0] sm:$0xff] %v1378_v7  ;;  %v1065_v16 = vpop.eup %1064  ;;  %v648_v18 = vmul.f32 %v616_v11, %v520_v6  ;;  %v619_v19 = vadd.f32 1.0, %v1063_v24  ;;  %v524_v62 = vmul.f32 0.5, %v1361_v31  ;;  %v739_v35 = vmul.f32 %v1293_v53, %v1293_v53 }
 0x136   : > { %v698_v12 = vadd.f32 %v697_v5, %v1350_v13  ;;  %v766_v40 = vadd.f32 %v765_v59, %v735_v58  ;;  %677 = vst [vmem:[%s1224_s18 + $0xc0] sm:$0xff] %v645_v30  ;;  %v646_v9 = vmul.f32 %v614_v49, %v518_v39  ;;  %v617_v4 = vadd.f32 1.0, %v1065_v16 }
 0x137   : > { %680 = vst [vmem:[%s1224_s18 + $0xd8] sm:$0xff] %v648_v18  ;;  %v651_v22 = vmul.f32 %v619_v19, %v523_v10  ;;  %v738_v13 = vmul.f32 %v1255_v26, %v1255_v26  ;;  %v522_v31 = vmul.f32 0.5, %v1365_v32  ;;  %v740_v44 = vmul.f32 %v1246_v15, %v1246_v15 }
 0x138   : > { %v699_v20 = vadd.f32 %v698_v12, %v636_v43  ;;  %v767_v21 = vadd.f32 %v766_v40, %v736_v29  ;;  %678 = vst [vmem:[%s1224_s18 + $0xc8] sm:$0xff] %v646_v9  ;;  %v649_v23 = vmul.f32 %v617_v4, %v521_v14  ;;  %v1067_v27 = vpop.eup %1066  ;;  %v741_v46 = vmul.f32 %v1268_v36, %v1268_v36 }
 0x139   : > { %683 = vst [vmem:[%s1224_s18 + $0xf0] sm:$0xff] %v651_v22  ;;  %v620_v34 = vadd.f32 1.0, %v1067_v27  ;;  %v742_v32 = vmul.f32 %v1311_v54, %v1311_v54  ;;  %v743_v61 = vmul.f32 %v642_v3, %v642_v3  ;;  %v744_v59 = vmul.f32 %v1300_v47, %v1300_v47 }
 0x13a   : > { %v700_v60 = vadd.f32 %v699_v20, %v1255_v26  ;;  %v768_v33 = vadd.f32 %v767_v21, %v737_v63  ;;  %681 = vst [vmem:[%s1224_s18 + $0xe0] sm:$0xff] %v649_v23  ;;  %v746_v6 = vmul.f32 %v645_v30, %v645_v30  ;;  %v747_v39 = vmul.f32 %v646_v9, %v646_v9 }
 0x13b   : > { %v1069_v43 = vpop.eup %1068  ;;  %v652_v38 = vmul.f32 %v620_v34, %v524_v62  ;;  %v750_v24 = vmul.f32 %v649_v23, %v649_v23  ;;  %v752_v14 = vmul.f32 %v651_v22, %v651_v22 }
 0x13c   : > { %v769_v25 = vadd.f32 %v768_v33, %v738_v13  ;;  %v701_v41 = vadd.f32 %v700_v60, %v1293_v53  ;;  %v618_v28 = vadd.f32 1.0, %v1069_v43 }
 0x13d   : > { %684 = vst [vmem:[%s1224_s18 + $0xf8] sm:$0xff] %v652_v38  ;;  %v753_v40 = vmul.f32 %v652_v38, %v652_v38 }
 0x13e   : > { %v702_v26 = vadd.f32 %v701_v41, %v1246_v15  ;;  %v770_v48 = vadd.f32 %v769_v25, %v739_v35  ;;  %v650_v53 = vmul.f32 %v618_v28, %v522_v31 }
 0x140   : > { %v703_v50 = vadd.f32 %v702_v26, %v1268_v36  ;;  %v771_v51 = vadd.f32 %v770_v48, %v740_v44  ;;  %682 = vst [vmem:[%s1224_s18 + $0xe8] sm:$0xff] %v650_v53  ;;  %v745_v36 = vmul.f32 %v1369_v37, %v1369_v37  ;;  %v751_v49 = vmul.f32 %v650_v53, %v650_v53 }
 0x142   : > { %v704_v56 = vadd.f32 %v703_v50, %v1311_v54  ;;  %v772_v52 = vadd.f32 %v771_v51, %v741_v46 }
 0x144   : > { %v705_v57 = vadd.f32 %v704_v56, %v642_v3  ;;  %v773_v15 = vadd.f32 %v772_v52, %v742_v32  ;;  %v748_v3 = vmul.f32 %v1378_v7, %v1378_v7 }
 0x146   : > { %v706_v17 = vadd.f32 %v705_v57, %v1300_v47  ;;  %v774_v42 = vadd.f32 %v773_v15, %v743_v61  ;;  %v749_v47 = vmul.f32 %v648_v18, %v648_v18 }
 0x148   : > { %v775_v0 = vadd.f32 %v774_v42, %v744_v59  ;;  %v707_v1 = vadd.f32 %v706_v17, %v1369_v37 }
 0x14a   : > { %v708_v2 = vadd.f32 %v707_v1, %v645_v30  ;;  %v776_v54 = vadd.f32 %v775_v0, %v745_v36 }
 0x14c   : > { %v777_v45 = vadd.f32 %v776_v54, %v746_v6  ;;  %v709_v8 = vadd.f32 %v708_v2, %v646_v9 }
 0x14e   : > { %v710_v55 = vadd.f32 %v709_v8, %v1378_v7  ;;  %v778_v5 = vadd.f32 %v777_v45, %v747_v39 }
 0x150   : > { %v779_v58 = vadd.f32 %v778_v5, %v748_v3  ;;  %v711_v11 = vadd.f32 %v710_v55, %v648_v18 }
 0x152   : > { %v712_v10 = vadd.f32 %v711_v11, %v649_v23  ;;  %v780_v29 = vadd.f32 %v779_v58, %v749_v47 }
 0x154   : > { %v781_v37 = vadd.f32 %v780_v29, %v750_v24  ;;  %v713_v30 = vadd.f32 %v712_v10, %v650_v53 }
 0x156   : > { %v714_v16 = vadd.f32 %v713_v30, %v651_v22  ;;  %v782_v12 = vadd.f32 %v781_v37, %v751_v49 }
 0x158   : > { %v715_v19 = vadd.f32 %v714_v16, %v652_v38  ;;  %v783_v9 = vadd.f32 %v782_v12, %v752_v14 }
 0x15a   : > { %v716_v4 = vrot.slane %v715_v19, 4  ;;  %v784_v7 = vadd.f32 %v783_v9, %v753_v40 }
 0x15c   : > { %v717_v63 = vadd.f32 %v716_v4, %v715_v19  ;;  %v785_v20 = vrot.slane %v784_v7, 4 }
 0x15e   : > { %v718_v21 = vrot.slane %v717_v63, 2  ;;  %v786_v18 = vadd.f32 %v785_v20, %v784_v7 }
 0x160   : > { %v719_v23 = vadd.f32 %v718_v21, %v717_v63  ;;  %v787_v62 = vrot.slane %v786_v18, 2 }
 0x162   : > { %v720_v27 = vrot.slane %v719_v23, 1  ;;  %v788_v13 = vadd.f32 %v787_v62, %v786_v18 }
 0x164   : > { %v789_v60 = vrot.slane %v788_v13, 1  ;;  %v721_v22 = vadd.f32 %v720_v27, %v719_v23 }
 0x166   : > { %v790_v33 = vadd.f32 %v789_v60, %v788_v13 }
 0x168   : > { %v792_v34 = vsel %vm791_vm0, %v721_v22, %v790_v33 }
 0x169   : > { %793 = vst [vmem:[%s211_s22] sm:$0x3] %v792_v34 }
 0x16a PF: > { %s15_s15 = sadd.s32 1, %s1076_s15  }
 0x16b   : > { %p12_p5 = scmp.ge.s32.totalorder %s15_s15, 4  }
 0x16d   :  { %14 = sbr.rel (!%p12_p5) target bundleno = 1 (0x1), region = 74 }

// kernel: _lambda_.6
= control target key start
LH: loop header
LB: loop body
LE: loop exit
PB: predicated region body
PF: predicated region fallthrough
CT: control target
= control target key end

     0   :  { %s3342_s15 = smov 0   ;;  %s4438_s0 = inlined_call_operand.vmem [shape: f32[2,16,16,128], index: 0, kind: input, shape index: {}]   ;;  %s4439_s1 = inlined_call_operand.vmem [shape: bf16[1152,128], index: 1, kind: input, shape index: {}]   ;;  %s4440_s2 = inlined_call_operand.vmem [shape: f32[1,128], index: 2, kind: input, shape index: {}]   ;;  %s4441_s3 = inlined_call_operand.vmem [shape: f32[512,128], index: 3, kind: output, shape index: {0}]   ;;  %s4442_s4 = inlined_call_operand.vmem [shape: f32[2,2,128], index: 4, kind: output, shape index: {1}]  }
   0x1 LB: > { %s3348_s16 = sadd.s32 4294967295, %s3313_s15   ;;  %p2543_p0 = scmp.ge.s32.totalorder %s3313_s15, 1  ;;  %s3313_s15 = sphi %s3342_s15, %s15_s15  }
   0x2   : > { %p165_p1 = scmp.lt.s32.totalorder %s3313_s15, 3 }
   0x4   : > { %p166_p2 = pnand %p2543_p0, %p165_p1 }
   0x5   : > { %v3170_v0 = vld [vmem:[%s4439_s1 + $0x40] sm:$0xff] (!%p166_p2)   ;;  %v3315_v2 = vmov (!%p166_p2), 0.0   ;;  %v3172_v3 = vld [vmem:[%s4439_s1 + $0x48] sm:$0xff] (!%p166_p2)   ;;  %p195_p3 = scmp.lt.s32.totalorder (!%p166_p2), %s3348_s16, 1  ;;  %v3174_v5 = vld [vmem:[%s4439_s1 + $0x50] sm:$0xff] (!%p166_p2)   ;;  %v3316_v46 = vmov (!%p166_p2), 0.0|0.0  }
   0x6   : > { %169 = sbr.rel (%p166_p2) target bundleno = 589 (0x24d), region = 32  ;;  %v3171_v1 = vld [vmem:[%s4439_s1] sm:$0xff] (!%p166_p2)   ;;  %211 = vst [vmem:[#allocation2] sm:$0xff] (!%p166_p2), %v3315_v2  ;;  %212 = vst [vmem:[#allocation2 + $0x8] sm:$0xff] (!%p166_p2), %v3315_v2  ;;  %2625 = vmatprep.subr.bf16.mxu0 (!%p166_p2), %v3170_v0  ;;  %3145 = vmatprep.subr.bf16.mxu1 (!%p166_p2), %v3170_v0  ;;  %v3173_v4 = vld [vmem:[%s4439_s1 + $0x8] sm:$0xff] (!%p166_p2)   ;;  %s2546_s8 = sshll.u32 (!%p166_p2), %s3348_s16, 5 }
   0x7   : > { %213 = vst [vmem:[#allocation2 + $0x10] sm:$0x3] (!%p166_p2), %v3315_v2  ;;  %214 = vst [vmem:[#allocation2 + $0x18] sm:$0xff] (!%p166_p2), %v3315_v2  ;;  %2626 = vmatpush3.bf16.msra.mxu0 (!%p166_p2), %v3171_v1  ;;  %3153 = vmatpush3.bf16.msra.mxu1 (!%p166_p2), %v3171_v1  ;;  %v3175_v6 = vld [vmem:[%s4439_s1 + $0x10] sm:$0xff] (!%p166_p2)   ;;  %v3176_v7 = vld [vmem:[%s4439_s1 + $0x58] sm:$0xff] (!%p166_p2)   ;;  %p201_p4 = scmp.lt.s32.totalorder (!%p166_p2), %s2546_s8, 63 }
   0x8   : > { %215 = vst [vmem:[#allocation2 + $0x20] sm:$0xff] (!%p166_p2), %v3315_v2  ;;  %216 = vst [vmem:[#allocation2 + $0x28] sm:$0x3] (!%p166_p2), %v3315_v2  ;;  %2627 = vmatprep.subr.bf16.mxu0 (!%p166_p2), %v3172_v3  ;;  %3146 = vmatprep.subr.bf16.mxu1 (!%p166_p2), %v3172_v3  ;;  %v3177_v8 = vld [vmem:[%s4439_s1 + $0x18] sm:$0xff] (!%p166_p2)   ;;  %v3178_v9 = vld [vmem:[%s4439_s1 + $0x60] sm:$0xff] (!%p166_p2)   ;;  %vm2449_vm0 = vcmask (!%p166_p2), 1040384  }
   0x9   : > { %217 = vst [vmem:[#allocation2 + $0x30] sm:$0xff] (!%p166_p2), %v3315_v2  ;;  %218 = vst [vmem:[#allocation2 + $0x38] sm:$0xff] (!%p166_p2), %v3315_v2  ;;  %v3179_v10 = vld [vmem:[%s4439_s1 + $0x20] sm:$0xff] (!%p166_p2)   ;;  %v3180_v11 = vld [vmem:[%s4439_s1 + $0x68] sm:$0xff] (!%p166_p2)  }
   0xa   : > { %219 = vst [vmem:[#allocation2 + $0x40] sm:$0x3] (!%p166_p2), %v3315_v2  ;;  %220 = vst [vmem:[#allocation2 + $0x48] sm:$0xff] (!%p166_p2), %v3315_v2  ;;  %v3181_v18 = vld [vmem:[%s4439_s1 + $0x28] sm:$0xff] (!%p166_p2)   ;;  %v3182_v19 = vld [vmem:[%s4439_s1 + $0x70] sm:$0xff] (!%p166_p2)  }
   0xb   : > { %221 = vst [vmem:[#allocation2 + $0x50] sm:$0xff] (!%p166_p2), %v3315_v2  ;;  %222 = vst [vmem:[#allocation2 + $0x58] sm:$0x3] (!%p166_p2), %v3315_v2  ;;  %2628 = vmatpush3.bf16.msra.mxu0 (!%p166_p2), %v3173_v4  ;;  %3154 = vmatpush3.bf16.msra.mxu1 (!%p166_p2), %v3173_v4  ;;  %v3183_v20 = vld [vmem:[%s4439_s1 + $0x30] sm:$0xff] (!%p166_p2)   ;;  %v3184_v23 = vld [vmem:[%s4439_s1 + $0x78] sm:$0xff] (!%p166_p2)  }
   0xc   : > { %223 = vst [vmem:[#allocation2 + $0x60] sm:$0xff] (!%p166_p2), %v3315_v2  ;;  %224 = vst [vmem:[#allocation2 + $0x68] sm:$0xff] (!%p166_p2), %v3315_v2  ;;  %2629 = vmatprep.subr.bf16.mxu0 (!%p166_p2), %v3174_v5  ;;  %3147 = vmatprep.subr.bf16.mxu1 (!%p166_p2), %v3174_v5  ;;  %v3185_v26 = vld [vmem:[%s4439_s1 + $0x38] sm:$0xff] (!%p166_p2)   ;;  %v3186_v28 = vld [vmem:[%s4439_s1 + $0xc0] sm:$0xff] (!%p166_p2)  }
   0xd   : > { %225 = vst [vmem:[#allocation2 + $0x70] sm:$0x3] %v3315_v2  ;;  %226 = vst [vmem:[#allocation2 + $0x78] sm:$0xff] %v3315_v2  ;;  %s3369_s27 = scalar_select %p195_p3, %s3348_s16, 1  ;;  %v378_v12 = vld [vmem:[#allocation2 + $0x1] sm:$0xff]  ;;  %v3192_v49 = vld [vmem:[%s4439_s1 + $0xd0] sm:$0xff]  }
   0xe   : > { %227 = vst [vmem:[#allocation2 + $0x80] sm:$0xff] %v3315_v2  ;;  %228 = vst [vmem:[#allocation2 + $0x88] sm:$0x3] %v3315_v2  ;;  %v379_v13 = vld [vmem:[#allocation2 + $0x9] sm:$0xff]  ;;  %v3187_v30 = vld [vmem:[%s4439_s1 + $0x140] sm:$0xff]   ;;  %s4444_s8 = smov (!%p201_p4, %s2546_s8), 63 }
   0xf   : > { %229 = vst [vmem:[#allocation2 + $0x90] sm:$0xff] %v3315_v2  ;;  %230 = vst [vmem:[#allocation2 + $0x98] sm:$0xff] %v3315_v2  ;;  %s2624_s6 = sshll.u32 %s3369_s27, 8  ;;  %2630 = vmatpush3.bf16.msra.mxu0 %v3175_v6  ;;  %3155 = vmatpush3.bf16.msra.mxu1 %v3175_v6  ;;  %v410_v15 = vpack.c.bf16 %v379_v13, %v378_v12  ;;  %v3188_v32 = vld [vmem:[%s4439_s1 + $0x80] sm:$0xff]   ;;  %v3190_v34 = vld [vmem:[%s4439_s1 + $0xc8] sm:$0xff]   ;;  %s2547_s16 = sshll.u32 %s4444_s8, 3 }
  0x10   : > { %231 = vst [vmem:[#allocation2 + $0xa0] sm:$0x3] %v3315_v2  ;;  %232 = vst [vmem:[#allocation2 + $0xa8] sm:$0xff] %v3315_v2  ;;  %2631 = vmatprep.subr.bf16.mxu0 %v3176_v7  ;;  %3148 = vmatprep.subr.bf16.mxu1 %v3176_v7  ;;  %s3387_s13 = scalar_lea.vmem %s4438_s0, %s2624_s6  ;;  %v3189_v33 = vld [vmem:[%s4439_s1 + $0x100] sm:$0xff]   ;;  %v3195_v36 = vld [vmem:[%s4439_s1 + $0x148] sm:$0xff]   ;;  %s4245_s11 = scalar_lea.vmem %s4441_s3, %s2547_s16 }
  0x11   : > { %233 = vst [vmem:[#allocation2 + $0xb0] sm:$0xff] %v3315_v2  ;;  %234 = vst [vmem:[#allocation2 + $0xb8] sm:$0x3] %v3315_v2  ;;  %v287_v14 = vld [vmem:[%s3387_s13 + $0xb0] sm:$0xff]  ;;  %v288_v16 = vld [vmem:[%s3387_s13 + $0xb8] sm:$0xff]  ;;  %1378 = vmatprep.mubr.bf16.mxu0 %v410_v15  ;;  %s2548_s12 = sshll.u32 %s3369_s27, 1 }
  0x12   : > { %235 = vst [vmem:[#allocation2 + $0xc0] sm:$0xff] %v3315_v2  ;;  %236 = vst [vmem:[#allocation2 + $0xc8] sm:$0xff] %v3315_v2  ;;  %v422_v17 = vpack.c.bf16 %v288_v16, %v287_v14  ;;  %v265_v21 = vld [vmem:[%s3387_s13] sm:$0xff]  ;;  %v266_v22 = vld [vmem:[%s3387_s13 + $0x8] sm:$0xff] }
  0x13   : > { %237 = vst [vmem:[#allocation2 + $0xd0] sm:$0x3] %v3315_v2  ;;  %238 = vst [vmem:[#allocation2 + $0xd8] sm:$0xff] %v3315_v2  ;;  %2632 = vmatpush3.bf16.msra.mxu0 %v3177_v8  ;;  %3156 = vmatpush3.bf16.msra.mxu1 %v3177_v8  ;;  %v289_v24 = vld [vmem:[%s3387_s13 + $0xc0] sm:$0xff]  ;;  %v290_v25 = vld [vmem:[%s3387_s13 + $0xc8] sm:$0xff]  ;;  %v3433_v35 = vpack.c.bf16 %v266_v22, %v265_v21 }
  0x14   : > { %239 = vst [vmem:[#allocation2 + $0xe0] sm:$0xff] %v3315_v2  ;;  %240 = vst [vmem:[#allocation2 + $0xe8] sm:$0x3] %v3315_v2  ;;  %2633 = vmatprep.subr.bf16.mxu0 %v3178_v9  ;;  %3149 = vmatprep.subr.bf16.mxu1 %v3178_v9  ;;  %v267_v37 = vld [vmem:[%s3387_s13 + $0x10] sm:$0xff]  ;;  %v3191_v38 = vld [vmem:[%s4439_s1 + $0x88] sm:$0xff]   ;;  %v423_v39 = vpack.c.bf16 %v290_v25, %v289_v24 }
  0x15   : > { %241 = vst [vmem:[#allocation2 + $0xf0] sm:$0xff] %v3315_v2  ;;  %242 = vst [vmem:[#allocation2 + $0xf8] sm:$0xff] %v3315_v2  ;;  %1474 = vmatprep.mubr.bf16.mxu1 %v422_v17  ;;  %v3197_v42 = vld [vmem:[%s4439_s1 + $0x108] sm:$0xff]   ;;  %v268_v43 = vld [vmem:[%s3387_s13 + $0x18] sm:$0xff] }
  0x16   : > { %243 = vst [vmem:[#allocation2 + $0x100] sm:$0x3] %v3315_v2  ;;  %244 = vst [vmem:[#allocation2 + $0x108] sm:$0xff] %v3315_v2  ;;  %v291_v44 = vld [vmem:[%s3387_s13 + $0xd0] sm:$0xff]  ;;  %v292_v45 = vld [vmem:[%s3387_s13 + $0xd8] sm:$0xff]  ;;  %v3463_v56 = vpack.c.bf16 %v268_v43, %v267_v37 }
  0x17   : > { %245 = vst [vmem:[#allocation2 + $0x110] sm:$0xff] %v3315_v2  ;;  %246 = vst [vmem:[#allocation2 + $0x118] sm:$0x3] %v3315_v2  ;;  %2634 = vmatpush3.bf16.msra.mxu0 %v3179_v10  ;;  %3157 = vmatpush3.bf16.msra.mxu1 %v3179_v10  ;;  %v3193_v50 = vld [vmem:[%s4439_s1 + $0x90] sm:$0xff]   ;;  %v269_v53 = vld [vmem:[%s3387_s13 + $0x20] sm:$0xff]  ;;  %v424_v59 = vpack.c.bf16 %v292_v45, %v291_v44 }
  0x18   : > { %247 = vst [vmem:[#allocation2 + $0x120] sm:$0xff] %v3315_v2  ;;  %248 = vst [vmem:[#allocation2 + $0x128] sm:$0xff] %v3315_v2  ;;  %2635 = vmatprep.subr.bf16.mxu0 %v3180_v11  ;;  %3150 = vmatprep.subr.bf16.mxu1 %v3180_v11  ;;  %v270_v54 = vld [vmem:[%s3387_s13 + $0x28] sm:$0xff]  ;;  %v293_v55 = vld [vmem:[%s3387_s13 + $0xe0] sm:$0xff] }
  0x19   : > { %249 = vst [vmem:[#allocation2 + $0x130] sm:$0x3] %v3315_v2  ;;  %250 = vst [vmem:[#allocation2 + $0x138] sm:$0xff] %v3315_v2  ;;  %v294_v57 = vld [vmem:[%s3387_s13 + $0xe8] sm:$0xff]  ;;  %v3194_v58 = vld [vmem:[%s4439_s1 + $0xd8] sm:$0xff]   ;;  %v3491_v7 = vpack.c.bf16 %v270_v54, %v269_v53 }
  0x1a   : > { %251 = vst [vmem:[#allocation2 + $0x140] sm:$0xff] %v3315_v2  ;;  %252 = vst [vmem:[#allocation2 + $0x148] sm:$0x3] %v3315_v2  ;;  %v3196_v60 = vld [vmem:[%s4439_s1 + $0x98] sm:$0xff]   ;;  %v3198_v0 = vld [vmem:[%s4439_s1 + $0xe0] sm:$0xff]   ;;  %v425_v9 = vpack.c.bf16 %v294_v57, %v293_v55 }
  0x1b   : > { %253 = vst [vmem:[#allocation2 + $0x150] sm:$0xff] %v3315_v2  ;;  %254 = vst [vmem:[#allocation2 + $0x158] sm:$0xff] %v3315_v2  ;;  %2636 = vmatpush3.bf16.msra.mxu0 %v3181_v18  ;;  %3158 = vmatpush3.bf16.msra.mxu1 %v3181_v18  ;;  %v3203_v1 = vld [vmem:[%s4439_s1 + $0x150] sm:$0xff]   ;;  %v3199_v6 = vld [vmem:[%s4439_s1 + $0xa0] sm:$0xff]  }
  0x1c   : > { %255 = vst [vmem:[#allocation2 + $0x160] sm:$0x3] %v3315_v2  ;;  %256 = vst [vmem:[#allocation2 + $0x168] sm:$0xff] %v3315_v2  ;;  %2637 = vmatprep.subr.bf16.mxu0 %v3182_v19  ;;  %3151 = vmatprep.subr.bf16.mxu1 %v3182_v19  ;;  %v3205_v3 = vld [vmem:[%s4439_s1 + $0x110] sm:$0xff]   ;;  %v3200_v8 = vld [vmem:[%s4439_s1 + $0xe8] sm:$0xff]  }
  0x1d   : > { %257 = vst [vmem:[#allocation2 + $0x170] sm:$0xff] %v3315_v2  ;;  %258 = vst [vmem:[#allocation2 + $0x178] sm:$0x3] %v3315_v2  ;;  %v271_v10 = vld [vmem:[%s3387_s13 + $0x30] sm:$0xff]  ;;  %v272_v11 = vld [vmem:[%s3387_s13 + $0x38] sm:$0xff] }
  0x1e   : > { %259 = vst [vmem:[#allocation2 + $0x180] sm:$0xff] %v3315_v2  ;;  %260 = vst [vmem:[#allocation2 + $0x188] sm:$0xff] %v3315_v2  ;;  %v3201_v12 = vld [vmem:[%s4439_s1 + $0xa8] sm:$0xff]   ;;  %v3210_v18 = vld [vmem:[%s4439_s1 + $0x158] sm:$0xff]  }
  0x1f   : > { %261 = vst [vmem:[#allocation2 + $0x190] sm:$0x3] %v3315_v2  ;;  %262 = vst [vmem:[#allocation2 + $0x198] sm:$0xff] %v3315_v2  ;;  %2638 = vmatpush3.bf16.msra.mxu0 %v3183_v20  ;;  %3159 = vmatpush3.bf16.msra.mxu1 %v3183_v20  ;;  %v3211_v19 = vld [vmem:[%s4439_s1 + $0x118] sm:$0xff]   ;;  %v273_v20 = vld [vmem:[%s3387_s13 + $0x40] sm:$0xff] }
  0x20   : > { %263 = vst [vmem:[#allocation2 + $0x1a0] sm:$0xff] %v3315_v2  ;;  %264 = vst [vmem:[#allocation2 + $0x1a8] sm:$0x3] %v3315_v2  ;;  %2639 = vmatprep.subr.bf16.mxu0 %v3184_v23  ;;  %3152 = vmatprep.subr.bf16.mxu1 %v3184_v23 }
  0x21   : > { %320 = vst [vmem:[#allocation2 + $0x121] sm:$0xff] %v287_v14  ;;  %321 = vst [vmem:[#allocation2 + $0x129] sm:$0xff] %v288_v16  ;;  %v3202_v16 = vld [vmem:[%s4439_s1 + $0xf0] sm:$0xff]  }
  0x22   : > { %298 = vst [vmem:[#allocation2 + $0x19] sm:$0xff] %v265_v21  ;;  %299 = vst [vmem:[#allocation2 + $0x21] sm:$0xff] %v266_v22  ;;  %v274_v21 = vld [vmem:[%s3387_s13 + $0x48] sm:$0xff] }
  0x23   : > { %322 = vst [vmem:[#allocation2 + $0x139] sm:$0xff] %v289_v24  ;;  %323 = vst [vmem:[#allocation2 + $0x141] sm:$0xff] %v290_v25  ;;  %2640 = vmatpush3.bf16.msra.mxu0 %v3185_v26  ;;  %3160 = vmatpush3.bf16.msra.mxu1 %v3185_v26  ;;  %v3520_v24 = vld [vmem:[%s3387_s13 + $0x50] sm:$0xff]  ;;  %v3525_v26 = vpack.c.bf16 %v272_v11, %v271_v10 }
  0x24   : > { %2737 = vmatprep.subr.bf16.mxu1 %v3186_v28  ;;  %2849 = vmatprep.subr.bf16.mxu0 %v3187_v30  ;;  %300 = vst [vmem:[#allocation2 + $0x31] sm:$0xff] %v267_v37  ;;  %301 = vst [vmem:[#allocation2 + $0x39] sm:$0xff] %v268_v43  ;;  %v3204_v25 = vld [vmem:[%s4439_s1 + $0xb0] sm:$0xff]   ;;  %v3206_v28 = vld [vmem:[%s4439_s1 + $0xf8] sm:$0xff]  }
  0x25   : > { %324 = vst [vmem:[#allocation2 + $0x151] sm:$0xff] %v291_v44  ;;  %325 = vst [vmem:[#allocation2 + $0x159] sm:$0xff] %v292_v45  ;;  %v3214_v37 = vld [vmem:[%s4439_s1 + $0x120] sm:$0xff]   ;;  %v3561_v44 = vpack.c.bf16 %v274_v21, %v273_v20  ;;  %v3213_v45 = vld [vmem:[%s4439_s1 + $0x1c8] sm:$0xff]  }
  0x26   : > { %1379 = vmatmul.mubr.bf16.vlgmr.msra.gmra.mrb[0].mxu0 %v3316_v46  ;;  %302 = vst [vmem:[#allocation2 + $0x49] sm:$0xff] %v269_v53  ;;  %303 = vst [vmem:[#allocation2 + $0x51] sm:$0xff] %v270_v54  ;;  %v3209_v43 = vld [vmem:[%s4439_s1 + $0x180] sm:$0xff]   ;;  %v3217_v54 = vld [vmem:[%s4439_s1 + $0x128] sm:$0xff]  }
  0x27   : > { %2850 = vmatpush3.bf16.msra.mxu0 %v3189_v33  ;;  %1386 = vmatprep.mubr.bf16.mxu0 %v3433_v35  ;;  %326 = vst [vmem:[#allocation2 + $0x169] sm:$0xff] %v293_v55  ;;  %327 = vst [vmem:[#allocation2 + $0x171] sm:$0xff] %v294_v57  ;;  %v427_v33 = vld [vmem:[#allocation2 + $0xa] sm:$0xff] }
  0x28   : > { %v354_v27 = vld [vmem:[#allocation2 + $0x120] sm:$0xff]  ;;  %v355_v29 = vld [vmem:[#allocation2 + $0x128] sm:$0xff]  ;;  %2851 = vmatprep.subr.bf16.mxu0 %v3195_v36  ;;  %304 = vst [vmem:[#allocation2 + $0x61] sm:$0xff] %v271_v10  ;;  %305 = vst [vmem:[#allocation2 + $0x69] sm:$0xff] %v272_v11 }
  0x29   : > { %v3422_v31 = vpack.c.bf16 %v355_v29, %v354_v27  ;;  %v332_v40 = vld [vmem:[#allocation2 + $0x18] sm:$0xff]  ;;  %v333_v41 = vld [vmem:[#allocation2 + $0x20] sm:$0xff]  ;;  %306 = vst [vmem:[#allocation2 + $0x79] sm:$0xff] %v273_v20  ;;  %307 = vst [vmem:[#allocation2 + $0x81] sm:$0xff] %v274_v21 }
  0x2a   : > { %v356_v47 = vld [vmem:[#allocation2 + $0x138] sm:$0xff]  ;;  %v357_v48 = vld [vmem:[#allocation2 + $0x140] sm:$0xff]  ;;  %v3456_v51 = vpack.c.bf16 %v333_v41, %v332_v40  ;;  %308 = vst [vmem:[#allocation2 + $0x91] sm:$0xff] %v3520_v24  ;;  %v3552_v40 = vld [vmem:[%s3387_s13 + $0x68] sm:$0xff] }
  0x2b   : > { %1475 = vmatmul.mubr.bf16.vlgmr.msra.gmra.mrb[0].mxu1 %v3422_v31  ;;  %v3458_v52 = vpack.c.bf16 %v357_v48, %v356_v47  ;;  %2852 = vmatpush3.bf16.msra.mxu0 %v3197_v42  ;;  %v334_v61 = vld [vmem:[#allocation2 + $0x30] sm:$0xff]  ;;  %v335_v62 = vld [vmem:[#allocation2 + $0x38] sm:$0xff]  ;;  %311 = vst [vmem:[#allocation2 + $0xb1] sm:$0xff] %v3552_v40  ;;  %v429_v47 = vld [vmem:[#allocation2 + $0x22] sm:$0xff] }
  0x2c   : > { %2738 = vmatpush3.bf16.msra.mxu1 %v3188_v32  ;;  %1482 = vmatprep.mubr.bf16.mxu1 %v423_v39  ;;  %v358_v63 = vld [vmem:[#allocation2 + $0x150] sm:$0xff]  ;;  %v359_v2 = vld [vmem:[#allocation2 + $0x158] sm:$0xff]  ;;  %v3484_v4 = vpack.c.bf16 %v335_v62, %v334_v61  ;;  %v426_v32 = vld [vmem:[#allocation2 + $0x2] sm:$0xff] }
  0x2d   : > { %2739 = vmatprep.subr.bf16.mxu1 %v3190_v34  ;;  %2853 = vmatprep.subr.bf16.mxu0 %v3203_v1  ;;  %v3486_v5 = vpack.c.bf16 %v359_v2, %v358_v63  ;;  %v336_v13 = vld [vmem:[#allocation2 + $0x48] sm:$0xff]  ;;  %v337_v14 = vld [vmem:[#allocation2 + $0x50] sm:$0xff]  ;;  %v276_v27 = vld [vmem:[%s3387_s13 + $0x58] sm:$0xff]  ;;  %v458_v42 = vpack.c.bf16 %v427_v33, %v426_v32 }
  0x2e   : > { %1387 = vmatmul.mubr.bf16.gmra.mrb[4].mxu0 %v3456_v51  ;;  %v360_v15 = vld [vmem:[#allocation2 + $0x168] sm:$0xff]  ;;  %v361_v17 = vld [vmem:[#allocation2 + $0x170] sm:$0xff]  ;;  %v3515_v22 = vpack.c.bf16 %v337_v14, %v336_v13  ;;  %309 = vst [vmem:[#allocation2 + $0x99] sm:$0xff] %v276_v27  ;;  %v3207_v29 = vld [vmem:[%s4439_s1 + $0xb8] sm:$0xff]   ;;  %v3605_v63 = vpack.c.bf16 %v276_v27, %v3520_v24 }
  0x2f   : > { %1394 = vmatprep.mubr.bf16.mxu0 %v3463_v56  ;;  %2854 = vmatpush3.bf16.msra.mxu0 %v3205_v3  ;;  %v3517_v23 = vpack.c.bf16 %v361_v17, %v360_v15  ;;  %v338_v30 = vld [vmem:[#allocation2 + $0x60] sm:$0xff]  ;;  %v339_v36 = vld [vmem:[#allocation2 + $0x68] sm:$0xff]  ;;  %v3218_v57 = vld [vmem:[%s4439_s1 + $0x1d0] sm:$0xff]  }
  0x30   : > { %2740 = vmatpush3.bf16.msra.mxu1 %v3191_v38  ;;  %2855 = vmatprep.subr.bf16.mxu0 %v3210_v18  ;;  %v3212_v34 = vld [vmem:[%s4439_s1 + $0x160] sm:$0xff]   ;;  %v3555_v41 = vpack.c.bf16 %v339_v36, %v338_v30  ;;  %v3215_v48 = vld [vmem:[%s4439_s1 + $0x188] sm:$0xff]   ;;  %v340_v53 = vld [vmem:[#allocation2 + $0x78] sm:$0xff] }
  0x31   : > { %2741 = vmatprep.subr.bf16.mxu1 %v3192_v49  ;;  %v3208_v38 = vld [vmem:[%s4439_s1 + $0x1c0] sm:$0xff]   ;;  %v3216_v49 = vld [vmem:[%s4439_s1 + $0x168] sm:$0xff]   ;;  %v3219_v62 = vld [vmem:[%s4439_s1 + $0x190] sm:$0xff]  }
  0x32   : > { %v3549_v39 = vld [vmem:[%s3387_s13 + $0x60] sm:$0xff]  ;;  %v3221_v1 = vld [vmem:[%s4439_s1 + $0x130] sm:$0xff]   ;;  %v3222_v11 = vld [vmem:[%s4439_s1 + $0x1d8] sm:$0xff]  }
  0x33   : > { %1483 = vmatmul.mubr.bf16.gmra.mrb[4].mxu1 %v3458_v52  ;;  %2856 = vmatpush3.bf16.msra.mxu0 %v3211_v19  ;;  %310 = vst [vmem:[#allocation2 + $0xa9] sm:$0xff] %v3549_v39  ;;  %v428_v46 = vld [vmem:[#allocation2 + $0x1a] sm:$0xff]  ;;  %v3614_v2 = vld [vmem:[%s3387_s13 + $0x90] sm:$0xff]  ;;  %v3649_v19 = vld [vmem:[%s3387_s13 + $0xa8] sm:$0xff] }
  0x34   : > { %2742 = vmatpush3.bf16.msra.mxu1 %v3193_v50  ;;  %1490 = vmatprep.mubr.bf16.mxu1 %v424_v59  ;;  %v3573_v50 = vld [vmem:[%s3387_s13 + $0x70] sm:$0xff]  ;;  %v341_v55 = vld [vmem:[#allocation2 + $0x80] sm:$0xff]  ;;  %v3593_v59 = vld [vmem:[%s3387_s13 + $0x88] sm:$0xff]  ;;  %v3597_v61 = vpack.c.bf16 %v429_v47, %v428_v46  ;;  %316 = vst [vmem:[#allocation2 + $0xf1] sm:$0xff] %v3614_v2 }
  0x35   : > { %2743 = vmatprep.subr.bf16.mxu1 %v3194_v58  ;;  %2857 = vmatprep.subr.bf16.mxu0 %v3212_v34  ;;  %312 = vst [vmem:[#allocation2 + $0xc1] sm:$0xff] %v3573_v50  ;;  %v3590_v58 = vld [vmem:[%s3387_s13 + $0x80] sm:$0xff]  ;;  %315 = vst [vmem:[#allocation2 + $0xe1] sm:$0xff] %v3593_v59  ;;  %v430_v3 = vld [vmem:[#allocation2 + $0x32] sm:$0xff] }
  0x36   : > { %1395 = vmatmul.mubr.bf16.gmra.mrb[8].mxu0 %v3484_v4  ;;  %314 = vst [vmem:[#allocation2 + $0xd9] sm:$0xff] %v3590_v58  ;;  %v343_v10 = vld [vmem:[#allocation2 + $0x98] sm:$0xff]  ;;  %v3646_v18 = vld [vmem:[%s3387_s13 + $0xa0] sm:$0xff]  ;;  %319 = vst [vmem:[#allocation2 + $0x111] sm:$0xff] %v3649_v19  ;;  %v3699_v47 = vpack.c.bf16 %v3593_v59, %v3590_v58 }
  0x37   : > { %1402 = vmatprep.mubr.bf16.mxu0 %v3491_v7  ;;  %2858 = vmatpush3.bf16.msra.mxu0 %v3214_v37  ;;  %v3224_v15 = vld [vmem:[%s4439_s1 + $0x178] sm:$0xff]   ;;  %318 = vst [vmem:[#allocation2 + $0x109] sm:$0xff] %v3646_v18  ;;  %v432_v24 = vld [vmem:[#allocation2 + $0x4a] sm:$0xff]  ;;  %v3226_v27 = vld [vmem:[%s4439_s1 + $0x1e0] sm:$0xff]  }
  0x38   : > { %2744 = vmatpush3.bf16.msra.mxu1 %v3196_v60  ;;  %2859 = vmatprep.subr.bf16.mxu0 %v3216_v49  ;;  %v3595_v60 = vpack.c.bf16 %v341_v55, %v340_v53  ;;  %v3225_v17 = vld [vmem:[%s4439_s1 + $0x138] sm:$0xff]   ;;  %v3229_v34 = vld [vmem:[%s4439_s1 + $0x1e8] sm:$0xff]   ;;  %v3234_v46 = vld [vmem:[%s4439_s1 + $0x1b0] sm:$0xff]  }
  0x39   : > { %2745 = vmatprep.subr.bf16.mxu1 %v3198_v0  ;;  %v3220_v0 = vld [vmem:[%s4439_s1 + $0x170] sm:$0xff]   ;;  %v3231_v36 = vld [vmem:[%s4439_s1 + $0x1a8] sm:$0xff]   ;;  %v436_v49 = vld [vmem:[#allocation2 + $0x7a] sm:$0xff] }
  0x3a   : > { %v344_v20 = vld [vmem:[#allocation2 + $0xa8] sm:$0xff]  ;;  %v345_v21 = vld [vmem:[#allocation2 + $0xb0] sm:$0xff] }
  0x3b   : > { %1491 = vmatmul.mubr.bf16.gmra.mrb[8].mxu1 %v3486_v5  ;;  %2860 = vmatpush3.bf16.msra.mxu0 %v3217_v54  ;;  %v3669_v30 = vpack.c.bf16 %v345_v21, %v344_v20  ;;  %v295_v53 = vld [vmem:[%s3387_s13 + $0xf0] sm:$0xff] }
  0x3c   : > { %2746 = vmatpush3.bf16.msra.mxu1 %v3199_v6  ;;  %1498 = vmatprep.mubr.bf16.mxu1 %v425_v9  ;;  %v431_v6 = vld [vmem:[#allocation2 + $0x3a] sm:$0xff]  ;;  %v342_v9 = vld [vmem:[#allocation2 + $0x90] sm:$0xff]  ;;  %328 = vst [vmem:[#allocation2 + $0x181] sm:$0xff] %v295_v53 }
  0x3d   : > { %2747 = vmatprep.subr.bf16.mxu1 %v3200_v8  ;;  %2861 = vmatprep.subr.bf16.mxu0 %v3220_v0  ;;  %v3617_v8 = vld [vmem:[%s3387_s13 + $0x98] sm:$0xff]  ;;  %v3631_v13 = vpack.c.bf16 %v343_v10, %v342_v9  ;;  %v3633_v14 = vpack.c.bf16 %v431_v6, %v430_v3  ;;  %v346_v37 = vld [vmem:[#allocation2 + $0xc0] sm:$0xff] }
  0x3e   : > { %1403 = vmatmul.mubr.bf16.gmra.mrb[12].mxu0 %v3515_v22  ;;  %317 = vst [vmem:[#allocation2 + $0xf9] sm:$0xff] %v3617_v8  ;;  %v348_v54 = vld [vmem:[#allocation2 + $0xd8] sm:$0xff]  ;;  %v349_v55 = vld [vmem:[#allocation2 + $0xe0] sm:$0xff] }
  0x3f   : > { %1410 = vmatprep.mubr.bf16.mxu0 %v3525_v26  ;;  %2862 = vmatpush3.bf16.msra.mxu0 %v3221_v1  ;;  %v3713_v58 = vpack.c.bf16 %v349_v55, %v348_v54  ;;  %v438_v0 = vld [vmem:[#allocation2 + $0x92] sm:$0xff]  ;;  %v439_v6 = vld [vmem:[#allocation2 + $0x9a] sm:$0xff] }
  0x40   : > { %2748 = vmatpush3.bf16.msra.mxu1 %v3201_v12  ;;  %v3223_v12 = vld [vmem:[%s4439_s1 + $0x198] sm:$0xff]   ;;  %2863 = vmatprep.subr.bf16.mxu0 %v3224_v15  ;;  %v350_v1 = vld [vmem:[#allocation2 + $0xf0] sm:$0xff]  ;;  %v3727_v10 = vpack.c.bf16 %v439_v6, %v438_v0 }
  0x41   : > { %2749 = vmatprep.subr.bf16.mxu1 %v3202_v16  ;;  %v3640_v16 = vpack.c.bf16 %v3552_v40, %v3549_v39  ;;  %v435_v39 = vld [vmem:[#allocation2 + $0x6a] sm:$0xff]  ;;  %v441_v15 = vld [vmem:[#allocation2 + $0xb2] sm:$0xff]  ;;  %v455_v55 = vld [vmem:[#allocation2 + $0x15a] sm:$0xff] }
  0x42   : > { %v454_v54 = vld [vmem:[#allocation2 + $0x152] sm:$0xff] }
  0x43   : > { %1499 = vmatmul.mubr.bf16.gmra.mrb[12].mxu1 %v3517_v23  ;;  %2864 = vmatpush3.bf16.msra.mxu0 %v3225_v17 }
  0x44   : > { %2750 = vmatpush3.bf16.msra.mxu1 %v3204_v25  ;;  %1539 = vmatprep.mubr.bf16.mxu1 %v3456_v51  ;;  %v3576_v51 = vld [vmem:[%s3387_s13 + $0x78] sm:$0xff] }
  0x45   : > { %2751 = vmatprep.subr.bf16.mxu1 %v3206_v28  ;;  %313 = vst [vmem:[#allocation2 + $0xc9] sm:$0xff] %v3576_v51  ;;  %v433_v25 = vld [vmem:[#allocation2 + $0x52] sm:$0xff]  ;;  %v3663_v28 = vld [vmem:[%s4439_s1 + $0x200] sm:$0xff]   ;;  %v3675_v33 = vpack.c.bf16 %v3576_v51, %v3573_v50 }
  0x46   : > { %1411 = vmatmul.mubr.bf16.gmra.mrb[16].mxu0 %v3555_v41  ;;  %3097 = vmatprep.subr.bf16.mxu0 %v3663_v28  ;;  %v3671_v32 = vpack.c.bf16 %v433_v25, %v432_v24  ;;  %v437_v50 = vld [vmem:[#allocation2 + $0x82] sm:$0xff]  ;;  %v3237_v51 = vld [vmem:[%s4439_s1 + $0x1b8] sm:$0xff]  }
  0x47   : > { %1418 = vmatprep.mubr.bf16.mxu0 %v3561_v44  ;;  %v3715_v59 = vpack.c.bf16 %v437_v50, %v436_v49  ;;  %v351_v3 = vld [vmem:[#allocation2 + $0xf8] sm:$0xff]  ;;  %v3230_v25 = vld [vmem:[%s4439_s1 + $0x208] sm:$0xff]  }
  0x48   : > { %2752 = vmatpush3.bf16.msra.mxu1 %v3207_v29  ;;  %v3228_v29 = vld [vmem:[%s4439_s1 + $0x1a0] sm:$0xff]   ;;  %v3725_v9 = vpack.c.bf16 %v351_v3, %v350_v1  ;;  %v451_v49 = vld [vmem:[#allocation2 + $0x12a] sm:$0xff]  ;;  %v3805_v1 = vpack.c.bf16 %v455_v55, %v454_v54 }
  0x49   : > { %2961 = vmatprep.subr.bf16.mxu1 %v3208_v38  ;;  %v434_v38 = vld [vmem:[#allocation2 + $0x62] sm:$0xff]  ;;  %v456_v3 = vld [vmem:[#allocation2 + $0x16a] sm:$0xff] }
  0x4b   : > { %1540 = vmatmul.mubr.bf16.vlgmr.msra.gmra.mrb[16].mxu1 %v458_v42  ;;  %v3232_v42 = vld [vmem:[%s4439_s1 + $0x1f0] sm:$0xff]  }
  0x4c   : > { %2962 = vmatpush3.bf16.msra.mxu1 %v3209_v43  ;;  %1547 = vmatprep.mubr.bf16.mxu1 %v3484_v4  ;;  %v347_v40 = vld [vmem:[#allocation2 + $0xc8] sm:$0xff] }
  0x4d   : > { %2963 = vmatprep.subr.bf16.mxu1 %v3213_v45  ;;  %v3690_v43 = vpack.c.bf16 %v347_v40, %v346_v37  ;;  %v3692_v45 = vpack.c.bf16 %v435_v39, %v434_v38  ;;  %v3239_v38 = vld [vmem:[%s4439_s1 + $0x228] sm:$0xff]   ;;  %v449_v40 = vld [vmem:[#allocation2 + $0x112] sm:$0xff] }
  0x4e   : > { %1419 = vmatmul.mubr.bf16.gmra.mrb[20].mxu0 %v3595_v60  ;;  %v448_v39 = vld [vmem:[#allocation2 + $0x10a] sm:$0xff] }
  0x4f   : > { %1426 = vmatprep.mubr.bf16.mxu0 %v3605_v63 }
  0x50   : > { %2964 = vmatpush3.bf16.msra.mxu1 %v3215_v48  ;;  %v3235_v48 = vld [vmem:[%s4439_s1 + $0x1f8] sm:$0xff]  }
  0x51   : > { %2965 = vmatprep.subr.bf16.mxu1 %v3218_v57  ;;  %v296_v57 = vld [vmem:[%s3387_s13 + $0xf8] sm:$0xff]  ;;  %s209_s13 = scalar_lea.vmem %s4442_s4, %s2548_s12 }
  0x52   : > { %329 = vst [vmem:[#allocation2 + $0x189] sm:$0xff] %v296_v57  ;;  %v3741_v21 = vpack.c.bf16 %v296_v57, %v295_v53  ;;  %v453_v53 = vld [vmem:[#allocation2 + $0x142] sm:$0xff] }
  0x53   : > { %1548 = vmatmul.mubr.bf16.gmra.mrb[20].mxu1 %v3597_v61  ;;  %v504_v57 = vld [vmem:[#allocation2 + $0x180] sm:$0xff] }
  0x54   : > { %1555 = vmatprep.mubr.bf16.mxu1 %v3515_v22  ;;  %2966 = vmatpush3.bf16.msra.mxu1 %v3219_v62  ;;  %v3719_v62 = vpack.c.bf16 %v3617_v8, %v3614_v2  ;;  %v3731_v2 = vpack.c.bf16 %v3649_v19, %v3646_v18  ;;  %v440_v8 = vld [vmem:[#allocation2 + $0xaa] sm:$0xff]  ;;  %v442_v18 = vld [vmem:[#allocation2 + $0xc2] sm:$0xff] }
  0x55   : > { %2967 = vmatprep.subr.bf16.mxu1 %v3222_v11  ;;  %v352_v11 = vld [vmem:[#allocation2 + $0x108] sm:$0xff]  ;;  %v3739_v20 = vpack.c.bf16 %v441_v15, %v440_v8 }
  0x56   : > { %1427 = vmatmul.mubr.bf16.gmra.mrb[24].mxu0 %v3631_v13  ;;  %v443_v19 = vld [vmem:[#allocation2 + $0xca] sm:$0xff] }
  0x57   : > { %1434 = vmatprep.mubr.bf16.mxu0 %v3640_v16  ;;  %v3747_v24 = vpack.c.bf16 %v443_v19, %v442_v18 }
  0x58   : > { %2968 = vmatpush3.bf16.msra.mxu1 %v3223_v12  ;;  %v353_v12 = vld [vmem:[#allocation2 + $0x110] sm:$0xff] }
  0x59   : > { %2969 = vmatprep.subr.bf16.mxu1 %v3226_v27  ;;  %v3737_v17 = vpack.c.bf16 %v353_v12, %v352_v11  ;;  %v444_v27 = vld [vmem:[#allocation2 + $0xda] sm:$0xff]  ;;  %v505_v0 = vld [vmem:[#allocation2 + $0x188] sm:$0xff] }
  0x5a   : > { %v600_v12 = vld [vmem:[#allocation2 + $0x182] sm:$0xff] }
  0x5b   : > { %1556 = vmatmul.mubr.bf16.gmra.mrb[24].mxu1 %v3633_v14 }
  0x5c   : > { %1563 = vmatprep.mubr.bf16.mxu1 %v3555_v41  ;;  %2970 = vmatpush3.bf16.msra.mxu1 %v3228_v29  ;;  %v445_v29 = vld [vmem:[#allocation2 + $0xe2] sm:$0xff] }
  0x5d   : > { %2971 = vmatprep.subr.bf16.mxu1 %v3229_v34  ;;  %v3760_v34 = vpack.c.bf16 %v445_v29, %v444_v27 }
  0x5e   : > { %1435 = vmatmul.mubr.bf16.gmra.mrb[28].mxu0 %v3669_v30 }
  0x5f   : > { %1442 = vmatprep.mubr.bf16.mxu0 %v3675_v33 }
  0x60   : > { %2972 = vmatpush3.bf16.msra.mxu1 %v3231_v36  ;;  %v3238_v36 = vld [vmem:[%s4439_s1 + $0x220] sm:$0xff]  }
  0x61   : > { %2973 = vmatprep.subr.bf16.mxu1 %v3232_v42  ;;  %v3240_v42 = vld [vmem:[%s4439_s1 + $0x230] sm:$0xff]  }
  0x63   : > { %1564 = vmatmul.mubr.bf16.gmra.mrb[28].mxu1 %v3671_v32 }
  0x64   : > { %1571 = vmatprep.mubr.bf16.mxu1 %v3595_v60  ;;  %2974 = vmatpush3.bf16.msra.mxu1 %v3234_v46  ;;  %v3784_v46 = vpack.c.bf16 %v449_v40, %v448_v39 }
  0x65   : > { %2975 = vmatprep.subr.bf16.mxu1 %v3235_v48  ;;  %v3241_v48 = vld [vmem:[%s4439_s1 + $0x238] sm:$0xff]  }
  0x66   : > { %1443 = vmatmul.mubr.bf16.gmra.mrb[32].mxu0 %v3690_v43 }
  0x67   : > { %1450 = vmatprep.mubr.bf16.mxu0 %v3699_v47 }
  0x68   : > { %2976 = vmatpush3.bf16.msra.mxu1 %v3237_v51  ;;  %v452_v51 = vld [vmem:[#allocation2 + $0x13a] sm:$0xff] }
  0x6b   : > { %1572 = vmatmul.mubr.bf16.gmra.mrb[32].mxu1 %v3692_v45 }
  0x6c   : > { %1579 = vmatprep.mubr.bf16.mxu1 %v3631_v13 }
  0x6e   : > { %1451 = vmatmul.mubr.bf16.gmra.mrb[36].mxu0 %v3713_v58 }
  0x6f   : > { %1458 = vmatprep.mubr.bf16.mxu0 %v3719_v62 }
  0x73   : > { %1580 = vmatmul.mubr.bf16.gmra.mrb[36].mxu1 %v3715_v59 }
  0x74   : > { %1587 = vmatprep.mubr.bf16.mxu1 %v3669_v30 }
  0x76   : > { %1459 = vmatmul.mubr.bf16.gmra.mrb[40].mxu0 %v3725_v9 }
  0x77   : > { %1466 = vmatprep.mubr.bf16.mxu0 %v3731_v2 }
  0x7b   : > { %1588 = vmatmul.mubr.bf16.gmra.mrb[40].mxu1 %v3727_v10 }
  0x7c   : > { %1595 = vmatprep.mubr.bf16.mxu1 %v3690_v43 }
  0x7e   : > { %1467 = vmatmul.mubr.bf16.gmra.mrb[44].mxu0 %v3737_v17 }
  0x7f   : > { %1700 = vmatprep.mubr.bf16.mxu0 %v3597_v61  ;;  %v3233_v61 = vld [vmem:[%s4439_s1 + $0x210] sm:$0xff]  }
  0x83   : > { %1596 = vmatmul.mubr.bf16.gmra.mrb[44].mxu1 %v3739_v20 }
  0x84   : > { %1603 = vmatprep.mubr.bf16.mxu1 %v3713_v58 }
  0x86   : > { %1701 = vmatmul.mubr.bf16.vlgmr.msra.gmra.mrb[48].mxu0 %v3433_v35  ;;  %v3236_v35 = vld [vmem:[%s4439_s1 + $0x218] sm:$0xff]  }
  0x87   : > { %3098 = vmatpush3.bf16.msra.mxu0 %v3663_v28  ;;  %1708 = vmatprep.mubr.bf16.mxu0 %v3633_v14  ;;  %v446_v14 = vld [vmem:[#allocation2 + $0xf2] sm:$0xff]  ;;  %v447_v28 = vld [vmem:[#allocation2 + $0xfa] sm:$0xff] }
  0x88   : > { %3099 = vmatprep.subr.bf16.mxu0 %v3230_v25  ;;  %v3772_v37 = vpack.c.bf16 %v447_v28, %v446_v14 }
  0x8b   : > { %1604 = vmatmul.mubr.bf16.gmra.mrb[48].mxu1 %v3747_v24  ;;  %3100 = vmatpush3.bf16.msra.mxu0 %v3230_v25 }
  0x8c   : > { %1611 = vmatprep.mubr.bf16.mxu1 %v3725_v9  ;;  %3101 = vmatprep.subr.bf16.mxu0 %v3233_v61 }
  0x8e   : > { %1709 = vmatmul.mubr.bf16.gmra.mrb[52].mxu0 %v3463_v56 }
  0x8f   : > { %1716 = vmatprep.mubr.bf16.mxu0 %v3671_v32  ;;  %3102 = vmatpush3.bf16.msra.mxu0 %v3233_v61 }
  0x90   : > { %3103 = vmatprep.subr.bf16.mxu0 %v3236_v35 }
  0x93   : > { %1612 = vmatmul.mubr.bf16.gmra.mrb[52].mxu1 %v3760_v34  ;;  %3104 = vmatpush3.bf16.msra.mxu0 %v3236_v35 }
  0x94   : > { %1619 = vmatprep.mubr.bf16.mxu1 %v3737_v17  ;;  %3105 = vmatprep.subr.bf16.mxu0 %v3238_v36 }
  0x96   : > { %1717 = vmatmul.mubr.bf16.gmra.mrb[56].mxu0 %v3491_v7 }
  0x97   : > { %1724 = vmatprep.mubr.bf16.mxu0 %v3692_v45  ;;  %3106 = vmatpush3.bf16.msra.mxu0 %v3238_v36 }
  0x98   : > { %3107 = vmatprep.subr.bf16.mxu0 %v3239_v38 }
  0x9b   : > { %1620 = vmatmul.mubr.bf16.gmra.mrb[56].mxu1 %v3772_v37  ;;  %3108 = vmatpush3.bf16.msra.mxu0 %v3239_v38 }
  0x9c   : > { %1627 = vmatprep.mubr.bf16.mxu1 %v3422_v31  ;;  %3109 = vmatprep.subr.bf16.mxu0 %v3240_v42  ;;  %v450_v31 = vld [vmem:[#allocation2 + $0x122] sm:$0xff] }
  0x9d   : > { %v3793_v50 = vpack.c.bf16 %v451_v49, %v450_v31 }
  0x9e   : > { %1725 = vmatmul.mubr.bf16.gmra.mrb[60].mxu0 %v3525_v26 }
  0x9f   : > { %1732 = vmatprep.mubr.bf16.mxu0 %v3715_v59  ;;  %3110 = vmatpush3.bf16.msra.mxu0 %v3240_v42 }
  0xa0   : > { %3111 = vmatprep.subr.bf16.mxu0 %v3241_v48 }
  0xa3   : > { %1628 = vmatmul.mubr.bf16.gmra.mrb[60].mxu1 %v3784_v46  ;;  %3112 = vmatpush3.bf16.msra.mxu0 %v3241_v48 }
  0xa4   : > { %1635 = vmatprep.mubr.bf16.mxu1 %v3458_v52  ;;  %v3799_v52 = vpack.c.bf16 %v453_v53, %v452_v51 }
  0xa6   : > { %1733 = vmatmul.mubr.bf16.gmra.mrb[64].mxu0 %v3561_v44 }
  0xa7   : > { %1740 = vmatprep.mubr.bf16.mxu0 %v3727_v10 }
  0xab   : > { %1636 = vmatmul.mubr.bf16.gmra.mrb[64].mxu1 %v3793_v50 }
  0xac   : > { %1643 = vmatprep.mubr.bf16.mxu1 %v3486_v5  ;;  %v3807_v5 = vpack.c.bf16 %v505_v0, %v504_v57 }
  0xae   : > { %1741 = vmatmul.mubr.bf16.gmra.mrb[68].mxu0 %v3605_v63 }
  0xaf   : > { %1748 = vmatprep.mubr.bf16.mxu0 %v3739_v20 }
  0xb3   : > { %1644 = vmatmul.mubr.bf16.gmra.mrb[68].mxu1 %v3799_v52 }
  0xb4   : > { %1651 = vmatprep.mubr.bf16.mxu1 %v3517_v23  ;;  %v457_v23 = vld [vmem:[#allocation2 + $0x172] sm:$0xff] }
  0xb5   : > { %v3813_v6 = vpack.c.bf16 %v457_v23, %v456_v3 }
  0xb6   : > { %1749 = vmatmul.mubr.bf16.gmra.mrb[72].mxu0 %v3640_v16 }
  0xb7   : > { %1756 = vmatprep.mubr.bf16.mxu0 %v3747_v24 }
  0xbb   : > { %1652 = vmatmul.mubr.bf16.gmra.mrb[72].mxu1 %v3805_v1 }
  0xbc   : > { %1659 = vmatprep.mubr.bf16.mxu1 %v3807_v5 }
  0xbe   : > { %1757 = vmatmul.mubr.bf16.gmra.mrb[76].mxu0 %v3675_v33 }
  0xbf   : > { %1764 = vmatprep.mubr.bf16.mxu0 %v3760_v34 }
  0xc3   : > { %1660 = vmatmul.mubr.bf16.gmra.mrb[76].mxu1 %v3813_v6 }
  0xc4   : > { %1861 = vmatprep.mubr.bf16.mxu1 %v3463_v56  ;;  %v544_v56 = vld [vmem:[#allocation2 + $0x121] sm:$0xff] }
  0xc6   : > { %1765 = vmatmul.mubr.bf16.gmra.mrb[80].mxu0 %v3699_v47 }
  0xc7   : > { %1772 = vmatprep.mubr.bf16.mxu0 %v3772_v37 }
  0xcb   : > { %1862 = vmatmul.mubr.bf16.vlgmr.msra.gmra.mrb[80].mxu1 %v3484_v4  ;;  %v545_v4 = vld [vmem:[#allocation2 + $0x129] sm:$0xff] }
  0xcc   : > { %1869 = vmatprep.mubr.bf16.mxu1 %v3491_v7  ;;  %v3831_v8 = vpack.c.bf16 %v545_v4, %v544_v56  ;;  %v546_v7 = vld [vmem:[#allocation2 + $0x139] sm:$0xff] }
  0xce   : > { %1773 = vmatmul.mubr.bf16.gmra.mrb[84].mxu0 %v3719_v62 }
  0xcf   : > { %1780 = vmatprep.mubr.bf16.mxu0 %v3784_v46 }
  0xd3   : > { %1870 = vmatmul.mubr.bf16.gmra.mrb[84].mxu1 %v3515_v22  ;;  %v547_v22 = vld [vmem:[#allocation2 + $0x141] sm:$0xff] }
  0xd4   : > { %1877 = vmatprep.mubr.bf16.mxu1 %v3525_v26  ;;  %v3837_v26 = vpack.c.bf16 %v547_v22, %v546_v7 }
  0xd6   : > { %1781 = vmatmul.mubr.bf16.gmra.mrb[88].mxu0 %v3731_v2 }
  0xd7   : > { %1788 = vmatprep.mubr.bf16.mxu0 %v3793_v50 }
  0xdb   : > { %1878 = vmatmul.mubr.bf16.gmra.mrb[88].mxu1 %v3555_v41  ;;  %v548_v41 = vld [vmem:[#allocation2 + $0x151] sm:$0xff] }
  0xdc   : > { %1885 = vmatprep.mubr.bf16.mxu1 %v3561_v44  ;;  %v549_v44 = vld [vmem:[#allocation2 + $0x159] sm:$0xff] }
  0xdd   : > { %v3843_v11 = vpack.c.bf16 %v549_v44, %v548_v41 }
  0xde   : > { %1789 = vmatmul.mubr.bf16.gmra.mrb[92].mxu0 %v3831_v8 }
  0xdf   : > { %1796 = vmatprep.mubr.bf16.mxu0 %v3799_v52 }
  0xe3   : > { %1886 = vmatmul.mubr.bf16.gmra.mrb[92].mxu1 %v3595_v60  ;;  %v550_v60 = vld [vmem:[#allocation2 + $0x169] sm:$0xff] }
  0xe4   : > { %1893 = vmatprep.mubr.bf16.mxu1 %v3605_v63  ;;  %v551_v63 = vld [vmem:[#allocation2 + $0x171] sm:$0xff] }
  0xe5   : > { %v3849_v15 = vpack.c.bf16 %v551_v63, %v550_v60 }
  0xe6   : > { %1797 = vmatmul.mubr.bf16.gmra.mrb[96].mxu0 %v3837_v26 }
  0xe7   : > { %1804 = vmatprep.mubr.bf16.mxu0 %v3805_v1 }
  0xeb   : > { %1894 = vmatmul.mubr.bf16.gmra.mrb[96].mxu1 %v3631_v13  ;;  %v601_v13 = vld [vmem:[#allocation2 + $0x18a] sm:$0xff] }
  0xec   : > { %1901 = vmatprep.mubr.bf16.mxu1 %v3640_v16  ;;  %v3851_v18 = vpack.c.bf16 %v601_v13, %v600_v12  ;;  %v715_v16 = vld [vmem:[#allocation2 + $0x32] sm:$0xff] }
  0xee   : > { %1805 = vmatmul.mubr.bf16.gmra.mrb[100].mxu0 %v3843_v11 }
  0xef   : > { %1812 = vmatprep.mubr.bf16.mxu0 %v3813_v6 }
  0xf3   : > { %1902 = vmatmul.mubr.bf16.gmra.mrb[100].mxu1 %v3669_v30  ;;  %v716_v30 = vld [vmem:[#allocation2 + $0x3a] sm:$0xff] }
  0xf4   : > { %1909 = vmatprep.mubr.bf16.mxu1 %v3675_v33  ;;  %v747_v28 = vpack.c.bf16 %v716_v30, %v715_v16 }
  0xf6   : > { %1813 = vmatmul.mubr.bf16.gmra.mrb[104].mxu0 %v3849_v15 }
  0xf7   : > { %1820 = vmatprep.mubr.bf16.mxu0 %v3851_v18 }
  0xf9   : > { %v2641_v19 = vpop.f32.mrb[0].mxu0 }
  0xfa   : > { %v2642_v25 = vpop.f32.mrb[1].mxu0 }
  0xfb   : > { %1910 = vmatmul.mubr.bf16.gmra.mrb[104].mxu1 %v3690_v43  ;;  %v3857_v29 = vadd.f32 %v2642_v25, %v2641_v19  ;;  %v2644_v35 = vpop.f32.mrb[2].mxu0 }
  0xfc   : > { %1917 = vmatprep.mubr.bf16.mxu1 %v3699_v47  ;;  %v2645_v36 = vpop.f32.mrb[3].mxu0 }
  0xfd   : > { %v3861_v43 = vadd.f32 %v2645_v36, %v2644_v35  ;;  %v642_v35 = vld [vmem:[#allocation2 + $0x140] sm:$0xff] }
  0xfe   : > { %v2713_v33 = vpop.f32.mrb[0].mxu1  ;;  %1821 = vmatmul.mubr.bf16.gmra.mrb[108].mxu0 %v3741_v21 }
  0xff   : > { %v2714_v27 = vpop.f32.mrb[1].mxu1  ;;  %3113 = vmatprep.mubr.bf16.mxu0 %v747_v28 }
 0x100   : > { %v3859_v61 = vadd.f32 %v2714_v27, %v2713_v33  ;;  %v2716_v14 = vpop.f32.mrb[2].mxu1 }
 0x101   : > { %v2717_v38 = vpop.f32.mrb[3].mxu1  ;;  %v2647_v47 = vpop.f32.mrb[4].mxu0 }
 0x102   : > { %v3863_v39 = vadd.f32 %v2717_v38, %v2716_v14  ;;  %v2648_v42 = vpop.f32.mrb[5].mxu0  ;;  %v3906_v14 = vld [vmem:[%s4440_s2] ss:$0 sm:$0xff] }
 0x103   : > { %1918 = vmatmul.mubr.bf16.gmra.mrb[108].mxu1 %v3713_v58  ;;  %v3868_v31 = vadd.f32 %v2648_v42, %v2647_v47  ;;  %v2650_v51 = vpop.f32.mrb[6].mxu0  ;;  %v1381_v42 = vadd.f32 %v3857_v29, %v3906_v14  ;;  %v643_v29 = vld [vmem:[#allocation2 + $0x150] sm:$0xff] }
 0x104   : > { %1925 = vmatprep.mubr.bf16.mxu1 %v3719_v62  ;;  %v2651_v54 = vpop.f32.mrb[7].mxu0 }
 0x105   : > { %v3872_v57 = vadd.f32 %v2651_v54, %v2650_v51  ;;  %v1384_v54 = vadd.f32 %v3861_v43, %v3906_v14 }
 0x106   : > { %v2719_v40 = vpop.f32.mrb[4].mxu1  ;;  %3114 = vmatmul.mubr.bf16.vlgmr.msra.gmra.mrb[112].mxu0 %v3671_v32  ;;  %v639_v32 = vld [vmem:[#allocation2 + $0x120] sm:$0xff] }
 0x107   : > { %v2720_v48 = vpop.f32.mrb[5].mxu1  ;;  %3117 = vmatprep.mubr.bf16.mxu0 %v3692_v45  ;;  %v640_v45 = vld [vmem:[#allocation2 + $0x128] sm:$0xff] }
 0x108   : > { %v3870_v49 = vadd.f32 %v2720_v48, %v2719_v40  ;;  %v2722_v53 = vpop.f32.mrb[6].mxu1  ;;  %v661_v16 = vpack.c.bf16 %v640_v45, %v639_v32  ;;  %v1389_v32 = vadd.f32 %v3868_v31, %v3906_v14  ;;  %v645_v31 = vld [vmem:[#allocation2 + $0x168] sm:$0xff] }
 0x109   : > { %v2723_v55 = vpop.f32.mrb[7].mxu1  ;;  %v2653_v58 = vpop.f32.mrb[8].mxu0 }
 0x10a   : > { %v3874_v0 = vadd.f32 %v2723_v55, %v2722_v53  ;;  %v2654_v3 = vpop.f32.mrb[9].mxu0 }
 0x10b   : > { %1926 = vmatmul.mubr.bf16.gmra.mrb[112].mxu1 %v3725_v9  ;;  %v3880_v56 = vadd.f32 %v2654_v3, %v2653_v58  ;;  %v2656_v7 = vpop.f32.mrb[10].mxu0 }
 0x10c   : > { %1933 = vmatprep.mubr.bf16.mxu1 %v3731_v2  ;;  %v2657_v41 = vpop.f32.mrb[11].mxu0 }
 0x10d   : > { %v3884_v60 = vadd.f32 %v2657_v41, %v2656_v7 }
 0x10e   : > { %v2725_v62 = vpop.f32.mrb[8].mxu1  ;;  %3118 = vmatmul.mubr.bf16.gmra.mrb[116].mxu0 %v3715_v59 }
 0x10f   : > { %v2726_v23 = vpop.f32.mrb[9].mxu1  ;;  %3121 = vmatprep.mubr.bf16.mxu0 %v3727_v10  ;;  %v641_v10 = vld [vmem:[#allocation2 + $0x138] sm:$0xff] }
 0x110   : > { %v3882_v4 = vadd.f32 %v2726_v23, %v2725_v62  ;;  %v2728_v22 = vpop.f32.mrb[10].mxu1  ;;  %v662_v40 = vpack.c.bf16 %v642_v35, %v641_v10  ;;  %v644_v23 = vld [vmem:[#allocation2 + $0x158] sm:$0xff] }
 0x111   : > { %v2729_v44 = vpop.f32.mrb[11].mxu1  ;;  %v2659_v2 = vpop.f32.mrb[12].mxu0 }
 0x112   : > { %v3886_v9 = vadd.f32 %v2729_v44, %v2728_v22  ;;  %v2660_v12 = vpop.f32.mrb[13].mxu0  ;;  %v663_v44 = vpack.c.bf16 %v644_v23, %v643_v29 }
 0x113   : > { %1934 = vmatmul.mubr.bf16.gmra.mrb[116].mxu1 %v3737_v17  ;;  %v3892_v30 = vadd.f32 %v2660_v12, %v2659_v2  ;;  %v2662_v33 = vpop.f32.mrb[14].mxu0 }
 0x114   : > { %1941 = vmatprep.mubr.bf16.mxu1 %v3831_v8  ;;  %v2663_v17 = vpop.f32.mrb[15].mxu0 }
 0x115   : > { %v3896_v59 = vadd.f32 %v2663_v17, %v2662_v33  ;;  %v646_v17 = vld [vmem:[#allocation2 + $0x170] sm:$0xff]  ;;  %v1405_v23 = vadd.f32 %v3892_v30, %v3906_v14 }
 0x116   : > { %v2731_v63 = vpop.f32.mrb[12].mxu1  ;;  %3122 = vmatmul.mubr.bf16.gmra.mrb[120].mxu0 %v3739_v20 }
 0x117   : > { %v2732_v13 = vpop.f32.mrb[13].mxu1  ;;  %3125 = vmatprep.mubr.bf16.mxu0 %v3747_v24 }
 0x118   : > { %v3894_v19 = vadd.f32 %v2732_v13, %v2731_v63  ;;  %v2734_v25 = vpop.f32.mrb[14].mxu1 }
 0x119   : > { %v2735_v27 = vpop.f32.mrb[15].mxu1  ;;  %v2665_v28 = vpop.f32.mrb[16].mxu0 }
 0x11a   : > { %v3898_v8 = vadd.f32 %v2735_v27, %v2734_v25  ;;  %v2666_v38 = vpop.f32.mrb[17].mxu0 }
 0x11b   : > { %1942 = vmatmul.mubr.bf16.gmra.mrb[120].mxu1 %v661_v16  ;;  %v3910_v20 = vadd.f32 %v2666_v38, %v2665_v28  ;;  %v2668_v48 = vpop.f32.mrb[18].mxu0  ;;  %v664_v28 = vpack.c.bf16 %v646_v17, %v645_v31  ;;  %v3306_v31 = vld [vmem:[#allocation2] sm:$0xff] }
 0x11c   : > { %1949 = vmatprep.mubr.bf16.mxu1 %v3837_v26  ;;  %v2669_v51 = vpop.f32.mrb[19].mxu0  ;;  %v666_v17 = vpack.c.bf16 %v3306_v31, %v3306_v31 }
 0x11d   : > { %v3916_v58 = vadd.f32 %v2669_v51, %v2668_v48 }
 0x11e   : > { %v2753_v36 = vpop.f32.mrb[16].mxu1  ;;  %3126 = vmatmul.mubr.bf16.gmra.mrb[124].mxu0 %v3760_v34 }
 0x11f   : > { %v2754_v47 = vpop.f32.mrb[17].mxu1  ;;  %3129 = vmatprep.mubr.bf16.mxu0 %v3772_v37  ;;  %v1392_v37 = vadd.f32 %v3872_v57, %v3906_v14 }
 0x120   : > { %v2755_v26 = vadd.f32 %v2754_v47, %v2753_v36  ;;  %v2756_v24 = vpop.f32.mrb[18].mxu1  ;;  %v1397_v36 = vadd.f32 %v3880_v56, %v3906_v14  ;;  %v697_v56 = vld [vmem:[#allocation2 + $0x199] sm:$0xff] }
 0x121   : > { %v2757_v53 = vpop.f32.mrb[19].mxu1  ;;  %v2671_v7 = vpop.f32.mrb[20].mxu0 }
 0x122   : > { %v3914_v55 = vadd.f32 %v2755_v26, %v1381_v42  ;;  %v2758_v62 = vadd.f32 %v2757_v53, %v2756_v24  ;;  %v2672_v41 = vpop.f32.mrb[21].mxu0  ;;  %v698_v53 = vld [vmem:[#allocation2 + $0x1a1] sm:$0xff] }
 0x123   : > { %1950 = vmatmul.mubr.bf16.gmra.mrb[124].mxu1 %v662_v40  ;;  %v3925_v45 = vadd.f32 %v2672_v41, %v2671_v7  ;;  %v2674_v34 = vpop.f32.mrb[22].mxu0 }
 0x124   : > { %v3919_v3 = vadd.f32 %v2758_v62, %v1384_v54  ;;  %1957 = vmatprep.mubr.bf16.mxu1 %v3843_v11  ;;  %v2675_v12 = vpop.f32.mrb[23].mxu0 }
 0x125   : > { %v3931_v16 = vadd.f32 %v2675_v12, %v2674_v34  ;;  %v746_v12 = vld [vmem:[#allocation2 + $0x1a2] sm:$0xff] }
 0x126   : > { %v2759_v22 = vpop.f32.mrb[20].mxu1  ;;  %3130 = vmatmul.mubr.bf16.gmra.mrb[128].mxu0 %v3784_v46 }
 0x127   : > { %v2760_v43 = vpop.f32.mrb[21].mxu1  ;;  %3133 = vmatprep.mubr.bf16.mxu0 %v3793_v50  ;;  %v1400_v50 = vadd.f32 %v3884_v60, %v3906_v14 }
 0x128   : > { %v2761_v2 = vadd.f32 %v2760_v43, %v2759_v22  ;;  %v2762_v63 = vpop.f32.mrb[22].mxu1  ;;  %v714_v43 = vpack.c.bf16 %v698_v53, %v697_v56  ;;  %v1421_v56 = vadd.f32 %v3925_v45, %v3906_v14 }
 0x129   : > { %v2763_v13 = vpop.f32.mrb[23].mxu1  ;;  %v2677_v27 = vpop.f32.mrb[24].mxu0 }
 0x12a   : > { %v3929_v11 = vadd.f32 %v2761_v2, %v1389_v32  ;;  %v2764_v33 = vadd.f32 %v2763_v13, %v2762_v63  ;;  %v2678_v35 = vpop.f32.mrb[25].mxu0  ;;  %v745_v63 = vld [vmem:[#allocation2 + $0x19a] sm:$0xff] }
 0x12b   : > { %1958 = vmatmul.mubr.bf16.gmra.mrb[128].mxu1 %v663_v44  ;;  %v3940_v38 = vadd.f32 %v2678_v35, %v2677_v27  ;;  %v2680_v46 = vpop.f32.mrb[26].mxu0  ;;  %v762_v27 = vpack.c.bf16 %v746_v12, %v745_v63 }
 0x12c   : > { %v3934_v25 = vadd.f32 %v2764_v33, %v1392_v37  ;;  %1965 = vmatprep.mubr.bf16.mxu1 %v3849_v15  ;;  %v2681_v42 = vpop.f32.mrb[27].mxu0 }
 0x12d   : > { %v3946_v48 = vadd.f32 %v2681_v42, %v2680_v46 }
 0x12e   : > { %v2765_v10 = vpop.f32.mrb[24].mxu1  ;;  %3134 = vmatmul.mubr.bf16.gmra.mrb[132].mxu0 %v3799_v52 }
 0x12f   : > { %v2766_v57 = vpop.f32.mrb[25].mxu1  ;;  %3137 = vmatprep.mubr.bf16.mxu0 %v3805_v1 }
 0x130   : > { %v2767_v47 = vadd.f32 %v2766_v57, %v2765_v10  ;;  %v2768_v40 = vpop.f32.mrb[26].mxu1  ;;  %v1413_v10 = vadd.f32 %v3910_v20, %v3906_v14 }
 0x131   : > { %v2769_v26 = vpop.f32.mrb[27].mxu1  ;;  %v2683_v54 = vpop.f32.mrb[28].mxu0 }
 0x132   : > { %v3944_v15 = vadd.f32 %v2767_v47, %v1397_v36  ;;  %v2770_v24 = vadd.f32 %v2769_v26, %v2768_v40  ;;  %v2684_v29 = vpop.f32.mrb[29].mxu0 }
 0x133   : > { %1966 = vmatmul.mubr.bf16.gmra.mrb[132].mxu1 %v664_v28  ;;  %v3955_v7 = vadd.f32 %v2684_v29, %v2683_v54  ;;  %v2686_v41 = vpop.f32.mrb[30].mxu0 }
 0x134   : > { %v3949_v51 = vadd.f32 %v2770_v24, %v1400_v50  ;;  %1973 = vmatprep.mubr.bf16.mxu1 %v3741_v21  ;;  %v2687_v44 = vpop.f32.mrb[31].mxu0  ;;  %v1408_v21 = vadd.f32 %v3896_v59, %v3906_v14 }
 0x135   : > { %v3961_v2 = vadd.f32 %v2687_v44, %v2686_v41 }
 0x136   : > { %v2771_v62 = vpop.f32.mrb[28].mxu1  ;;  %3138 = vmatmul.mubr.bf16.gmra.mrb[136].mxu0 %v3813_v6 }
 0x137   : > { %v2772_v60 = vpop.f32.mrb[29].mxu1  ;;  %3141 = vmatprep.mubr.bf16.mxu0 %v3851_v18  ;;  %v1416_v18 = vadd.f32 %v3916_v58, %v3906_v14 }
 0x138   : > { %v2773_v22 = vadd.f32 %v2772_v60, %v2771_v62  ;;  %v2774_v52 = vpop.f32.mrb[30].mxu1 }
 0x139   : > { %v2775_v32 = vpop.f32.mrb[31].mxu1  ;;  %v2689_v13 = vpop.f32.mrb[32].mxu0 }
 0x13a   : > { %v3959_v1 = vadd.f32 %v2773_v22, %v1405_v23  ;;  %v2776_v34 = vadd.f32 %v2775_v32, %v2774_v52  ;;  %v2690_v33 = vpop.f32.mrb[33].mxu0  ;;  %v1424_v23 = vadd.f32 %v3931_v16, %v3906_v14 }
 0x13b   : > { %1974 = vmatmul.mubr.bf16.gmra.mrb[136].mxu1 %v3807_v5  ;;  %v3970_v5 = vadd.f32 %v2690_v33, %v2689_v13  ;;  %v2692_v35 = vpop.f32.mrb[34].mxu0 }
 0x13c   : > { %v3965_v30 = vadd.f32 %v2776_v34, %v1408_v21  ;;  %1981 = vmatprep.mubr.bf16.mxu1 %v714_v43  ;;  %v2693_v28 = vpop.f32.mrb[35].mxu0  ;;  %v1429_v34 = vadd.f32 %v3940_v38, %v3906_v14 }
 0x13d   : > { %v2694_v46 = vadd.f32 %v2693_v28, %v2692_v35  ;;  %v1437_v28 = vadd.f32 %v3955_v7, %v3906_v14 }
 0x13e   : > { %v2777_v37 = vpop.f32.mrb[32].mxu1  ;;  %3142 = vmatmul.mubr.bf16.gmra.mrb[140].mxu0 %v762_v27 }
 0x13f   : > { %v2778_v59 = vpop.f32.mrb[33].mxu1 }
 0x140   : > { %v2779_v6 = vadd.f32 %v2778_v59, %v2777_v37  ;;  %v2780_v57 = vpop.f32.mrb[34].mxu1  ;;  %v1432_v59 = vadd.f32 %v3946_v48, %v3906_v14 }
 0x141   : > { %v2781_v36 = vpop.f32.mrb[35].mxu1  ;;  %v2695_v26 = vpop.f32.mrb[36].mxu0 }
 0x142   : > { %v3974_v47 = vadd.f32 %v2779_v6, %v1413_v10  ;;  %v2782_v40 = vadd.f32 %v2781_v36, %v2780_v57  ;;  %v2696_v50 = vpop.f32.mrb[37].mxu0 }
 0x143   : > { %1982 = vmatmul.mubr.bf16.gmra.mrb[140].mxu1 %v666_v17  ;;  %v3980_v53 = vadd.f32 %v2696_v50, %v2695_v26  ;;  %v2698_v62 = vpop.f32.mrb[38].mxu0  ;;  %v1440_v50 = vadd.f32 %v3961_v2, %v3906_v14  ;;  %v1448_v2 = vadd.f32 %v2694_v46, %v3906_v14 }
 0x144   : > { %v3976_v42 = vadd.f32 %v2782_v40, %v1416_v18  ;;  %v2699_v29 = vpop.f32.mrb[39].mxu0 }
 0x145   : > { %v2700_v41 = vadd.f32 %v2699_v29, %v2698_v62  ;;  %v1453_v46 = vadd.f32 %v3980_v53, %v3906_v14 }
 0x146   : > { %v2783_v20 = vpop.f32.mrb[36].mxu1 }
 0x147   : > { %v2784_v24 = vpop.f32.mrb[37].mxu1 }
 0x148   : > { %v2785_v54 = vadd.f32 %v2784_v24, %v2783_v20  ;;  %v2786_v58 = vpop.f32.mrb[38].mxu1 }
 0x149   : > { %v2787_v60 = vpop.f32.mrb[39].mxu1  ;;  %v2701_v44 = vpop.f32.mrb[40].mxu0 }
 0x14a   : > { %v3984_v22 = vadd.f32 %v2785_v54, %v1421_v56  ;;  %v2788_v52 = vadd.f32 %v2787_v60, %v2786_v58  ;;  %v2702_v21 = vpop.f32.mrb[41].mxu0 }
 0x14b   : > { %v3990_v63 = vadd.f32 %v2702_v21, %v2701_v44  ;;  %v2704_v13 = vpop.f32.mrb[42].mxu0 }
 0x14c   : > { %v3986_v43 = vadd.f32 %v2788_v52, %v1424_v23  ;;  %v2705_v33 = vpop.f32.mrb[43].mxu0  ;;  %v1445_v23 = vadd.f32 %v3970_v5, %v3906_v14 }
 0x14d   : > { %v3996_v17 = vadd.f32 %v2705_v33, %v2704_v13 }
 0x14e   : > { %v2789_v32 = vpop.f32.mrb[40].mxu1 }
 0x14f   : > { %v2790_v45 = vpop.f32.mrb[41].mxu1 }
 0x150   : > { %v2791_v12 = vadd.f32 %v2790_v45, %v2789_v32  ;;  %v2792_v37 = vpop.f32.mrb[42].mxu1 }
 0x151   : > { %v2793_v16 = vpop.f32.mrb[43].mxu1  ;;  %v2707_v6 = vpop.f32.mrb[44].mxu0 }
 0x152   : > { %v3994_v31 = vadd.f32 %v2791_v12, %v1429_v34  ;;  %v2794_v27 = vadd.f32 %v2793_v16, %v2792_v37  ;;  %v2708_v38 = vpop.f32.mrb[45].mxu0 }
 0x153   : > { %v4002_v36 = vadd.f32 %v2708_v38, %v2707_v6  ;;  %v2710_v40 = vpop.f32.mrb[46].mxu0 }
 0x154   : > { %v3998_v10 = vadd.f32 %v2794_v27, %v1432_v59  ;;  %v2711_v48 = vpop.f32.mrb[47].mxu0 }
 0x155   : > { %v4008_v56 = vadd.f32 %v2711_v48, %v2710_v40 }
 0x156   : > { %v2795_v35 = vpop.f32.mrb[44].mxu1 }
 0x157   : > { %v2796_v57 = vpop.f32.mrb[45].mxu1 }
 0x158   : > { %v2797_v18 = vadd.f32 %v2796_v57, %v2795_v35  ;;  %v2798_v26 = vpop.f32.mrb[46].mxu1 }
 0x159   : > { %v2799_v20 = vpop.f32.mrb[47].mxu1  ;;  %v2865_v29 = vpop.f32.mrb[48].mxu0 }
 0x15a   : > { %v4006_v24 = vadd.f32 %v2797_v18, %v1437_v28  ;;  %v2800_v54 = vadd.f32 %v2799_v20, %v2798_v26  ;;  %v2866_v60 = vpop.f32.mrb[49].mxu0 }
 0x15b   : > { %v2867_v44 = vadd.f32 %v2866_v60, %v2865_v29  ;;  %v2868_v21 = vpop.f32.mrb[50].mxu0 }
 0x15c   : > { %v4010_v62 = vadd.f32 %v2800_v54, %v1440_v50  ;;  %v2869_v34 = vpop.f32.mrb[51].mxu0 }
 0x15d   : > { %v4018_v13 = vadd.f32 %v2867_v44, %v3914_v55  ;;  %v2870_v33 = vadd.f32 %v2869_v34, %v2868_v21  ;;  %v1456_v55 = vadd.f32 %v2700_v41, %v3906_v14  ;;  %v1461_v41 = vadd.f32 %v3990_v63, %v3906_v14 }
 0x15e   : > { %v2801_v58 = vpop.f32.mrb[48].mxu1 }
 0x15f   : > { %v2802_v7 = vpop.f32.mrb[49].mxu1  ;;  %v4023_v59 = vadd.f32 %v2870_v33, %v3919_v3 }
 0x160   : > { %v2803_v52 = vadd.f32 %v2802_v7, %v2801_v58  ;;  %v2804_v32 = vpop.f32.mrb[50].mxu1 }
 0x161   : > { %v2805_v45 = vpop.f32.mrb[51].mxu1  ;;  %v2871_v27 = vpop.f32.mrb[52].mxu0 }
 0x162   : > { %v4015_v12 = vadd.f32 %v2803_v52, %v1445_v23  ;;  %v2806_v37 = vadd.f32 %v2805_v45, %v2804_v32  ;;  %v2872_v35 = vpop.f32.mrb[53].mxu0 }
 0x163   : > { %v2873_v57 = vadd.f32 %v2872_v35, %v2871_v27  ;;  %v2874_v18 = vpop.f32.mrb[54].mxu0 }
 0x164   : > { %v4020_v16 = vadd.f32 %v2806_v37, %v1448_v2  ;;  %v2875_v26 = vpop.f32.mrb[55].mxu0 }
 0x165   : > { %v4031_v3 = vadd.f32 %v2873_v57, %v3929_v11  ;;  %v2876_v50 = vadd.f32 %v2875_v26, %v2874_v18  ;;  %v1464_v11 = vadd.f32 %v3996_v17, %v3906_v14  ;;  %v1469_v17 = vadd.f32 %v4002_v36, %v3906_v14 }
 0x166   : > { %v2807_v5 = vpop.f32.mrb[52].mxu1 }
 0x167   : > { %v2808_v6 = vpop.f32.mrb[53].mxu1  ;;  %v4036_v58 = vadd.f32 %v2876_v50, %v3934_v25 }
 0x168   : > { %v2809_v38 = vadd.f32 %v2808_v6, %v2807_v5  ;;  %v2810_v28 = vpop.f32.mrb[54].mxu1 }
 0x169   : > { %v2811_v40 = vpop.f32.mrb[55].mxu1  ;;  %v2877_v29 = vpop.f32.mrb[56].mxu0 }
 0x16a   : > { %v4028_v48 = vadd.f32 %v2809_v38, %v1453_v46  ;;  %v2812_v20 = vadd.f32 %v2811_v40, %v2810_v28  ;;  %v2878_v60 = vpop.f32.mrb[57].mxu0 }
 0x16b   : > { %v2879_v52 = vadd.f32 %v2878_v60, %v2877_v29  ;;  %v2880_v32 = vpop.f32.mrb[58].mxu0 }
 0x16c   : > { %v4033_v54 = vadd.f32 %v2812_v20, %v1456_v55  ;;  %v2881_v2 = vpop.f32.mrb[59].mxu0 }
 0x16d   : > { %v4045_v25 = vadd.f32 %v2879_v52, %v3944_v15  ;;  %v2882_v37 = vadd.f32 %v2881_v2, %v2880_v32  ;;  %v1472_v15 = vadd.f32 %v4008_v56, %v3906_v14  ;;  %v1477_v56 = vadd.f32 %v3859_v61, %v3906_v14 }
 0x16e   : > { %v2813_v53 = vpop.f32.mrb[56].mxu1 }
 0x16f   : > { %v2814_v7 = vpop.f32.mrb[57].mxu1  ;;  %v4050_v63 = vadd.f32 %v2882_v37, %v3949_v51 }
 0x170   : > { %v2815_v23 = vadd.f32 %v2814_v7, %v2813_v53  ;;  %v2816_v44 = vpop.f32.mrb[58].mxu1 }
 0x171   : > { %v2817_v21 = vpop.f32.mrb[59].mxu1  ;;  %v2883_v27 = vpop.f32.mrb[60].mxu0 }
 0x172   : > { %v4042_v45 = vadd.f32 %v2815_v23, %v1461_v41  ;;  %v2818_v34 = vadd.f32 %v2817_v21, %v2816_v44  ;;  %v2884_v35 = vpop.f32.mrb[61].mxu0 }
 0x173   : > { %v2885_v38 = vadd.f32 %v2884_v35, %v2883_v27  ;;  %v2886_v28 = vpop.f32.mrb[62].mxu0 }
 0x174   : > { %v4047_v33 = vadd.f32 %v2818_v34, %v1464_v11  ;;  %v2887_v55 = vpop.f32.mrb[63].mxu0 }
 0x175   : > { %v4059_v51 = vadd.f32 %v2885_v38, %v3959_v1  ;;  %v2888_v20 = vadd.f32 %v2887_v55, %v2886_v28  ;;  %v1480_v1 = vadd.f32 %v3863_v39, %v3906_v14  ;;  %v1485_v39 = vadd.f32 %v3870_v49, %v3906_v14 }
 0x176   : > { %v2819_v5 = vpop.f32.mrb[60].mxu1 }
 0x177   : > { %v2820_v6 = vpop.f32.mrb[61].mxu1  ;;  %v4064_v36 = vadd.f32 %v2888_v20, %v3965_v30 }
 0x178   : > { %v2821_v46 = vadd.f32 %v2820_v6, %v2819_v5  ;;  %v2822_v57 = vpop.f32.mrb[62].mxu1 }
 0x179   : > { %v2823_v18 = vpop.f32.mrb[63].mxu1  ;;  %v2889_v29 = vpop.f32.mrb[64].mxu0 }
 0x17a   : > { %v4056_v40 = vadd.f32 %v2821_v46, %v1469_v17  ;;  %v2824_v26 = vadd.f32 %v2823_v18, %v2822_v57  ;;  %v2890_v60 = vpop.f32.mrb[65].mxu0 }
 0x17b   : > { %v2891_v23 = vadd.f32 %v2890_v60, %v2889_v29  ;;  %v2892_v44 = vpop.f32.mrb[66].mxu0 }
 0x17c   : > { %v4061_v50 = vadd.f32 %v2824_v26, %v1472_v15  ;;  %v2893_v11 = vpop.f32.mrb[67].mxu0 }
 0x17d   : > { %v4073_v30 = vadd.f32 %v2891_v23, %v3974_v47  ;;  %v2894_v34 = vadd.f32 %v2893_v11, %v2892_v44  ;;  %v1488_v47 = vadd.f32 %v3874_v0, %v3906_v14  ;;  %v1493_v0 = vadd.f32 %v3882_v4, %v3906_v14 }
 0x17e   : > { %v2825_v53 = vpop.f32.mrb[64].mxu1 }
 0x17f   : > { %v2826_v7 = vpop.f32.mrb[65].mxu1  ;;  %v4078_v61 = vadd.f32 %v2894_v34, %v3976_v42 }
 0x180   : > { %v2827_v41 = vadd.f32 %v2826_v7, %v2825_v53  ;;  %v2828_v52 = vpop.f32.mrb[66].mxu1 }
 0x181   : > { %v2829_v32 = vpop.f32.mrb[67].mxu1  ;;  %v2895_v27 = vpop.f32.mrb[68].mxu0 }
 0x182   : > { %v4070_v21 = vadd.f32 %v2827_v41, %v1477_v56  ;;  %v2830_v2 = vadd.f32 %v2829_v32, %v2828_v52  ;;  %v2896_v35 = vpop.f32.mrb[69].mxu0 }
 0x183   : > { %v2897_v46 = vadd.f32 %v2896_v35, %v2895_v27  ;;  %v2898_v57 = vpop.f32.mrb[70].mxu0 }
 0x184   : > { %v4075_v37 = vadd.f32 %v2830_v2, %v1480_v1  ;;  %v2899_v15 = vpop.f32.mrb[71].mxu0 }
 0x185   : > { %v4087_v42 = vadd.f32 %v2897_v46, %v3984_v22  ;;  %v2900_v26 = vadd.f32 %v2899_v15, %v2898_v57  ;;  %v1496_v22 = vadd.f32 %v3886_v9, %v3906_v14  ;;  %v1501_v9 = vadd.f32 %v3894_v19, %v3906_v14 }
 0x186   : > { %v2831_v5 = vpop.f32.mrb[68].mxu1 }
 0x187   : > { %v2832_v6 = vpop.f32.mrb[69].mxu1  ;;  %v4092_v49 = vadd.f32 %v2900_v26, %v3986_v43 }
 0x188   : > { %v2833_v17 = vadd.f32 %v2832_v6, %v2831_v5  ;;  %v2834_v38 = vpop.f32.mrb[70].mxu1 }
 0x189   : > { %v2835_v28 = vpop.f32.mrb[71].mxu1  ;;  %v2901_v29 = vpop.f32.mrb[72].mxu0 }
 0x18a   : > { %v4084_v18 = vadd.f32 %v2833_v17, %v1485_v39  ;;  %v2836_v55 = vadd.f32 %v2835_v28, %v2834_v38  ;;  %v2902_v60 = vpop.f32.mrb[73].mxu0 }
 0x18b   : > { %v2903_v41 = vadd.f32 %v2902_v60, %v2901_v29  ;;  %v2904_v52 = vpop.f32.mrb[74].mxu0 }
 0x18c   : > { %v4089_v20 = vadd.f32 %v2836_v55, %v1488_v47  ;;  %v2905_v1 = vpop.f32.mrb[75].mxu0 }
 0x18d   : > { %v4101_v43 = vadd.f32 %v2903_v41, %v3994_v31  ;;  %v2906_v2 = vadd.f32 %v2905_v1, %v2904_v52  ;;  %v1504_v31 = vadd.f32 %v3898_v8, %v3906_v14 }
 0x18e   : > { %v2837_v53 = vpop.f32.mrb[72].mxu1 }
 0x18f   : > { %v2838_v7 = vpop.f32.mrb[73].mxu1  ;;  %v4106_v4 = vadd.f32 %v2906_v2, %v3998_v10 }
 0x190   : > { %v2839_v56 = vadd.f32 %v2838_v7, %v2837_v53  ;;  %v2840_v23 = vpop.f32.mrb[74].mxu1 }
 0x191   : > { %v2841_v44 = vpop.f32.mrb[75].mxu1  ;;  %v2907_v27 = vpop.f32.mrb[76].mxu0 }
 0x192   : > { %v4098_v32 = vadd.f32 %v2839_v56, %v1493_v0  ;;  %v2842_v11 = vadd.f32 %v2841_v44, %v2840_v23  ;;  %v2908_v35 = vpop.f32.mrb[77].mxu0 }
 0x193   : > { %v2909_v17 = vadd.f32 %v2908_v35, %v2907_v27  ;;  %v2910_v38 = vpop.f32.mrb[78].mxu0 }
 0x194   : > { %v4103_v34 = vadd.f32 %v2842_v11, %v1496_v22  ;;  %v2911_v47 = vpop.f32.mrb[79].mxu0 }
 0x195   : > { %v4115_v10 = vadd.f32 %v2909_v17, %v4006_v24  ;;  %v2912_v55 = vadd.f32 %v2911_v47, %v2910_v38 }
 0x196   : > { %v2843_v5 = vpop.f32.mrb[76].mxu1 }
 0x197   : > { %v2844_v6 = vpop.f32.mrb[77].mxu1  ;;  %v4120_v19 = vadd.f32 %v2912_v55, %v4010_v62 }
 0x198   : > { %v2845_v39 = vadd.f32 %v2844_v6, %v2843_v5  ;;  %v2846_v46 = vpop.f32.mrb[78].mxu1 }
 0x199   : > { %v2847_v57 = vpop.f32.mrb[79].mxu1  ;;  %v2913_v53 = vpop.f32.mrb[80].mxu0 }
 0x19a   : > { %v4112_v28 = vadd.f32 %v2845_v39, %v1501_v9  ;;  %v2848_v15 = vadd.f32 %v2847_v57, %v2846_v46  ;;  %v2914_v7 = vpop.f32.mrb[81].mxu0 }
 0x19b   : > { %v2915_v0 = vadd.f32 %v2914_v7, %v2913_v53  ;;  %v2916_v14 = vpop.f32.mrb[82].mxu0 }
 0x19c   : > { %v4117_v26 = vadd.f32 %v2848_v15, %v1504_v31  ;;  %v2917_v41 = vpop.f32.mrb[83].mxu0 }
 0x19d   : > { %v4123_v24 = vadd.f32 %v2915_v0, %v4015_v12  ;;  %v2918_v52 = vadd.f32 %v2917_v41, %v2916_v14 }
 0x19e   : > { %v2977_v29 = vpop.f32.mrb[80].mxu1 }
 0x19f   : > { %v2978_v60 = vpop.f32.mrb[81].mxu1  ;;  %v4129_v62 = vadd.f32 %v2918_v52, %v4020_v16 }
 0x1a0   : > { %v2979_v8 = vadd.f32 %v2978_v60, %v2977_v29  ;;  %v2980_v56 = vpop.f32.mrb[82].mxu1 }
 0x1a1   : > { %v2981_v23 = vpop.f32.mrb[83].mxu1  ;;  %v2919_v11 = vpop.f32.mrb[84].mxu0 }
 0x1a2   : > { %v2982_v22 = vadd.f32 %v2981_v23, %v2980_v56  ;;  %v4126_v44 = vadd.f32 %v2979_v8, %v4018_v13  ;;  %v2920_v5 = vpop.f32.mrb[85].mxu0 }
 0x1a3   : > { %v2921_v6 = vadd.f32 %v2920_v5, %v2919_v11  ;;  %v2922_v9 = vpop.f32.mrb[86].mxu0 }
 0x1a4   : > { %v4132_v1 = vadd.f32 %v2982_v22, %v4023_v59  ;;  %v2923_v39 = vpop.f32.mrb[87].mxu0 }
 0x1a5   : > { %v4135_v46 = vadd.f32 %v2921_v6, %v4028_v48  ;;  %v2924_v13 = vadd.f32 %v2923_v39, %v2922_v9 }
 0x1a6   : > { %v2983_v2 = vpop.f32.mrb[84].mxu1 }
 0x1a7   : > { %v2984_v27 = vpop.f32.mrb[85].mxu1  ;;  %v4141_v59 = vadd.f32 %v2924_v13, %v4033_v54 }
 0x1a8   : > { %v2985_v35 = vadd.f32 %v2984_v27, %v2983_v2  ;;  %v2986_v12 = vpop.f32.mrb[86].mxu1 }
 0x1a9   : > { %v2987_v17 = vpop.f32.mrb[87].mxu1  ;;  %v2925_v57 = vpop.f32.mrb[88].mxu0 }
 0x1aa   : > { %v2988_v38 = vadd.f32 %v2987_v17, %v2986_v12  ;;  %v4138_v16 = vadd.f32 %v2985_v35, %v4031_v3  ;;  %v2926_v15 = vpop.f32.mrb[89].mxu0 }
 0x1ab   : > { %v2927_v53 = vadd.f32 %v2926_v15, %v2925_v57  ;;  %v2928_v7 = vpop.f32.mrb[90].mxu0 }
 0x1ac   : > { %v4144_v31 = vadd.f32 %v2988_v38, %v4036_v58  ;;  %v2929_v60 = vpop.f32.mrb[91].mxu0 }
 0x1ad   : > { %v4147_v8 = vadd.f32 %v2927_v53, %v4042_v45  ;;  %v2930_v3 = vadd.f32 %v2929_v60, %v2928_v7 }
 0x1ae   : > { %v2989_v47 = vpop.f32.mrb[88].mxu1 }
 0x1af   : > { %v2990_v55 = vpop.f32.mrb[89].mxu1  ;;  %v4153_v58 = vadd.f32 %v2930_v3, %v4047_v33 }
 0x1b0   : > { %v2991_v29 = vadd.f32 %v2990_v55, %v2989_v47  ;;  %v2992_v48 = vpop.f32.mrb[90].mxu1 }
 0x1b1   : > { %v2993_v0 = vpop.f32.mrb[91].mxu1  ;;  %v2931_v41 = vpop.f32.mrb[92].mxu0 }
 0x1b2   : > { %v2994_v14 = vadd.f32 %v2993_v0, %v2992_v48  ;;  %v4150_v54 = vadd.f32 %v2991_v29, %v4045_v25  ;;  %v2932_v52 = vpop.f32.mrb[93].mxu0 }
 0x1b3   : > { %v2933_v11 = vadd.f32 %v2932_v52, %v2931_v41  ;;  %v2934_v5 = vpop.f32.mrb[94].mxu0 }
 0x1b4   : > { %v4156_v56 = vadd.f32 %v2994_v14, %v4050_v63  ;;  %v2935_v27 = vpop.f32.mrb[95].mxu0 }
 0x1b5   : > { %v4159_v35 = vadd.f32 %v2933_v11, %v4056_v40  ;;  %v2936_v25 = vadd.f32 %v2935_v27, %v2934_v5 }
 0x1b6   : > { %v2995_v23 = vpop.f32.mrb[92].mxu1 }
 0x1b7   : > { %v2996_v22 = vpop.f32.mrb[93].mxu1  ;;  %v4165_v63 = vadd.f32 %v2936_v25, %v4061_v50 }
 0x1b8   : > { %v2997_v2 = vadd.f32 %v2996_v22, %v2995_v23  ;;  %v2998_v45 = vpop.f32.mrb[94].mxu1 }
 0x1b9   : > { %v2999_v6 = vpop.f32.mrb[95].mxu1  ;;  %v2937_v39 = vpop.f32.mrb[96].mxu0 }
 0x1ba   : > { %v3000_v9 = vadd.f32 %v2999_v6, %v2998_v45  ;;  %v4162_v33 = vadd.f32 %v2997_v2, %v4059_v51  ;;  %v2938_v13 = vpop.f32.mrb[97].mxu0 }
 0x1bb   : > { %v2939_v57 = vadd.f32 %v2938_v13, %v2937_v39  ;;  %v2940_v15 = vpop.f32.mrb[98].mxu0 }
 0x1bc   : > { %v4168_v12 = vadd.f32 %v3000_v9, %v4064_v36  ;;  %v2941_v55 = vpop.f32.mrb[99].mxu0 }
 0x1bd   : > { %v4171_v29 = vadd.f32 %v2939_v57, %v4070_v21  ;;  %v2942_v51 = vadd.f32 %v2941_v55, %v2940_v15 }
 0x1be   : > { %v3001_v17 = vpop.f32.mrb[96].mxu1 }
 0x1bf   : > { %v3002_v38 = vpop.f32.mrb[97].mxu1  ;;  %v4177_v36 = vadd.f32 %v2942_v51, %v4075_v37 }
 0x1c0   : > { %v3003_v47 = vadd.f32 %v3002_v38, %v3001_v17  ;;  %v3004_v40 = vpop.f32.mrb[98].mxu1 }
 0x1c1   : > { %v3005_v53 = vpop.f32.mrb[99].mxu1  ;;  %v2943_v60 = vpop.f32.mrb[100].mxu0 }
 0x1c2   : > { %v3006_v7 = vadd.f32 %v3005_v53, %v3004_v40  ;;  %v4174_v50 = vadd.f32 %v3003_v47, %v4073_v30  ;;  %v2944_v3 = vpop.f32.mrb[101].mxu0 }
 0x1c3   : > { %v2945_v41 = vadd.f32 %v2944_v3, %v2943_v60  ;;  %v2946_v52 = vpop.f32.mrb[102].mxu0 }
 0x1c4   : > { %v4180_v48 = vadd.f32 %v3006_v7, %v4078_v61  ;;  %v2947_v22 = vpop.f32.mrb[103].mxu0 }
 0x1c5   : > { %v4183_v2 = vadd.f32 %v2945_v41, %v4084_v18  ;;  %v2948_v30 = vadd.f32 %v2947_v22, %v2946_v52 }
 0x1c6   : > { %v3007_v0 = vpop.f32.mrb[100].mxu1 }
 0x1c7   : > { %v3008_v14 = vpop.f32.mrb[101].mxu1  ;;  %v4189_v61 = vadd.f32 %v2948_v30, %v4089_v20 }
 0x1c8   : > { %v3009_v23 = vadd.f32 %v3008_v14, %v3007_v0  ;;  %v3010_v21 = vpop.f32.mrb[102].mxu1 }
 0x1c9   : > { %v3011_v11 = vpop.f32.mrb[103].mxu1  ;;  %v2949_v27 = vpop.f32.mrb[104].mxu0 }
 0x1ca   : > { %v3012_v5 = vadd.f32 %v3011_v11, %v3010_v21  ;;  %v4186_v37 = vadd.f32 %v3009_v23, %v4087_v42  ;;  %v2950_v25 = vpop.f32.mrb[105].mxu0 }
 0x1cb   : > { %v2951_v39 = vadd.f32 %v2950_v25, %v2949_v27  ;;  %v2952_v13 = vpop.f32.mrb[106].mxu0 }
 0x1cc   : > { %v4192_v45 = vadd.f32 %v3012_v5, %v4092_v49  ;;  %v2953_v38 = vpop.f32.mrb[107].mxu0 }
 0x1cd   : > { %v4195_v47 = vadd.f32 %v2951_v39, %v4098_v32  ;;  %v2954_v42 = vadd.f32 %v2953_v38, %v2952_v13 }
 0x1ce   : > { %v3013_v6 = vpop.f32.mrb[104].mxu1 }
 0x1cf   : > { %v3014_v9 = vpop.f32.mrb[105].mxu1  ;;  %v4201_v49 = vadd.f32 %v2954_v42, %v4103_v34 }
 0x1d0   : > { %v3015_v17 = vadd.f32 %v3014_v9, %v3013_v6  ;;  %v3016_v18 = vpop.f32.mrb[106].mxu1 }
 0x1d1   : > { %v3017_v57 = vpop.f32.mrb[107].mxu1  ;;  %v2955_v55 = vpop.f32.mrb[108].mxu0 }
 0x1d2   : > { %v3018_v15 = vadd.f32 %v3017_v57, %v3016_v18  ;;  %v4198_v20 = vadd.f32 %v3015_v17, %v4101_v43  ;;  %v2956_v51 = vpop.f32.mrb[109].mxu0 }
 0x1d3   : > { %v2957_v60 = vadd.f32 %v2956_v51, %v2955_v55  ;;  %v2958_v3 = vpop.f32.mrb[110].mxu0 }
 0x1d4   : > { %v4204_v40 = vadd.f32 %v3018_v15, %v4106_v4  ;;  %v2959_v14 = vpop.f32.mrb[111].mxu0 }
 0x1d5   : > { %v4207_v43 = vadd.f32 %v2957_v60, %v4112_v28  ;;  %v2960_v23 = vadd.f32 %v2959_v14, %v2958_v3 }
 0x1d6   : > { %v3019_v53 = vpop.f32.mrb[108].mxu1 }
 0x1d7   : > { %v3020_v7 = vpop.f32.mrb[109].mxu1  ;;  %v4213_v4 = vadd.f32 %v2960_v23, %v4117_v26 }
 0x1d8   : > { %v3021_v0 = vadd.f32 %v3020_v7, %v3019_v53  ;;  %v3022_v32 = vpop.f32.mrb[110].mxu1 }
 0x1d9   : > { %v3023_v41 = vpop.f32.mrb[111].mxu1  ;;  %v3115_v11 = vpop.f32.mrb[112].mxu0 }
 0x1da   : > { %v3024_v34 = vadd.f32 %v3023_v41, %v3022_v32  ;;  %v4210_v52 = vadd.f32 %v3021_v0, %v4115_v10  ;;  %v2033_v30 = vadd.f32 %v3115_v11, %v4138_v16  ;;  %v2024_v27 = vpop.f32.mrb[113].mxu0 }
 0x1db   : > { %v2025_v28 = vadd.f32 %v2024_v27, %v4126_v44  ;;  %v3116_v9 = vpop.f32.mrb[114].mxu0 }
 0x1dc   : > { %v4216_v21 = vadd.f32 %v3024_v34, %v4120_v19  ;;  %v2185_v10 = vmul.f32 0.70710677, %v2033_v30  ;;  %v2036_v39 = vadd.f32 %v3116_v9, %v4144_v31  ;;  %v2027_v17 = vpop.f32.mrb[115].mxu0  ;;  %v2153_v11 = vmul.f32 0.5, %v2033_v30 }
 0x1dd   : > { %v2183_v13 = vmul.f32 0.70710677, %v2025_v28  ;;  %v2028_v18 = vadd.f32 %v2027_v17, %v4132_v1  ;;  %v2151_v27 = vmul.f32 0.5, %v2025_v28 }
 0x1de   : > { %v3025_v22 = vpop.f32.mrb[112].mxu1  ;;  %3242 = verf.f32 %v2185_v10  ;;  %v2186_v38 = vmul.f32 0.70710677, %v2036_v39  ;;  %v2154_v9 = vmul.f32 0.5, %v2036_v39 }
 0x1df   : > { %v3026_v5 = vpop.f32.mrb[113].mxu1  ;;  %3244 = verf.f32 %v2183_v13  ;;  %v2184_v44 = vmul.f32 0.70710677, %v2028_v18  ;;  %v2152_v10 = vmul.f32 0.5, %v2028_v18 }
 0x1e0   : > { %v3027_v6 = vadd.f32 %v3026_v5, %v3025_v22  ;;  %v3028_v25 = vpop.f32.mrb[114].mxu1  ;;  %3246 = verf.f32 %v2186_v38 }
 0x1e1   : > { %v3029_v26 = vpop.f32.mrb[115].mxu1  ;;  %3248 = verf.f32 %v2184_v44  ;;  %v3119_v42 = vpop.f32.mrb[116].mxu0 }
 0x1e2   : > { %v3030_v19 = vadd.f32 %v3029_v26, %v3028_v25  ;;  %v4224_v16 = vadd.f32 %v3027_v6, %v4123_v24  ;;  %v2049_v15 = vadd.f32 %v3119_v42, %v4162_v33  ;;  %v2040_v53 = vpop.f32.mrb[117].mxu0 }
 0x1e3   : > { %v2041_v24 = vadd.f32 %v2040_v53, %v4150_v54  ;;  %v3120_v7 = vpop.f32.mrb[118].mxu0 }
 0x1e4   : > { %v4227_v57 = vadd.f32 %v3030_v19, %v4129_v62  ;;  %v2189_v60 = vmul.f32 0.70710677, %v2049_v15  ;;  %v2052_v62 = vadd.f32 %v3120_v7, %v4168_v12  ;;  %v2043_v3 = vpop.f32.mrb[119].mxu0  ;;  %v2157_v39 = vmul.f32 0.5, %v2049_v15 }
 0x1e5   : > { %v2187_v32 = vmul.f32 0.70710677, %v2041_v24  ;;  %v2044_v41 = vadd.f32 %v2043_v3, %v4156_v56 }
 0x1e6   : > { %v3031_v31 = vpop.f32.mrb[116].mxu1  ;;  %3250 = verf.f32 %v2189_v60  ;;  %v2190_v33 = vmul.f32 0.70710677, %v2052_v62  ;;  %v2158_v7 = vmul.f32 0.5, %v2052_v62 }
 0x1e7   : > { %v3032_v55 = vpop.f32.mrb[117].mxu1  ;;  %3252 = verf.f32 %v2187_v32  ;;  %v2188_v34 = vmul.f32 0.70710677, %v2044_v41 }
 0x1e8   : > { %v3033_v1 = vadd.f32 %v3032_v55, %v3031_v31  ;;  %v3034_v51 = vpop.f32.mrb[118].mxu1  ;;  %v3243_v22 = vpop.eup %3242  ;;  %3254 = verf.f32 %v2190_v33 }
 0x1e9   : > { %v3035_v0 = vpop.f32.mrb[119].mxu1  ;;  %v3245_v12 = vpop.eup %3244  ;;  %v2249_v5 = vadd.f32 1.0, %v3243_v22  ;;  %3256 = verf.f32 %v2188_v34 }
 0x1ea   : > { %v3036_v14 = vadd.f32 %v3035_v0, %v3034_v51  ;;  %v4236_v23 = vadd.f32 %v3033_v1, %v4135_v46  ;;  %v3123_v56 = vpop.f32.mrb[120].mxu0  ;;  %v3247_v25 = vpop.eup %3246  ;;  %v2247_v46 = vadd.f32 1.0, %v3245_v12  ;;  %v2155_v51 = vmul.f32 0.5, %v2041_v24 }
 0x1eb   : > { %v2056_v30 = vpop.f32.mrb[121].mxu0  ;;  %v3249_v17 = vpop.eup %3248  ;;  %v2281_v28 = vmul.f32 %v2249_v5, %v2153_v11  ;;  %v2250_v13 = vadd.f32 1.0, %v3247_v25  ;;  %v2156_v0 = vmul.f32 0.5, %v2044_v41 }
 0x1ec   : > { %v4240_v54 = vadd.f32 %v3036_v14, %v4141_v59  ;;  %v4248_v59 = vadd.f32 %v3123_v56, %v4186_v37  ;;  %v4251_v38 = vadd.f32 %v2056_v30, %v4174_v50  ;;  %v3124_v31 = vpop.f32.mrb[122].mxu0  ;;  %v2279_v42 = vmul.f32 %v2247_v46, %v2151_v27 }
 0x1ed   : > { %v2248_v55 = vadd.f32 1.0, %v3249_v17  ;;  %v2059_v53 = vpop.f32.mrb[123].mxu0  ;;  %2313 = vst [vmem:[%s4245_s11 + $0x10] sm:$0xff] %v2281_v28  ;;  %v2282_v1 = vmul.f32 %v2250_v13, %v2154_v9  ;;  %v4258_v3 = vadd.f32 %v3124_v31, %v4192_v45  ;;  %v2382_v32 = vmul.f32 %v2281_v28, %v2281_v28 }
 0x1ee   : > { %v3037_v6 = vpop.f32.mrb[120].mxu1  ;;  %v2193_v37 = vmul.f32 0.70710677, %v4248_v59  ;;  %v2191_v60 = vmul.f32 0.70710677, %v4251_v38  ;;  %2311 = vst [vmem:[%s4245_s11] sm:$0xff] %v2279_v42  ;;  %v4264_v14 = vadd.f32 %v2059_v53, %v4180_v48  ;;  %v2380_v24 = vmul.f32 %v2279_v42, %v2279_v42 }
 0x1ef   : > { %v3038_v26 = vpop.f32.mrb[121].mxu1  ;;  %v2280_v50 = vmul.f32 %v2248_v55, %v2152_v10  ;;  %2314 = vst [vmem:[%s4245_s11 + $0x18] sm:$0xff] %v2282_v1  ;;  %v2194_v22 = vmul.f32 0.70710677, %v4258_v3  ;;  %v2383_v12 = vmul.f32 %v2282_v1, %v2282_v1 }
 0x1f0   : > { %v3039_v19 = vadd.f32 %v3038_v26, %v3037_v6  ;;  %v3040_v44 = vpop.f32.mrb[122].mxu1  ;;  %3258 = verf.f32 %v2193_v37  ;;  %v3251_v33 = vpop.eup %3250  ;;  %v2192_v45 = vmul.f32 0.70710677, %v4264_v14 }
 0x1f1   : > { %v3041_v18 = vpop.f32.mrb[123].mxu1  ;;  %3260 = verf.f32 %v2191_v60  ;;  %2312 = vst [vmem:[%s4245_s11 + $0x8] sm:$0xff] %v2280_v50  ;;  %v2343_v62 = vadd.f32 %v2280_v50, %v2279_v42  ;;  %v2381_v34 = vmul.f32 %v2280_v50, %v2280_v50  ;;  %v3253_v41 = vpop.eup %3252  ;;  %v2253_v11 = vadd.f32 1.0, %v3251_v33 }
 0x1f2   : > { %v4261_v15 = vadd.f32 %v3041_v18, %v3040_v44  ;;  %v3127_v27 = vpop.f32.mrb[124].mxu0  ;;  %v4270_v6 = vadd.f32 %v3039_v19, %v4147_v8  ;;  %v3255_v56 = vpop.eup %3254  ;;  %v2251_v46 = vadd.f32 1.0, %v3253_v41  ;;  %3262 = verf.f32 %v2194_v22 }
 0x1f3   : > { %v2344_v48 = vadd.f32 %v2343_v62, %v2281_v28  ;;  %v2412_v25 = vadd.f32 %v2381_v34, %v2380_v24  ;;  %v2072_v10 = vpop.f32.mrb[125].mxu0  ;;  %v3257_v26 = vpop.eup %3256  ;;  %v2285_v30 = vmul.f32 %v2253_v11, %v2157_v39  ;;  %v2254_v17 = vadd.f32 1.0, %v3255_v56 }
 0x1f4   : > { %3264 = verf.f32 %v2192_v45  ;;  %v4273_v13 = vadd.f32 %v3127_v27, %v4210_v52  ;;  %v3128_v31 = vpop.f32.mrb[126].mxu0  ;;  %v2283_v19 = vmul.f32 %v2251_v46, %v2155_v51  ;;  %v2252_v42 = vadd.f32 1.0, %v3257_v26 }
 0x1f5   : > { %v2413_v8 = vadd.f32 %v2412_v25, %v2382_v32  ;;  %v2345_v28 = vadd.f32 %v2344_v48, %v2282_v1  ;;  %v2075_v37 = vpop.f32.mrb[127].mxu0  ;;  %2317 = vst [vmem:[%s4245_s11 + $0x30] sm:$0xff] %v2285_v30  ;;  %v2286_v18 = vmul.f32 %v2254_v17, %v2158_v7  ;;  %v2161_v39 = vmul.f32 0.5, %v4248_v59 }
 0x1f6   : > { %v3043_v5 = vpop.f32.mrb[124].mxu1  ;;  %v2197_v53 = vmul.f32 0.70710677, %v4273_v13  ;;  %2315 = vst [vmem:[%s4245_s11 + $0x20] sm:$0xff] %v2283_v19  ;;  %v2384_v52 = vmul.f32 %v2283_v19, %v2283_v19  ;;  %v2284_v33 = vmul.f32 %v2252_v42, %v2156_v0  ;;  %v2159_v32 = vmul.f32 0.5, %v4251_v38 }
 0x1f7   : > { %v3044_v9 = vpop.f32.mrb[125].mxu1  ;;  %v2346_v60 = vadd.f32 %v2345_v28, %v2283_v19  ;;  %v2414_v50 = vadd.f32 %v2413_v8, %v2383_v12  ;;  %2318 = vst [vmem:[%s4245_s11 + $0x38] sm:$0xff] %v2286_v18  ;;  %v4284_v51 = vadd.f32 %v2072_v10, %v4198_v20  ;;  %v4288_v34 = vadd.f32 %v3128_v31, %v4216_v21 }
 0x1f8   : > { %v3046_v44 = vpop.f32.mrb[126].mxu1  ;;  %3266 = verf.f32 %v2197_v53  ;;  %v4281_v1 = vadd.f32 %v3044_v9, %v3043_v5  ;;  %2316 = vst [vmem:[%s4245_s11 + $0x28] sm:$0xff] %v2284_v33  ;;  %v2385_v62 = vmul.f32 %v2284_v33, %v2284_v33  ;;  %v2386_v41 = vmul.f32 %v2285_v30, %v2285_v30 }
 0x1f9   : > { %v3047_v55 = vpop.f32.mrb[127].mxu1  ;;  %v2415_v7 = vadd.f32 %v2414_v50, %v2384_v52  ;;  %v2347_v59 = vadd.f32 %v2346_v60, %v2284_v33  ;;  %v2195_v12 = vmul.f32 0.70710677, %v4284_v51  ;;  %v3131_v45 = vpop.f32.mrb[128].mxu0  ;;  %v2387_v5 = vmul.f32 %v2286_v18, %v2286_v18 }
 0x1fa   : > { %v3259_v24 = vpop.eup %3258  ;;  %v4291_v38 = vadd.f32 %v3047_v55, %v3046_v44  ;;  %v2088_v25 = vpop.f32.mrb[129].mxu0  ;;  %v2198_v21 = vmul.f32 0.70710677, %v4288_v34  ;;  %v4295_v9 = vadd.f32 %v2075_v37, %v4204_v40  ;;  %v2162_v55 = vmul.f32 0.5, %v4258_v3 }
 0x1fb   : > { %v3261_v22 = vpop.eup %3260  ;;  %v2257_v0 = vadd.f32 1.0, %v3259_v24  ;;  %v2348_v20 = vadd.f32 %v2347_v59, %v2285_v30  ;;  %v2416_v27 = vadd.f32 %v2415_v7, %v2385_v62  ;;  %3268 = verf.f32 %v2195_v12  ;;  %v3132_v26 = vpop.f32.mrb[130].mxu0 }
 0x1fc   : > { %v2255_v56 = vadd.f32 1.0, %v3261_v22  ;;  %v3263_v17 = vpop.eup %3262  ;;  %v4298_v30 = vadd.f32 %v3131_v45, %v4236_v23  ;;  %v2091_v28 = vpop.f32.mrb[131].mxu0  ;;  %v2160_v40 = vmul.f32 0.5, %v4264_v14  ;;  %3270 = verf.f32 %v2198_v21 }
 0x1fd   : > { %v2289_v46 = vmul.f32 %v2257_v0, %v2161_v39  ;;  %v2417_v44 = vadd.f32 %v2416_v27, %v2386_v41  ;;  %v2349_v8 = vadd.f32 %v2348_v20, %v2286_v18  ;;  %v2258_v39 = vadd.f32 1.0, %v3263_v17 }
 0x1fe   : > { %v3049_v11 = vpop.f32.mrb[128].mxu1  ;;  %v2287_v31 = vmul.f32 %v2255_v56, %v2159_v32  ;;  %v3265_v42 = vpop.eup %3264  ;;  %v2196_v23 = vmul.f32 0.70710677, %v4295_v9  ;;  %v2201_v50 = vmul.f32 0.70710677, %v4298_v30  ;;  %v4309_v3 = vadd.f32 %v2088_v25, %v4224_v16 }
 0x1ff   : > { %v3050_v48 = vpop.f32.mrb[129].mxu1  ;;  %2321 = vst [vmem:[%s4245_s11 + $0x50] sm:$0xff] %v2289_v46  ;;  %v2418_v60 = vadd.f32 %v2417_v44, %v2387_v5  ;;  %v2256_v52 = vadd.f32 1.0, %v3265_v42  ;;  %v2290_v18 = vmul.f32 %v2258_v39, %v2162_v55  ;;  %v2165_v7 = vmul.f32 0.5, %v4273_v13 }
 0x200   : > { %v3052_v10 = vpop.f32.mrb[130].mxu1  ;;  %2319 = vst [vmem:[%s4245_s11 + $0x40] sm:$0xff] %v2287_v31  ;;  %v2350_v37 = vadd.f32 %v2349_v8, %v2287_v31  ;;  %v2388_v53 = vmul.f32 %v2287_v31, %v2287_v31  ;;  %v4306_v24 = vadd.f32 %v3050_v48, %v3049_v11  ;;  %3272 = verf.f32 %v2196_v23 }
 0x201   : > { %v3053_v19 = vpop.f32.mrb[131].mxu1  ;;  %v2288_v32 = vmul.f32 %v2256_v52, %v2160_v40  ;;  %2322 = vst [vmem:[%s4245_s11 + $0x58] sm:$0xff] %v2290_v18  ;;  %v4314_v59 = vadd.f32 %v3132_v26, %v4240_v54  ;;  %v3135_v41 = vpop.f32.mrb[132].mxu0  ;;  %3274 = verf.f32 %v2201_v50  ;;  %v2390_v5 = vmul.f32 %v2289_v46, %v2289_v46 }
 0x202   : > { %v2419_v33 = vadd.f32 %v2418_v60, %v2388_v53  ;;  %v3267_v14 = vpop.eup %3266  ;;  %v4316_v62 = vadd.f32 %v3053_v19, %v3052_v10  ;;  %v2104_v16 = vpop.f32.mrb[133].mxu0  ;;  %v2163_v20 = vmul.f32 0.5, %v4284_v51  ;;  %v2199_v13 = vmul.f32 0.70710677, %v4309_v3 }
 0x203   : > { %2320 = vst [vmem:[%s4245_s11 + $0x48] sm:$0xff] %v2288_v32  ;;  %v2351_v0 = vadd.f32 %v2350_v37, %v2288_v32  ;;  %v2389_v12 = vmul.f32 %v2288_v32, %v2288_v32  ;;  %v2261_v11 = vadd.f32 1.0, %v3267_v14  ;;  %v2202_v27 = vmul.f32 0.70710677, %v4314_v59  ;;  %v3136_v10 = vpop.f32.mrb[134].mxu0 }
 0x204   : > { %v4325_v25 = vadd.f32 %v2091_v28, %v4227_v57  ;;  %3276 = verf.f32 %v2199_v13  ;;  %v1952_v17 = vadd.f32 %v4281_v1, %v4159_v35  ;;  %v4330_v44 = vadd.f32 %v2104_v16, %v4270_v6  ;;  %v2107_v8 = vpop.f32.mrb[135].mxu0 }
 0x205   : > { %v2352_v54 = vadd.f32 %v2351_v0, %v2289_v46  ;;  %v2420_v56 = vadd.f32 %v2419_v33, %v2389_v12  ;;  %v4322_v48 = vmul.f32 %v2261_v11, %v2165_v7  ;;  %v3269_v26 = vpop.eup %3268  ;;  %v2391_v46 = vmul.f32 %v2290_v18, %v2290_v18 }
 0x206   : > { %v3055_v22 = vpop.f32.mrb[132].mxu1  ;;  %v2259_v42 = vadd.f32 1.0, %v3269_v26  ;;  %v3271_v28 = vpop.eup %3270  ;;  %v2166_v55 = vmul.f32 0.5, %v4288_v34  ;;  %3278 = verf.f32 %v2202_v27  ;;  %v2200_v39 = vmul.f32 0.70710677, %v4325_v25 }
 0x207   : > { %v3056_v45 = vpop.f32.mrb[133].mxu1  ;;  %v2421_v19 = vadd.f32 %v2420_v56, %v2390_v5  ;;  %2325 = vst [vmem:[%s4245_s11 + $0x70] sm:$0xff] %v4322_v48  ;;  %v2353_v57 = vadd.f32 %v2352_v54, %v2290_v18  ;;  %v4336_v35 = vadd.f32 %v3135_v41, %v1952_v17  ;;  %v2262_v40 = vadd.f32 1.0, %v3271_v28 }
 0x208   : > { %v3058_v21 = vpop.f32.mrb[134].mxu1  ;;  %v3057_v51 = vadd.f32 %v3056_v45, %v3055_v22  ;;  %v2291_v1 = vmul.f32 %v2259_v42, %v2163_v20  ;;  %v2164_v37 = vmul.f32 0.5, %v4295_v9  ;;  %v2169_v53 = vmul.f32 0.5, %v4298_v30 }
 0x209   : > { %v3059_v31 = vpop.f32.mrb[135].mxu1  ;;  %v2422_v6 = vadd.f32 %v2421_v19, %v2391_v46  ;;  %3280 = verf.f32 %v2200_v39  ;;  %v2205_v60 = vmul.f32 0.70710677, %v4336_v35  ;;  %v2203_v52 = vmul.f32 0.70710677, %v4330_v44  ;;  %v3139_v32 = vpop.f32.mrb[136].mxu0 }
 0x20a   : > { %2323 = vst [vmem:[%s4245_s11 + $0x60] sm:$0xff] %v2291_v1  ;;  %v2354_v34 = vadd.f32 %v2353_v57, %v2291_v1  ;;  %v2392_v23 = vmul.f32 %v2291_v1, %v2291_v1  ;;  %v2294_v50 = vmul.f32 %v2262_v40, %v2166_v55  ;;  %v1955_v33 = vadd.f32 %v4291_v38, %v4165_v63  ;;  %v3273_v7 = vpop.eup %3272  ;;  %v2120_v41 = vpop.f32.mrb[137].mxu0 }
 0x20b   : > { %3282 = verf.f32 %v2205_v60  ;;  %v3060_v9 = vadd.f32 %v3059_v31, %v3058_v21  ;;  %v1947_v30 = vadd.f32 %v4261_v15, %v4153_v58  ;;  %v1968_v22 = vadd.f32 %v3057_v51, %v4183_v2  ;;  %v3275_v12 = vpop.eup %3274  ;;  %v3140_v63 = vpop.f32.mrb[138].mxu0 }
 0x20c   : > { %v2423_v11 = vadd.f32 %v2422_v6, %v2392_v23  ;;  %2326 = vst [vmem:[%s4245_s11 + $0x78] sm:$0xff] %v2294_v50  ;;  %v2260_v45 = vadd.f32 1.0, %v3273_v7  ;;  %v2167_v16 = vmul.f32 0.5, %v4309_v3  ;;  %3284 = verf.f32 %v2203_v52  ;;  %v4354_v58 = vpop.f32.mrb[139].mxu0 }
 0x20d   : > { %v2265_v5 = vadd.f32 1.0, %v3275_v12  ;;  %v2116_v20 = vadd.f32 %v3136_v10, %v1955_v33  ;;  %v4350_v13 = vadd.f32 %v2107_v8, %v1947_v30  ;;  %v4352_v27 = vadd.f32 %v3139_v32, %v1968_v22 }
 0x20e   : > { %v3061_v18 = vpop.f32.mrb[136].mxu1  ;;  %v2292_v2 = vmul.f32 %v2260_v45, %v2164_v37  ;;  %v1960_v54 = vadd.f32 %v4306_v24, %v4171_v29  ;;  %v1971_v3 = vadd.f32 %v3060_v9, %v4189_v61  ;;  %v3277_v56 = vpop.eup %3276  ;;  %v2394_v21 = vmul.f32 %v4322_v48, %v4322_v48 }
 0x20f   : > { %v3062_v14 = vpop.f32.mrb[137].mxu1  ;;  %v4363_v10 = vmul.f32 %v2265_v5, %v2169_v53  ;;  %v2170_v26 = vmul.f32 0.5, %v4314_v59  ;;  %v2206_v17 = vmul.f32 0.70710677, %v2116_v20  ;;  %v2263_v8 = vadd.f32 1.0, %v3277_v56 }
 0x210   : > { %v3064_v0 = vpop.f32.mrb[138].mxu1  ;;  %v4356_v15 = vadd.f32 %v3062_v14, %v3061_v18  ;;  %2324 = vst [vmem:[%s4245_s11 + $0x68] sm:$0xff] %v2292_v2  ;;  %v2355_v51 = vadd.f32 %v2354_v34, %v2292_v2  ;;  %v2393_v31 = vmul.f32 %v2292_v2, %v2292_v2  ;;  %v2204_v46 = vmul.f32 0.70710677, %v4350_v13  ;;  %v3279_v19 = vpop.eup %3278 }
 0x211   : > { %v3065_v38 = vpop.f32.mrb[139].mxu1  ;;  %v2395_v42 = vmul.f32 %v2294_v50, %v2294_v50  ;;  %2329 = vst [vmem:[%s4245_s11 + $0x90] sm:$0xff] %v4363_v10  ;;  %v2168_v29 = vmul.f32 0.5, %v4325_v25  ;;  %3286 = verf.f32 %v2206_v17  ;;  %v2209_v61 = vmul.f32 0.70710677, %v4352_v27  ;;  %v4372_v57 = vpop.f32.mrb[140].mxu0 }
 0x212   : > { %v2356_v59 = vadd.f32 %v2355_v51, %v4322_v48  ;;  %v2424_v28 = vadd.f32 %v2423_v11, %v2393_v31  ;;  %v2295_v55 = vmul.f32 %v2263_v8, %v2167_v16  ;;  %v2266_v39 = vadd.f32 1.0, %v3279_v19  ;;  %v2136_v6 = vpop.f32.mrb[141].mxu0 }
 0x213   : > { %v3281_v40 = vpop.eup %3280  ;;  %3288 = verf.f32 %v2204_v46  ;;  %v4375_v37 = vadd.f32 %v2120_v41, %v1960_v54  ;;  %v4377_v53 = vadd.f32 %v3140_v63, %v1971_v3  ;;  %v4379_v25 = vadd.f32 %v3065_v38, %v3064_v0  ;;  %v4381_v52 = vpop.f32.mrb[142].mxu0 }
 0x214   : > { %v2425_v18 = vadd.f32 %v2424_v28, %v2394_v21  ;;  %2327 = vst [vmem:[%s4245_s11 + $0x80] sm:$0xff] %v2295_v55  ;;  %v2357_v48 = vadd.f32 %v2356_v59, %v2294_v50  ;;  %v2396_v34 = vmul.f32 %v2295_v55, %v2295_v55  ;;  %v2298_v23 = vmul.f32 %v2266_v39, %v2170_v26  ;;  %v4384_v32 = vpop.f32.mrb[143].mxu0 }
 0x215   : > { %v3283_v14 = vpop.eup %3282  ;;  %v2264_v7 = vadd.f32 1.0, %v3281_v40  ;;  %v2171_v9 = vmul.f32 0.5, %v4330_v44  ;;  %3290 = verf.f32 %v2209_v61  ;;  %v2207_v30 = vmul.f32 0.70710677, %v4375_v37 }
 0x216   : > { %v3067_v24 = vpop.f32.mrb[140].mxu1  ;;  %v3285_v22 = vpop.eup %3284  ;;  %v2358_v41 = vadd.f32 %v2357_v48, %v2295_v55  ;;  %v2426_v0 = vadd.f32 %v2425_v18, %v2395_v42  ;;  %2330 = vst [vmem:[%s4245_s11 + $0x98] sm:$0xff] %v2298_v23  ;;  %v2173_v12 = vmul.f32 0.5, %v4336_v35  ;;  %v2269_v50 = vadd.f32 1.0, %v3283_v14 }
 0x217   : > { %v3068_v1 = vpop.f32.mrb[141].mxu1  ;;  %v2296_v11 = vmul.f32 %v2264_v7, %v2168_v29  ;;  %v2267_v45 = vadd.f32 1.0, %v3285_v22  ;;  %v2174_v16 = vmul.f32 0.5, %v2116_v20  ;;  %3292 = verf.f32 %v2207_v30 }
 0x218   : > { %v3070_v60 = vpop.f32.mrb[142].mxu1  ;;  %v2427_v63 = vadd.f32 %v2426_v0, %v2396_v34  ;;  %v2301_v38 = vmul.f32 %v2269_v50, %v2173_v12  ;;  %v2210_v44 = vmul.f32 0.70710677, %v4377_v53  ;;  %v1963_v5 = vadd.f32 %v4316_v62, %v4177_v36 }
 0x219   : > { %v3071_v33 = vpop.f32.mrb[143].mxu1  ;;  %2328 = vst [vmem:[%s4245_s11 + $0x88] sm:$0xff] %v2296_v11  ;;  %v2359_v2 = vadd.f32 %v2358_v41, %v2296_v11  ;;  %v2397_v54 = vmul.f32 %v2296_v11, %v2296_v11  ;;  %v2299_v3 = vmul.f32 %v2267_v45, %v2171_v9  ;;  %v3069_v56 = vadd.f32 %v3068_v1, %v3067_v24 }
 0x21a   : > { %v2398_v35 = vmul.f32 %v4363_v10, %v4363_v10  ;;  %2333 = vst [vmem:[%s4245_s11 + $0xb0] sm:$0xff] %v2301_v38  ;;  %3294 = verf.f32 %v2210_v44  ;;  %v4398_v20 = vadd.f32 %v4354_v58, %v1963_v5  ;;  %v1976_v21 = vadd.f32 %v4356_v15, %v4195_v47 }
 0x21b   : > { %v3287_v26 = vpop.eup %3286  ;;  %v2399_v17 = vmul.f32 %v2298_v23, %v2298_v23  ;;  %v2360_v36 = vadd.f32 %v2359_v2, %v4363_v10  ;;  %v2428_v62 = vadd.f32 %v2427_v63, %v2397_v54  ;;  %2331 = vst [vmem:[%s4245_s11 + $0xa0] sm:$0xff] %v2299_v3  ;;  %v1984_v51 = vadd.f32 %v3069_v56, %v4207_v43 }
 0x21c   : > { %v2400_v31 = vmul.f32 %v2299_v3, %v2299_v3  ;;  %v2270_v8 = vadd.f32 1.0, %v3287_v26  ;;  %v2208_v46 = vmul.f32 0.70710677, %v4398_v20  ;;  %v4406_v19 = vadd.f32 %v2136_v6, %v1976_v21 }
 0x21d   : > { %v3289_v58 = vpop.eup %3288  ;;  %v2429_v42 = vadd.f32 %v2428_v62, %v2398_v35  ;;  %v2361_v29 = vadd.f32 %v2360_v36, %v2298_v23  ;;  %v2145_v47 = vadd.f32 %v4372_v57, %v1984_v51  ;;  %v3072_v15 = vadd.f32 %v3071_v33, %v3070_v60 }
 0x21e   : > { %v2302_v61 = vmul.f32 %v2270_v8, %v2174_v16  ;;  %v2172_v10 = vmul.f32 0.5, %v4350_v13  ;;  %v2268_v24 = vadd.f32 1.0, %v3289_v58  ;;  %3296 = verf.f32 %v2208_v46 }
 0x21f   : > { %v3291_v43 = vpop.eup %3290  ;;  %v2362_v59 = vadd.f32 %v2361_v29, %v2299_v3  ;;  %v2430_v28 = vadd.f32 %v2429_v42, %v2399_v17  ;;  %v2177_v55 = vmul.f32 0.5, %v4352_v27  ;;  %v2213_v39 = vmul.f32 0.70710677, %v2145_v47 }
 0x220   : > { %2334 = vst [vmem:[%s4245_s11 + $0xb8] sm:$0xff] %v2302_v61  ;;  %v2300_v1 = vmul.f32 %v2268_v24, %v2172_v10  ;;  %v2273_v6 = vadd.f32 1.0, %v3291_v43  ;;  %v2175_v40 = vmul.f32 0.5, %v4375_v37  ;;  %v2211_v57 = vmul.f32 0.70710677, %v4406_v19 }
 0x221   : > { %v3293_v60 = vpop.eup %3292  ;;  %v2431_v18 = vadd.f32 %v2430_v28, %v2400_v31  ;;  %3298 = verf.f32 %v2213_v39  ;;  %v1987_v13 = vadd.f32 %v3072_v15, %v4213_v4  ;;  %v1979_v48 = vadd.f32 %v4379_v25, %v4201_v49 }
 0x222   : > { %2332 = vst [vmem:[%s4245_s11 + $0xa8] sm:$0xff] %v2300_v1  ;;  %v2363_v34 = vadd.f32 %v2362_v59, %v2300_v1  ;;  %v2401_v27 = vmul.f32 %v2300_v1, %v2300_v1  ;;  %v2305_v23 = vmul.f32 %v2273_v6, %v2177_v55  ;;  %v2271_v33 = vadd.f32 1.0, %v3293_v60 }
 0x223   : > { %3300 = verf.f32 %v2211_v57  ;;  %v2148_v37 = vadd.f32 %v4381_v52, %v1987_v13  ;;  %v2140_v14 = vadd.f32 %v4384_v32, %v1979_v48  ;;  %v2402_v9 = vmul.f32 %v2301_v38, %v2301_v38 }
 0x224   : > { %v3295_v7 = vpop.eup %3294  ;;  %v2364_v30 = vadd.f32 %v2363_v34, %v2301_v38  ;;  %v2432_v22 = vadd.f32 %v2431_v18, %v2401_v27  ;;  %2337 = vst [vmem:[%s4245_s11 + $0xd0] sm:$0xff] %v2305_v23  ;;  %v2303_v4 = vmul.f32 %v2271_v33, %v2175_v40  ;;  %v2403_v41 = vmul.f32 %v2302_v61, %v2302_v61 }
 0x225   : > { %v2178_v49 = vmul.f32 0.5, %v4377_v53  ;;  %v2274_v25 = vadd.f32 1.0, %v3295_v7  ;;  %v2214_v0 = vmul.f32 0.70710677, %v2148_v37  ;;  %v2212_v45 = vmul.f32 0.70710677, %v2140_v14 }
 0x226   : > { %v2433_v12 = vadd.f32 %v2432_v22, %v2402_v9  ;;  %2335 = vst [vmem:[%s4245_s11 + $0xc0] sm:$0xff] %v2303_v4  ;;  %v2365_v50 = vadd.f32 %v2364_v30, %v2302_v61  ;;  %v2404_v11 = vmul.f32 %v2303_v4, %v2303_v4  ;;  %v2176_v38 = vmul.f32 0.5, %v4398_v20 }
 0x227   : > { %v2306_v52 = vmul.f32 %v2274_v25, %v2178_v49  ;;  %3302 = verf.f32 %v2214_v0  ;;  %v2181_v54 = vmul.f32 0.5, %v2145_v47  ;;  %v2179_v17 = vmul.f32 0.5, %v4406_v19 }
 0x228   : > { %v3297_v32 = vpop.eup %3296  ;;  %v2366_v16 = vadd.f32 %v2365_v50, %v2303_v4  ;;  %v2434_v63 = vadd.f32 %v2433_v12, %v2403_v41  ;;  %3304 = verf.f32 %v2212_v45  ;;  %v2406_v62 = vmul.f32 %v2305_v23, %v2305_v23 }
 0x229   : > { %2338 = vst [vmem:[%s4245_s11 + $0xd8] sm:$0xff] %v2306_v52  ;;  %v2272_v44 = vadd.f32 1.0, %v3297_v32  ;;  %v2407_v46 = vmul.f32 %v2306_v52, %v2306_v52  ;;  %v2182_v15 = vmul.f32 0.5, %v2148_v37  ;;  %v2180_v19 = vmul.f32 0.5, %v2140_v14 }
 0x22a   : > { %v2435_v53 = vadd.f32 %v2434_v63, %v2404_v11 }
 0x22b   : > { %v3299_v5 = vpop.eup %3298  ;;  %v2304_v2 = vmul.f32 %v2272_v44, %v2176_v38 }
 0x22c   : > { %v2277_v3 = vadd.f32 1.0, %v3299_v5 }
 0x22d   : > { %v3301_v56 = vpop.eup %3300  ;;  %2336 = vst [vmem:[%s4245_s11 + $0xc8] sm:$0xff] %v2304_v2  ;;  %v2367_v35 = vadd.f32 %v2366_v16, %v2304_v2  ;;  %v2405_v21 = vmul.f32 %v2304_v2, %v2304_v2 }
 0x22e   : > { %v2309_v26 = vmul.f32 %v2277_v3, %v2181_v54  ;;  %v2275_v36 = vadd.f32 1.0, %v3301_v56 }
 0x22f   : > { %v2368_v51 = vadd.f32 %v2367_v35, %v2305_v23  ;;  %v2436_v31 = vadd.f32 %v2435_v53, %v2405_v21 }
 0x230   : > { %2341 = vst [vmem:[%s4245_s11 + $0xf0] sm:$0xff] %v2309_v26  ;;  %v2307_v20 = vmul.f32 %v2275_v36, %v2179_v17  ;;  %v2410_v39 = vmul.f32 %v2309_v26, %v2309_v26 }
 0x231   : > { %v3303_v8 = vpop.eup %3302  ;;  %v2437_v58 = vadd.f32 %v2436_v31, %v2406_v62  ;;  %v2369_v42 = vadd.f32 %v2368_v51, %v2306_v52 }
 0x232   : > { %v3305_v29 = vpop.eup %3304  ;;  %2339 = vst [vmem:[%s4245_s11 + $0xe0] sm:$0xff] %v2307_v20  ;;  %v2408_v47 = vmul.f32 %v2307_v20, %v2307_v20  ;;  %v2278_v61 = vadd.f32 1.0, %v3303_v8 }
 0x233   : > { %v2370_v10 = vadd.f32 %v2369_v42, %v2307_v20  ;;  %v2438_v24 = vadd.f32 %v2437_v58, %v2407_v46  ;;  %v2276_v43 = vadd.f32 1.0, %v3305_v29 }
 0x234   : > { %v2310_v59 = vmul.f32 %v2278_v61, %v2182_v15 }
 0x235   : > { %v2439_v28 = vadd.f32 %v2438_v24, %v2408_v47  ;;  %v2308_v55 = vmul.f32 %v2276_v43, %v2180_v19 }
 0x236   : > { %2342 = vst [vmem:[%s4245_s11 + $0xf8] sm:$0xff] %v2310_v59  ;;  %v2411_v40 = vmul.f32 %v2310_v59, %v2310_v59 }
 0x237   : > { %2340 = vst [vmem:[%s4245_s11 + $0xe8] sm:$0xff] %v2308_v55  ;;  %v2371_v1 = vadd.f32 %v2370_v10, %v2308_v55  ;;  %v2409_v6 = vmul.f32 %v2308_v55, %v2308_v55 }
 0x239   : > { %v2372_v57 = vadd.f32 %v2371_v1, %v2309_v26  ;;  %v2440_v60 = vadd.f32 %v2439_v28, %v2409_v6 }
 0x23b   : > { %v2373_v18 = vadd.f32 %v2372_v57, %v2310_v59  ;;  %v2441_v13 = vadd.f32 %v2440_v60, %v2410_v39 }
 0x23d   : > { %v2374_v48 = vrot.slane %v2373_v18, 4  ;;  %v2442_v34 = vadd.f32 %v2441_v13, %v2411_v40 }
 0x23f   : > { %v2375_v27 = vadd.f32 %v2374_v48, %v2373_v18  ;;  %v2443_v23 = vrot.slane %v2442_v34, 4 }
 0x241   : > { %v2376_v33 = vrot.slane %v2375_v27, 2  ;;  %v2444_v37 = vadd.f32 %v2443_v23, %v2442_v34 }
 0x243   : > { %v2377_v14 = vadd.f32 %v2376_v33, %v2375_v27  ;;  %v2445_v7 = vrot.slane %v2444_v37, 2 }
 0x245   : > { %v2378_v9 = vrot.slane %v2377_v14, 1  ;;  %v2446_v30 = vadd.f32 %v2445_v7, %v2444_v37 }
 0x247   : > { %v2447_v22 = vrot.slane %v2446_v30, 1  ;;  %v2379_v4 = vadd.f32 %v2378_v9, %v2377_v14 }
 0x249   : > { %v2448_v41 = vadd.f32 %v2447_v22, %v2446_v30 }
 0x24b   : > { %v2450_v49 = vsel %vm2449_vm0, %v2379_v4, %v2448_v41 }
 0x24c   : > { %2451 = vst [vmem:[%s209_s13] sm:$0x3] %v2450_v49 }
 0x24d PF: > { %s15_s15 = sadd.s32 1, %s3313_s15  }
 0x24e   : > { %p12_p5 = scmp.ge.s32.totalorder %s15_s15, 4  }
 0x250   :  { %14 = sbr.rel (!%p12_p5) target bundleno = 1 (0x1), region = 76 }

</bundles_post_ra>
